<compile_context>
chip_gen: v7x
topology: tpu7x:2x2x1
jax: 0.10.0
libtpu: 0.0.40
codegen_flags: <defaults>
</compile_context>

<pallas_src>
import math
from functools import partial

import jax
import jax.numpy as jnp
from jax import lax
from jax.experimental import pallas as pl
from jax.experimental.pallas import tpu as pltpu

EPS = 1e-5
LANE = 128


# --------------------------------------------------------------------------- helpers
def _rup(x, m):
    return ((x + m - 1) // m) * m


def _pad_axis(a, axis, new_size, value=0.0):
    pad = new_size - a.shape[axis]
    if pad == 0:
        return a
    cfg = [(0, 0)] * a.ndim
    cfg[axis] = (0, pad)
    return jnp.pad(a, cfg, constant_values=value)


def _nbytes(shape, dtype):
    return int(math.prod(shape)) * jnp.dtype(dtype).itemsize


def _pick_rows(total, cap):
    """Largest divisor of `total` that is a multiple of 8 and <= cap (fallback: total)."""
    best = None
    for d in range(8, min(total, cap) + 1, 8):
        if total % d == 0:
            best = d
    return best if best is not None else total


def _pick_band_rows(H, W, Cp):
    """Row-band height for the stride-1 depthwise stage: divides H, band*W a multiple of
    8 (sublane-aligned flat blocks), f32 scratch for one band kept around <= 4 MiB."""
    halo = _rup(W + 1, 8)
    max_rows = max((4 << 20) // (4 * Cp) - 2 * halo, W)
    best = None
    for th in range(1, H + 1):
        if H % th == 0 and th * W <= max_rows and (th * W) % 8 == 0:
            best = th
    return best if best is not None else H


def _vmem_cap_bytes():
    try:
        return int(pltpu.get_tpu_info().vmem_capacity_bytes)
    except Exception:
        return 64 << 20                       # v7x-safe default


def _cparams(sems, block_bytes, scratch_bytes=0):
    # double-buffered pipeline blocks + scratch + margin, generation-aware cap with headroom
    need = 2 * int(block_bytes) + int(scratch_bytes) + (4 << 20)
    limit = max(32 << 20, min(need, _vmem_cap_bytes() - (8 << 20)))
    return pltpu.CompilerParams(dimension_semantics=sems, vmem_limit_bytes=limit)


def _fold_bn(stats, gamma, beta, count):
    """Fold batch statistics (partial sums) into y = x * scale + bias."""
    # TODO(synk): one-pass E[x^2]-E[x]^2 variance can cancel at production batch*HW counts;
    # switch to a shifted formula if that ever matters.
    s = jnp.sum(stats, axis=0).reshape(2, -1)            # (2, C): sum, sum of squares
    mean = s[0] / count
    var = jnp.maximum(s[1] / count - mean * mean, 0.0)
    scale = gamma * lax.rsqrt(var + EPS)
    bias = beta - mean * scale
    return jnp.stack([scale, bias], axis=0)[:, None, :]  # (2, 1, C)


# ----------------------------------------------------------------------- stage kernels
def _expand_kernel(split, mm_dtype, x_ref, w_ref, *refs):
    """1x1 expand conv fused with the 1x1 shortcut conv (single MXU matmul) on one
    spatial row tile, plus accumulated BatchNorm statistics."""
    s = pl.program_id(1)
    x = x_ref[0].astype(mm_dtype)                                     # (TS, Cin_p)
    u = jnp.dot(x, w_ref[...], preferred_element_type=jnp.float32)    # (TS, Ptot) f32
    if split is None:
        u_ref, st_ref = refs
        u_ref[0] = u.astype(u_ref.dtype)
    else:
        u_ref, usc_ref, st_ref = refs
        u_ref[0] = u[:, :split].astype(u_ref.dtype)
        usc_ref[0] = u[:, split:].astype(usc_ref.dtype)
    ssum = jnp.sum(u, axis=0, keepdims=True)
    ssq = jnp.sum(u * u, axis=0, keepdims=True)

    @pl.when(s == 0)
    def _():
        st_ref[0, 0] = ssum
        st_ref[0, 1] = ssq

    @pl.when(s != 0)
    def _():
        st_ref[0, 0] = st_ref[0, 0] + ssum
        st_ref[0, 1] = st_ref[0, 1] + ssq


def _dw_s1_kernel(W, TH, halo, u_ref, top_ref, bot_ref, sb_ref, wd_ref,
                  v_ref, st_ref, scr_ref):
    """Folded BN1 + ReLU + depthwise 3x3 (stride 1, pad 1) on one flat row band
    (TH*W, C), halo rows delivered as shifted single-row blocks; per-column partial
    sums so the W-edge masks are applied once per column group."""
    b = pl.program_id(1)
    nb = pl.num_programs(1)
    SB = TH * W
    C = u_ref.shape[2]
    slack = halo - W

    scale, bias = sb_ref[0], sb_ref[1]
    t = jnp.maximum(u_ref[0].astype(jnp.float32) * scale + bias, 0.0)      # BN1 + ReLU
    ttop = jnp.maximum(top_ref[0].astype(jnp.float32) * scale + bias, 0.0)
    tbot = jnp.maximum(bot_ref[0].astype(jnp.float32) * scale + bias, 0.0)
    ttop = ttop * (b > 0).astype(jnp.float32)          # band 0: padded row above is zero
    tbot = tbot * (b < nb - 1).astype(jnp.float32)     # last band: padded row below is zero

    zslack = jnp.zeros((slack, C), jnp.float32)
    scr_ref[0:slack, :] = zslack
    scr_ref[slack:halo, :] = ttop
    scr_ref[halo:halo + SB, :] = t
    scr_ref[halo + SB:halo + SB + W, :] = tbot
    scr_ref[halo + SB + W:halo + SB + W + slack, :] = zslack

    col = lax.broadcasted_iota(jnp.int32, (SB, 1), 0) % W
    m0 = (col > 0).astype(jnp.float32)                 # kill left tap at col 0
    m1 = (col < W - 1).astype(jnp.float32)             # kill right tap at col W-1

    wd = wd_ref[...]                                   # (9, 1, C), loaded once

    # TODO(synk): the unaligned sublane-offset window reads could become pltpu.roll shifts
    # if the bundle dump shows the align-copies on the critical slot.
    def tap(di, dj):
        off = halo + (di - 1) * W + (dj - 1)
        return scr_ref[off:off + SB, :]

    acc = tap(0, 1) * wd[1] + tap(1, 1) * wd[4] + tap(2, 1) * wd[7]
    left = tap(0, 0) * wd[0] + tap(1, 0) * wd[3] + tap(2, 0) * wd[6]
    right = tap(0, 2) * wd[2] + tap(1, 2) * wd[5] + tap(2, 2) * wd[8]
    acc = acc + left * m0 + right * m1

    v_ref[0] = acc.astype(v_ref.dtype)
    ssum = jnp.sum(acc, axis=0, keepdims=True)
    ssq = jnp.sum(acc * acc, axis=0, keepdims=True)

    @pl.when(b == 0)
    def _():
        st_ref[0, 0] = ssum
        st_ref[0, 1] = ssq

    @pl.when(b != 0)
    def _():
        st_ref[0, 0] = st_ref[0, 0] + ssum
        st_ref[0, 1] = st_ref[0, 1] + ssq


def _dw_strided_kernel(H, W, Ho, Wo, stride,
                       u_ref, sb_ref, wd_ref, v_ref, st_ref, pad_ref):
    """Folded BN1 + ReLU + depthwise 3x3 with stride >= 2 via a per-image padded scratch
    (only the 1-pixel border is zeroed); taps are strided reads."""
    C = u_ref.shape[2]
    t = jnp.maximum(u_ref[0].astype(jnp.float32) * sb_ref[0] + sb_ref[1], 0.0)  # (H*W, C)

    zrow = jnp.zeros((1, W + 2, C), jnp.float32)
    zcol = jnp.zeros((H + 2, 1, C), jnp.float32)
    pad_ref[0:1, :, :] = zrow
    pad_ref[H + 1:H + 2, :, :] = zrow
    pad_ref[:, 0:1, :] = zcol
    pad_ref[:, W + 1:W + 2, :] = zcol
    pad_ref[1:H + 1, 1:W + 1, :] = t.reshape(H, W, C)

    wd = wd_ref[...]                                                  # (9, 1, C)
    # TODO(synk): the 9 two-axis strided tap reads could be reduced to row-only strides
    # plus a single column decimation; kept as-is for robustness (stride-2 blocks are rare).
    acc = jnp.zeros((Ho, Wo, C), jnp.float32)
    for di in range(3):
        for dj in range(3):
            tap = pad_ref[pl.ds(di, Ho, stride=stride), pl.ds(dj, Wo, stride=stride), :]
            acc = acc + tap * wd[3 * di + dj].reshape(1, 1, C)
    v = acc.reshape(Ho * Wo, C)
    v_ref[0] = v.astype(v_ref.dtype)
    st_ref[0, 0] = jnp.sum(v, axis=0, keepdims=True)
    st_ref[0, 1] = jnp.sum(v * v, axis=0, keepdims=True)


def _pointwise_kernel(mm_dtype, v_ref, sb_ref, w_ref, y_ref, st_ref):
    """Folded BN2 + ReLU + 1x1 pointwise conv (MXU) + accumulated BatchNorm3 statistics."""
    s = pl.program_id(1)
    t = jnp.maximum(v_ref[0].astype(jnp.float32) * sb_ref[0] + sb_ref[1], 0.0)
    y = jnp.dot(t.astype(mm_dtype), w_ref[...], preferred_element_type=jnp.float32)
    y_ref[0] = y.astype(y_ref.dtype)
    ssum = jnp.sum(y, axis=0, keepdims=True)
    ssq = jnp.sum(y * y, axis=0, keepdims=True)

    @pl.when(s == 0)
    def _():
        st_ref[0, 0] = ssum
        st_ref[0, 1] = ssq

    @pl.when(s != 0)
    def _():
        st_ref[0, 0] = st_ref[0, 0] + ssum
        st_ref[0, 1] = st_ref[0, 1] + ssq


def _final_plain_kernel(y_ref, sb_ref, o_ref):
    o_ref[0] = (y_ref[0].astype(jnp.float32) * sb_ref[0] + sb_ref[1]).astype(o_ref.dtype)


def _final_identity_kernel(y_ref, sb_ref, x_ref, o_ref):
    o_ref[0] = (y_ref[0].astype(jnp.float32) * sb_ref[0] + sb_ref[1]
                + x_ref[0].astype(jnp.float32)).astype(o_ref.dtype)


def _final_shortcut_kernel(y_ref, sb_ref, u_ref, sbs_ref, o_ref):
    o_ref[0] = (y_ref[0].astype(jnp.float32) * sb_ref[0] + sb_ref[1]
                + u_ref[0].astype(jnp.float32) * sbs_ref[0] + sbs_ref[1]).astype(o_ref.dtype)


# ----------------------------------------------------------------------------- wrapper
def mobilenetv2_block(x_nchw, params, *, stride,
                      matmul_dtype=jnp.bfloat16, store_dtype=jnp.bfloat16):
    """Forward pass of the MobileNetV2 Block with PyTorch training-mode BN semantics."""
    f32 = jnp.float32
    N, Cin, H, W = x_nchw.shape
    P = params["w1"].shape[1]
    Cout = params["w3"].shape[1]
    has_sc_conv = (stride == 1) and (Cin != Cout)
    identity_sc = (stride == 1) and (Cin == Cout)
    Ho = (H - 1) // stride + 1
    Wo = (W - 1) // stride + 1
    S, So = H * W, Ho * Wo

    Cin_p = _rup(Cin, LANE)
    Pp = _rup(P, LANE)
    Cout_p = _rup(Cout, LANE)
    Ptot = Pp + (Cout_p if has_sc_conv else 0)
    sbytes = jnp.dtype(store_dtype).itemsize

    # ---- lane-dense flat NHWC input (N, H*W, Cin_p) ----
    x = jnp.transpose(x_nchw, (0, 2, 3, 1)).astype(f32).reshape(N, S, Cin)
    x = _pad_axis(x, 2, Cin_p)

    # ---- padded weights / BN parameters (expand and shortcut 1x1 convs fused) ----
    w1 = _pad_axis(_pad_axis(params["w1"].astype(f32), 0, Cin_p), 1, Pp)
    g1 = _pad_axis(params["g1"].reshape(-1).astype(f32), 0, Pp, 1.0)
    b1 = _pad_axis(params["b1"].reshape(-1).astype(f32), 0, Pp)
    if has_sc_conv:
        ws = _pad_axis(_pad_axis(params["ws"].astype(f32), 0, Cin_p), 1, Cout_p)
        wcat = jnp.concatenate([w1, ws], axis=1)
        g_cat = jnp.concatenate(
            [g1, _pad_axis(params["gs"].reshape(-1).astype(f32), 0, Cout_p, 1.0)])
        b_cat = jnp.concatenate(
            [b1, _pad_axis(params["bs"].reshape(-1).astype(f32), 0, Cout_p)])
    else:
        wcat, g_cat, b_cat = w1, g1, b1
    wcat = wcat.astype(matmul_dtype)
    wd = _pad_axis(params["wd"].astype(f32), 1, Pp)[:, None, :]          # (9, 1, Pp)
    w3 = _pad_axis(_pad_axis(params["w3"].astype(f32), 0, Pp), 1, Cout_p).astype(matmul_dtype)
    g2 = _pad_axis(params["g2"].reshape(-1).astype(f32), 0, Pp, 1.0)
    b2 = _pad_axis(params["b2"].reshape(-1).astype(f32), 0, Pp)
    g3 = _pad_axis(params["g3"].reshape(-1).astype(f32), 0, Cout_p, 1.0)
    b3 = _pad_axis(params["b3"].reshape(-1).astype(f32), 0, Cout_p)

    # -------- stage 1: fused expand(+shortcut) 1x1 conv (MXU) + BN statistics --------
    TS1 = _pick_rows(S, 512)
    in_specs1 = [pl.BlockSpec((1, TS1, Cin_p), lambda n, s: (n, s, 0)),
                 pl.BlockSpec((Cin_p, Ptot), lambda n, s: (0, 0))]
    out_specs1 = [pl.BlockSpec((1, TS1, Pp), lambda n, s: (n, s, 0))]
    out_shape1 = [jax.ShapeDtypeStruct((N, S, Pp), store_dtype)]
    if has_sc_conv:
        out_specs1.append(pl.BlockSpec((1, TS1, Cout_p), lambda n, s: (n, s, 0)))
        out_shape1.append(jax.ShapeDtypeStruct((N, S, Cout_p), store_dtype))
    out_specs1.append(pl.BlockSpec((1, 2, 1, Ptot), lambda n, s: (n, 0, 0, 0)))
    out_shape1.append(jax.ShapeDtypeStruct((N, 2, 1, Ptot), f32))
    blk1 = (_nbytes((TS1, Cin_p), f32) + _nbytes((Cin_p, Ptot), matmul_dtype)
            + TS1 * Ptot * (sbytes + 4) + _nbytes((2, 1, Ptot), f32))
    res1 = pl.pallas_call(
        partial(_expand_kernel, Pp if has_sc_conv else None, matmul_dtype),
        grid=(N, S // TS1),
        in_specs=in_specs1,
        out_specs=tuple(out_specs1),
        out_shape=tuple(out_shape1),
        compiler_params=_cparams(("parallel", "arbitrary"), blk1),
    )(x, wcat)
    if has_sc_conv:
        u, u_sc, stats1 = res1
    else:
        u, stats1 = res1
        u_sc = None
    sb_all = _fold_bn(stats1, g_cat, b_cat, N * S)                       # (2, 1, Ptot)
    sb1 = sb_all[:, :, :Pp]
    sb_sc = sb_all[:, :, Pp:] if has_sc_conv else None

    # ---------------- stage 2: BN1 + ReLU + depthwise 3x3 + BN statistics ----------------
    if stride == 1:
        TH = _pick_band_rows(H, W, Pp)
        nb = H // TH
        halo = _rup(W + 1, 8)
        u_rows = u.reshape(N * H, W, Pp)                 # row view for the halo blocks

        def top_map(n, b):
            return (n * H + jnp.maximum(b * TH - 1, 0), 0, 0)

        def bot_map(n, b):
            return (n * H + jnp.minimum(b * TH + TH, H - 1), 0, 0)

        blk2 = (2 * TH * W * Pp * sbytes + 2 * W * Pp * sbytes
                + 2 * _nbytes((2, 1, Pp), f32) + _nbytes((9, 1, Pp), f32))
        scratch2 = _nbytes((TH * W + 2 * halo, Pp), f32)
        v, stats2 = pl.pallas_call(
            partial(_dw_s1_kernel, W, TH, halo),
            grid=(N, nb),
            in_specs=[pl.BlockSpec((1, TH * W, Pp), lambda n, b: (n, b, 0)),
                      pl.BlockSpec((1, W, Pp), top_map),
                      pl.BlockSpec((1, W, Pp), bot_map),
                      pl.BlockSpec((2, 1, Pp), lambda n, b: (0, 0, 0)),
                      pl.BlockSpec((9, 1, Pp), lambda n, b: (0, 0, 0))],
            out_specs=(pl.BlockSpec((1, TH * W, Pp), lambda n, b: (n, b, 0)),
                       pl.BlockSpec((1, 2, 1, Pp), lambda n, b: (n, 0, 0, 0))),
            out_shape=(jax.ShapeDtypeStruct((N, S, Pp), store_dtype),
                       jax.ShapeDtypeStruct((N, 2, 1, Pp), f32)),
            scratch_shapes=[pltpu.VMEM((TH * W + 2 * halo, Pp), f32)],
            compiler_params=_cparams(("parallel", "arbitrary"), blk2, scratch2),
        )(u, u_rows, u_rows, sb1, wd)
    else:
        blk2 = (S * Pp * sbytes + So * Pp * sbytes
                + 2 * _nbytes((2, 1, Pp), f32) + _nbytes((9, 1, Pp), f32))
        scratch2 = _nbytes((H + 2, W + 2, Pp), f32)
        v, stats2 = pl.pallas_call(
            partial(_dw_strided_kernel, H, W, Ho, Wo, stride),
            grid=(N,),
            in_specs=[pl.BlockSpec((1, S, Pp), lambda n: (n, 0, 0)),
                      pl.BlockSpec((2, 1, Pp), lambda n: (0, 0, 0)),
                      pl.BlockSpec((9, 1, Pp), lambda n: (0, 0, 0))],
            out_specs=(pl.BlockSpec((1, So, Pp), lambda n: (n, 0, 0)),
                       pl.BlockSpec((1, 2, 1, Pp), lambda n: (n, 0, 0, 0))),
            out_shape=(jax.ShapeDtypeStruct((N, So, Pp), store_dtype),
                       jax.ShapeDtypeStruct((N, 2, 1, Pp), f32)),
            scratch_shapes=[pltpu.VMEM((H + 2, W + 2, Pp), f32)],
            compiler_params=_cparams(("parallel",), blk2, scratch2),
        )(u, sb1, wd)
    sb2 = _fold_bn(stats2, g2, b2, N * So)

    # ----------- stage 3: BN2 + ReLU + pointwise 1x1 conv (MXU) + BN statistics -----------
    TS3 = _pick_rows(So, 512)
    blk3 = (TS3 * Pp * sbytes + _nbytes((2, 1, Pp), f32)
            + _nbytes((Pp, Cout_p), matmul_dtype)
            + TS3 * Cout_p * (sbytes + 4) + _nbytes((2, 1, Cout_p), f32))
    y, stats3 = pl.pallas_call(
        partial(_pointwise_kernel, matmul_dtype),
        grid=(N, So // TS3),
        in_specs=[pl.BlockSpec((1, TS3, Pp), lambda n, s: (n, s, 0)),
                  pl.BlockSpec((2, 1, Pp), lambda n, s: (0, 0, 0)),
                  pl.BlockSpec((Pp, Cout_p), lambda n, s: (0, 0))],
        out_specs=(pl.BlockSpec((1, TS3, Cout_p), lambda n, s: (n, s, 0)),
                   pl.BlockSpec((1, 2, 1, Cout_p), lambda n, s: (n, 0, 0, 0))),
        out_shape=(jax.ShapeDtypeStruct((N, So, Cout_p), store_dtype),
                   jax.ShapeDtypeStruct((N, 2, 1, Cout_p), f32)),
        compiler_params=_cparams(("parallel", "arbitrary"), blk3),
    )(v, sb2, w3)
    sb3 = _fold_bn(stats3, g3, b3, N * So)

    # ---------------- stage 4: BN3 + residual add ----------------
    TS4 = _pick_rows(So, 1024)
    grid4 = (N, So // TS4)
    out_shape4 = jax.ShapeDtypeStruct((N, So, Cout_p), f32)
    out_spec4 = pl.BlockSpec((1, TS4, Cout_p), lambda n, s: (n, s, 0))
    blk4 = TS4 * Cout_p * (sbytes + 8) + 2 * _nbytes((2, 1, Cout_p), f32)
    cp4 = _cparams(("parallel", "parallel"), blk4)
    if has_sc_conv:
        out = pl.pallas_call(
            _final_shortcut_kernel, grid=grid4,
            in_specs=[pl.BlockSpec((1, TS4, Cout_p), lambda n, s: (n, s, 0)),
                      pl.BlockSpec((2, 1, Cout_p), lambda n, s: (0, 0, 0)),
                      pl.BlockSpec((1, TS4, Cout_p), lambda n, s: (n, s, 0)),
                      pl.BlockSpec((2, 1, Cout_p), lambda n, s: (0, 0, 0))],
            out_specs=out_spec4, out_shape=out_shape4, compiler_params=cp4,
        )(y, sb3, u_sc, sb_sc)
    elif identity_sc:
        out = pl.pallas_call(
            _final_identity_kernel, grid=grid4,
            in_specs=[pl.BlockSpec((1, TS4, Cout_p), lambda n, s: (n, s, 0)),
                      pl.BlockSpec((2, 1, Cout_p), lambda n, s: (0, 0, 0)),
                      pl.BlockSpec((1, TS4, Cin_p), lambda n, s: (n, s, 0))],
            out_specs=out_spec4, out_shape=out_shape4, compiler_params=cp4,
        )(y, sb3, x)
    else:
        out = pl.pallas_call(
            _final_plain_kernel, grid=grid4,
            in_specs=[pl.BlockSpec((1, TS4, Cout_p), lambda n, s: (n, s, 0)),
                      pl.BlockSpec((2, 1, Cout_p), lambda n, s: (0, 0, 0))],
            out_specs=out_spec4, out_shape=out_shape4, compiler_params=cp4,
        )(y, sb3)

    out = out.reshape(N, Ho, Wo, Cout_p)[..., :Cout]
    # TODO(synk): emitting NHWC (or fusing this slice into stage 4's out_spec) would drop
    # one more XLA relayout pass if the consumer can take channels-last.
    return jnp.transpose(out, (0, 3, 1, 2))                              # NHWC -> NCHW


# --------------------------------------------------------------------- pure-JAX reference
def _bn_ref(t, gamma, beta):
    mean = jnp.mean(t, axis=(0, 1, 2), keepdims=True)
    var = jnp.mean(jnp.square(t - mean), axis=(0, 1, 2), keepdims=True)
    return ((t - mean) * lax.rsqrt(var + EPS) * gamma.reshape(1, 1, 1, -1)
            + beta.reshape(1, 1, 1, -1))


def block_reference(x_nchw, params, *, stride, matmul_dtype=jnp.float32):
    """Reference with PyTorch training-mode BatchNorm semantics."""
    md = matmul_dtype
    hi = lax.Precision.HIGHEST
    x = jnp.transpose(x_nchw, (0, 2, 3, 1)).astype(jnp.float32)
    Cin = x.shape[-1]
    P = params["w1"].shape[1]
    Cout = params["w3"].shape[1]

    t = jnp.einsum("nhwc,cp->nhwp", x.astype(md), params["w1"].astype(md),
                   preferred_element_type=jnp.float32, precision=hi)
    t = jax.nn.relu(_bn_ref(t, params["g1"], params["b1"]))
    wd = params["wd"].astype(jnp.float32).reshape(3, 3, 1, P)
    t = lax.conv_general_dilated(t, wd, (stride, stride), ((1, 1), (1, 1)),
                                 dimension_numbers=("NHWC", "HWIO", "NHWC"),
                                 feature_group_count=P, precision=hi)
    t = jax.nn.relu(_bn_ref(t, params["g2"], params["b2"]))
    y = jnp.einsum("nhwp,po->nhwo", t.astype(md), params["w3"].astype(md),
                   preferred_element_type=jnp.float32, precision=hi)
    y = _bn_ref(y, params["g3"], params["b3"])
    if stride == 1:
        if Cin != Cout:
            sc = jnp.einsum("nhwc,co->nhwo", x.astype(md), params["ws"].astype(md),
                            preferred_element_type=jnp.float32, precision=hi)
            sc = _bn_ref(sc, params["gs"], params["bs"])
        else:
            sc = x
        y = y + sc
    return jnp.transpose(y, (0, 3, 1, 2))


def init_params(key, in_planes, out_planes, expansion, stride):
    planes = expansion * in_planes
    ks = jax.random.split(key, 12)
    f32 = jnp.float32
    p = {
        "w1": 0.1 * jax.random.normal(ks[0], (in_planes, planes), f32),
        "wd": 0.1 * jax.random.normal(ks[1], (9, planes), f32),       # 3x3 depthwise taps
        "w3": 0.1 * jax.random.normal(ks[2], (planes, out_planes), f32),
        "g1": 1.0 + 0.1 * jax.random.normal(ks[3], (planes,), f32),
        "b1": 0.1 * jax.random.normal(ks[4], (planes,), f32),
        "g2": 1.0 + 0.1 * jax.random.normal(ks[5], (planes,), f32),
        "b2": 0.1 * jax.random.normal(ks[6], (planes,), f32),
        "g3": 1.0 + 0.1 * jax.random.normal(ks[7], (out_planes,), f32),
        "b3": 0.1 * jax.random.normal(ks[8], (out_planes,), f32),
    }
    if stride == 1 and in_planes != out_planes:
        p["ws"] = 0.1 * jax.random.normal(ks[9], (in_planes, out_planes), f32)
        p["gs"] = 1.0 + 0.1 * jax.random.normal(ks[10], (out_planes,), f32)
        p["bs"] = 0.1 * jax.random.normal(ks[11], (out_planes,), f32)
    return p


if __name__ == "__main__":
    key = jax.random.PRNGKey(0)
    configs = [
        # (in_planes, out_planes, expansion, stride, N, H, W)
        (8, 16, 3, 1, 2, 16, 16),   # stride 1, Cin != Cout -> 1x1-conv shortcut
        (16, 16, 2, 1, 2, 16, 16),  # stride 1, Cin == Cout -> identity shortcut
        (8, 16, 3, 2, 2, 16, 16),   # stride 2              -> no residual
    ]
    for (in_planes, out_planes, expansion, stride, N, H, W) in configs:
        key, kx, kp = jax.random.split(key, 3)
        x = jax.random.normal(kx, (N, in_planes, H, W), jnp.float32)   # NCHW like PyTorch
        params = init_params(kp, in_planes, out_planes, expansion, stride)

        Ho = (H - 1) // stride + 1
        Wo = (W - 1) // stride + 1

        # Default (performance) path: bf16 MXU operands + bf16 inter-stage activations.
        fwd = jax.jit(partial(mobilenetv2_block, stride=stride))
        out = jax.block_until_ready(fwd(x, params))
        assert out.shape == (N, out_planes, Ho, Wo), out.shape

        ref_f32 = block_reference(x, params, stride=stride, matmul_dtype=jnp.float32)
        diff = jnp.abs(out - ref_f32)
        mean_err = float(jnp.mean(diff))
        max_err = float(jnp.max(diff))
        assert mean_err < 2e-2 and max_err < 1.5e-1, (stride, mean_err, max_err)

        # Kernel-logic exactness: f32 inter-stage storage vs a reference that applies the
        # same (intentional) bf16 rounding of the 1x1-conv MXU operands.
        fwd32 = jax.jit(partial(mobilenetv2_block, stride=stride, store_dtype=jnp.float32))
        out32 = jax.block_until_ready(fwd32(x, params))
        ref_bf16 = block_reference(x, params, stride=stride, matmul_dtype=jnp.bfloat16)
        err_tight = float(jnp.max(jnp.abs(out32 - ref_bf16)))
        assert err_tight < 5e-3, (stride, err_tight)

    print("KERNEL_OK")
</pallas_src>

<mosaic_0001>
module attributes {stable_mosaic.version = 11 : i64} {
  func.func @_expand_kernel(%arg0: i32, %arg1: i32, %arg2: memref<1x256x128xf32, #tpu.memory_space<vmem>>, %arg3: memref<128x256xbf16, #tpu.memory_space<vmem>>, %arg4: memref<1x256x128xbf16, #tpu.memory_space<vmem>>, %arg5: memref<1x256x128xbf16, #tpu.memory_space<vmem>>, %arg6: memref<1x2x1x256xf32, #tpu.memory_space<vmem>>) attributes {dimension_semantics = [#tpu.dimension_semantics<parallel>, #tpu.dimension_semantics<arbitrary>], iteration_bounds = array<i64: 2, 1>, scalar_prefetch = 0 : i64, scratch_operands = 0 : i64, tpu.core_type = #tpu.core_type<tc>, window_params = [{transform_indices = @transform_0, window_bounds = array<i64: 1, 256, 128>}, {pipeline_mode = #tpu.pipeline_mode<synchronous>, transform_indices = @transform_1, window_bounds = array<i64: 128, 256>}, {transform_indices = @transform_2, window_bounds = array<i64: 1, 256, 128>}, {transform_indices = @transform_3, window_bounds = array<i64: 1, 256, 128>}, {transform_indices = @transform_4, window_bounds = array<i64: 1, 2, 1, 256>}]} {
    %c0 = arith.constant 0 : index
    %c0_0 = arith.constant 0 : index
    %c0_1 = arith.constant 0 : index
    %0 = vector.load %arg2[%c0, %c0_0, %c0_1] : memref<1x256x128xf32, #tpu.memory_space<vmem>>, vector<1x256x128xf32>
    %1 = vector.shape_cast %0 : vector<1x256x128xf32> to vector<256x128xf32>
    %2 = arith.truncf %1 : vector<256x128xf32> to vector<256x128xbf16>
    %c0_2 = arith.constant 0 : index
    %c0_3 = arith.constant 0 : index
    %3 = vector.load %arg3[%c0_2, %c0_3] : memref<128x256xbf16, #tpu.memory_space<vmem>>, vector<128x256xbf16>
    %cst = arith.constant dense<0.000000e+00> : vector<256x256xf32>
    %4 = tpu.matmul %2, %3, %cst {dimension_numbers = #tpu.dot_dimension_numbers<[1], [0], [0], [1], [0, 0, 1, 1], [], []>} : vector<256x128xbf16>, vector<128x256xbf16>, vector<256x256xf32> -> vector<256x256xf32>
    %5 = vector.extract_strided_slice %4 {offsets = [0, 0], sizes = [256, 128], strides = [1, 1]} : vector<256x256xf32> to vector<256x128xf32>
    %6 = arith.truncf %5 : vector<256x128xf32> to vector<256x128xbf16>
    %c0_4 = arith.constant 0 : index
    %c0_5 = arith.constant 0 : index
    %c0_6 = arith.constant 0 : index
    %7 = vector.load %arg4[%c0_4, %c0_5, %c0_6] : memref<1x256x128xbf16, #tpu.memory_space<vmem>>, vector<1x256x128xbf16>
    %8 = vector.shape_cast %7 : vector<1x256x128xbf16> to vector<256x128xbf16>
    %9 = vector.shape_cast %6 : vector<256x128xbf16> to vector<1x256x128xbf16>
    tpu.vector_store %arg4[%c0_4, %c0_5, %c0_6], %9 {strides = array<i32>} : memref<1x256x128xbf16, #tpu.memory_space<vmem>>, vector<1x256x128xbf16>,
    %10 = vector.extract_strided_slice %4 {offsets = [0, 128], sizes = [256, 128], strides = [1, 1]} : vector<256x256xf32> to vector<256x128xf32>
    %11 = arith.truncf %10 : vector<256x128xf32> to vector<256x128xbf16>
    %c0_7 = arith.constant 0 : index
    %c0_8 = arith.constant 0 : index
    %c0_9 = arith.constant 0 : index
    %12 = vector.load %arg5[%c0_7, %c0_8, %c0_9] : memref<1x256x128xbf16, #tpu.memory_space<vmem>>, vector<1x256x128xbf16>
    %13 = vector.shape_cast %12 : vector<1x256x128xbf16> to vector<256x128xbf16>
    %14 = vector.shape_cast %11 : vector<256x128xbf16> to vector<1x256x128xbf16>
    tpu.vector_store %arg5[%c0_7, %c0_8, %c0_9], %14 {strides = array<i32>} : memref<1x256x128xbf16, #tpu.memory_space<vmem>>, vector<1x256x128xbf16>,
    %cst_10 = arith.constant dense<0.000000e+00> : vector<256xf32>
    %15 = vector.multi_reduction <add>, %4, %cst_10 [0] : vector<256x256xf32> to vector<256xf32>
    %16 = vector.shape_cast %15 : vector<256xf32> to vector<1x256xf32>
    %17 = arith.mulf %4, %4 : vector<256x256xf32>
    %cst_11 = arith.constant dense<0.000000e+00> : vector<256xf32>
    %18 = vector.multi_reduction <add>, %17, %cst_11 [0] : vector<256x256xf32> to vector<256xf32>
    %19 = vector.shape_cast %18 : vector<256xf32> to vector<1x256xf32>
    %c0_i32 = arith.constant 0 : i32
    %20 = arith.cmpi eq, %arg1, %c0_i32 : i32
    %21 = arith.extui %20 : i1 to i32
    %c0_i32_12 = arith.constant 0 : i32
    %22 = arith.cmpi ne, %21, %c0_i32_12 : i32
    scf.if %22 {
      %c0_15 = arith.constant 0 : index
      %c0_16 = arith.constant 0 : index
      %c0_17 = arith.constant 0 : index
      %c0_18 = arith.constant 0 : index
      %26 = vector.load %arg6[%c0_15, %c0_16, %c0_17, %c0_18] : memref<1x2x1x256xf32, #tpu.memory_space<vmem>>, vector<1x1x1x256xf32>
      %27 = vector.shape_cast %26 : vector<1x1x1x256xf32> to vector<1x256xf32>
      %28 = vector.shape_cast %16 : vector<1x256xf32> to vector<1x1x1x256xf32>
      tpu.vector_store %arg6[%c0_15, %c0_16, %c0_17, %c0_18], %28 {strides = array<i32>} : memref<1x2x1x256xf32, #tpu.memory_space<vmem>>, vector<1x1x1x256xf32>,
      %c0_19 = arith.constant 0 : index
      %c1 = arith.constant 1 : index
      %c0_20 = arith.constant 0 : index
      %c0_21 = arith.constant 0 : index
      %29 = vector.load %arg6[%c0_19, %c1, %c0_20, %c0_21] : memref<1x2x1x256xf32, #tpu.memory_space<vmem>>, vector<1x1x1x256xf32>
      %30 = vector.shape_cast %29 : vector<1x1x1x256xf32> to vector<1x256xf32>
      %31 = vector.shape_cast %19 : vector<1x256xf32> to vector<1x1x1x256xf32>
      tpu.vector_store %arg6[%c0_19, %c1, %c0_20, %c0_21], %31 {strides = array<i32>} : memref<1x2x1x256xf32, #tpu.memory_space<vmem>>, vector<1x1x1x256xf32>,
    } else {
    }
    %c0_i32_13 = arith.constant 0 : i32
    %23 = arith.cmpi ne, %arg1, %c0_i32_13 : i32
    %24 = arith.extui %23 : i1 to i32
    %c0_i32_14 = arith.constant 0 : i32
    %25 = arith.cmpi ne, %24, %c0_i32_14 : i32
    scf.if %25 {
      %c0_15 = arith.constant 0 : index
      %c0_16 = arith.constant 0 : index
      %c0_17 = arith.constant 0 : index
      %c0_18 = arith.constant 0 : index
      %26 = vector.load %arg6[%c0_15, %c0_16, %c0_17, %c0_18] : memref<1x2x1x256xf32, #tpu.memory_space<vmem>>, vector<1x1x1x256xf32>
      %27 = vector.shape_cast %26 : vector<1x1x1x256xf32> to vector<1x256xf32>
      %28 = arith.addf %27, %16 : vector<1x256xf32>
      %c0_19 = arith.constant 0 : index
      %c0_20 = arith.constant 0 : index
      %c0_21 = arith.constant 0 : index
      %c0_22 = arith.constant 0 : index
      %29 = vector.load %arg6[%c0_19, %c0_20, %c0_21, %c0_22] : memref<1x2x1x256xf32, #tpu.memory_space<vmem>>, vector<1x1x1x256xf32>
      %30 = vector.shape_cast %29 : vector<1x1x1x256xf32> to vector<1x256xf32>
      %31 = vector.shape_cast %28 : vector<1x256xf32> to vector<1x1x1x256xf32>
      tpu.vector_store %arg6[%c0_19, %c0_20, %c0_21, %c0_22], %31 {strides = array<i32>} : memref<1x2x1x256xf32, #tpu.memory_space<vmem>>, vector<1x1x1x256xf32>,
      %c0_23 = arith.constant 0 : index
      %c1 = arith.constant 1 : index
      %c0_24 = arith.constant 0 : index
      %c0_25 = arith.constant 0 : index
      %32 = vector.load %arg6[%c0_23, %c1, %c0_24, %c0_25] : memref<1x2x1x256xf32, #tpu.memory_space<vmem>>, vector<1x1x1x256xf32>
      %33 = vector.shape_cast %32 : vector<1x1x1x256xf32> to vector<1x256xf32>
      %34 = arith.addf %33, %19 : vector<1x256xf32>
      %c0_26 = arith.constant 0 : index
      %c1_27 = arith.constant 1 : index
      %c0_28 = arith.constant 0 : index
      %c0_29 = arith.constant 0 : index
      %35 = vector.load %arg6[%c0_26, %c1_27, %c0_28, %c0_29] : memref<1x2x1x256xf32, #tpu.memory_space<vmem>>, vector<1x1x1x256xf32>
      %36 = vector.shape_cast %35 : vector<1x1x1x256xf32> to vector<1x256xf32>
      %37 = vector.shape_cast %34 : vector<1x256xf32> to vector<1x1x1x256xf32>
      tpu.vector_store %arg6[%c0_26, %c1_27, %c0_28, %c0_29], %37 {strides = array<i32>} : memref<1x2x1x256xf32, #tpu.memory_space<vmem>>, vector<1x1x1x256xf32>,
    } else {
    }
    return
  }
  func.func @transform_0(%arg0: i32, %arg1: i32) -> (i32, i32, i32) {
    %c0_i32 = arith.constant 0 : i32
    %c0_i32_0 = arith.constant 0 : i32
    return %arg0, %arg1, %c0_i32 : i32, i32, i32
  }
  func.func @transform_1(%arg0: i32, %arg1: i32) -> (i32, i32) {
    %c0_i32 = arith.constant 0 : i32
    %c0_i32_0 = arith.constant 0 : i32
    %c0_i32_1 = arith.constant 0 : i32
    return %c0_i32, %c0_i32_0 : i32, i32
  }
  func.func @transform_2(%arg0: i32, %arg1: i32) -> (i32, i32, i32) {
    %c0_i32 = arith.constant 0 : i32
    %c0_i32_0 = arith.constant 0 : i32
    return %arg0, %arg1, %c0_i32 : i32, i32, i32
  }
  func.func @transform_3(%arg0: i32, %arg1: i32) -> (i32, i32, i32) {
    %c0_i32 = arith.constant 0 : i32
    %c0_i32_0 = arith.constant 0 : i32
    return %arg0, %arg1, %c0_i32 : i32, i32, i32
  }
  func.func @transform_4(%arg0: i32, %arg1: i32) -> (i32, i32, i32, i32) {
    %c0_i32 = arith.constant 0 : i32
    %c0_i32_0 = arith.constant 0 : i32
    %c0_i32_1 = arith.constant 0 : i32
    %c0_i32_2 = arith.constant 0 : i32
    return %arg0, %c0_i32, %c0_i32_0, %c0_i32_1 : i32, i32, i32, i32
  }
}

module attributes {stable_mosaic.version = 11 : i64} {
  func.func @_dw_s1_kernel(%arg0: i32, %arg1: i32, %arg2: memref<1x256x128xbf16, #tpu.memory_space<vmem>>, %arg3: memref<1x16x128xbf16, #tpu.memory_space<vmem>>, %arg4: memref<1x16x128xbf16, #tpu.memory_space<vmem>>, %arg5: memref<2x1x128xf32, #tpu.memory_space<vmem>>, %arg6: memref<9x1x128xf32, #tpu.memory_space<vmem>>, %arg7: memref<1x256x128xbf16, #tpu.memory_space<vmem>>, %arg8: memref<1x2x1x128xf32, #tpu.memory_space<vmem>>, %arg9: memref<304x128xf32, #tpu.memory_space<vmem>>) attributes {dimension_semantics = [#tpu.dimension_semantics<parallel>, #tpu.dimension_semantics<arbitrary>], iteration_bounds = array<i64: 2, 1>, scalar_prefetch = 0 : i64, scratch_operands = 1 : i64, tpu.core_type = #tpu.core_type<tc>, window_params = [{transform_indices = @transform_0, window_bounds = array<i64: 1, 256, 128>}, {transform_indices = @transform_1, window_bounds = array<i64: 1, 16, 128>}, {transform_indices = @transform_2, window_bounds = array<i64: 1, 16, 128>}, {pipeline_mode = #tpu.pipeline_mode<synchronous>, transform_indices = @transform_3, window_bounds = array<i64: 2, 1, 128>}, {pipeline_mode = #tpu.pipeline_mode<synchronous>, transform_indices = @transform_4, window_bounds = array<i64: 9, 1, 128>}, {transform_indices = @transform_5, window_bounds = array<i64: 1, 256, 128>}, {transform_indices = @transform_6, window_bounds = array<i64: 1, 2, 1, 128>}]} {
    %c0 = arith.constant 0 : index
    %c0_0 = arith.constant 0 : index
    %c0_1 = arith.constant 0 : index
    %0 = vector.load %arg5[%c0, %c0_0, %c0_1] : memref<2x1x128xf32, #tpu.memory_space<vmem>>, vector<1x1x128xf32>
    %1 = vector.shape_cast %0 : vector<1x1x128xf32> to vector<1x128xf32>
    %c1 = arith.constant 1 : index
    %c0_2 = arith.constant 0 : index
    %c0_3 = arith.constant 0 : index
    %2 = vector.load %arg5[%c1, %c0_2, %c0_3] : memref<2x1x128xf32, #tpu.memory_space<vmem>>, vector<1x1x128xf32>
    %3 = vector.shape_cast %2 : vector<1x1x128xf32> to vector<1x128xf32>
    %c0_4 = arith.constant 0 : index
    %c0_5 = arith.constant 0 : index
    %c0_6 = arith.constant 0 : index
    %4 = vector.load %arg2[%c0_4, %c0_5, %c0_6] : memref<1x256x128xbf16, #tpu.memory_space<vmem>>, vector<1x256x128xbf16>
    %5 = vector.shape_cast %4 : vector<1x256x128xbf16> to vector<256x128xbf16>
    %6 = arith.extf %5 : vector<256x128xbf16> to vector<256x128xf32>
    %7 = vector.broadcast %1 : vector<1x128xf32> to vector<256x128xf32>
    %8 = arith.mulf %6, %7 : vector<256x128xf32>
    %9 = vector.broadcast %3 : vector<1x128xf32> to vector<256x128xf32>
    %10 = arith.addf %8, %9 : vector<256x128xf32>
    %cst = arith.constant 0.000000e+00 : f32
    %11 = vector.broadcast %cst : f32 to vector<256x128xf32>
    %12 = arith.maximumf %10, %11 : vector<256x128xf32>
    %c0_7 = arith.constant 0 : index
    %c0_8 = arith.constant 0 : index
    %c0_9 = arith.constant 0 : index
    %13 = vector.load %arg3[%c0_7, %c0_8, %c0_9] : memref<1x16x128xbf16, #tpu.memory_space<vmem>>, vector<1x16x128xbf16>
    %14 = vector.shape_cast %13 : vector<1x16x128xbf16> to vector<16x128xbf16>
    %15 = arith.extf %14 : vector<16x128xbf16> to vector<16x128xf32>
    %16 = vector.broadcast %1 : vector<1x128xf32> to vector<16x128xf32>
    %17 = arith.mulf %15, %16 : vector<16x128xf32>
    %18 = vector.broadcast %3 : vector<1x128xf32> to vector<16x128xf32>
    %19 = arith.addf %17, %18 : vector<16x128xf32>
    %cst_10 = arith.constant 0.000000e+00 : f32
    %20 = vector.broadcast %cst_10 : f32 to vector<16x128xf32>
    %21 = arith.maximumf %19, %20 : vector<16x128xf32>
    %c0_11 = arith.constant 0 : index
    %c0_12 = arith.constant 0 : index
    %c0_13 = arith.constant 0 : index
    %22 = vector.load %arg4[%c0_11, %c0_12, %c0_13] : memref<1x16x128xbf16, #tpu.memory_space<vmem>>, vector<1x16x128xbf16>
    %23 = vector.shape_cast %22 : vector<1x16x128xbf16> to vector<16x128xbf16>
    %24 = arith.extf %23 : vector<16x128xbf16> to vector<16x128xf32>
    %25 = vector.broadcast %1 : vector<1x128xf32> to vector<16x128xf32>
    %26 = arith.mulf %24, %25 : vector<16x128xf32>
    %27 = vector.broadcast %3 : vector<1x128xf32> to vector<16x128xf32>
    %28 = arith.addf %26, %27 : vector<16x128xf32>
    %cst_14 = arith.constant 0.000000e+00 : f32
    %29 = vector.broadcast %cst_14 : f32 to vector<16x128xf32>
    %30 = arith.maximumf %28, %29 : vector<16x128xf32>
    %c0_i32 = arith.constant 0 : i32
    %31 = arith.cmpi sgt, %arg1, %c0_i32 : i32
    %32 = arith.extui %31 : i1 to i32
    %33 = arith.sitofp %32 : i32 to f32
    %34 = vector.broadcast %33 : f32 to vector<16x128xf32>
    %35 = arith.mulf %21, %34 : vector<16x128xf32>
    %c0_i32_15 = arith.constant 0 : i32
    %36 = arith.cmpi slt, %arg1, %c0_i32_15 : i32
    %37 = arith.extui %36 : i1 to i32
    %38 = arith.sitofp %37 : i32 to f32
    %39 = vector.broadcast %38 : f32 to vector<16x128xf32>
    %40 = arith.mulf %30, %39 : vector<16x128xf32>
    %cst_16 = arith.constant 0.000000e+00 : f32
    %41 = vector.broadcast %cst_16 : f32 to vector<8x128xf32>
    %c0_17 = arith.constant 0 : index
    %c0_18 = arith.constant 0 : index
    %42 = vector.load %arg9[%c0_17, %c0_18] : memref<304x128xf32, #tpu.memory_space<vmem>>, vector<8x128xf32>
    tpu.vector_store %arg9[%c0_17, %c0_18], %41 {strides = array<i32>} : memref<304x128xf32, #tpu.memory_space<vmem>>, vector<8x128xf32>,
    %c8 = arith.constant 8 : index
    %c0_19 = arith.constant 0 : index
    %43 = vector.load %arg9[%c8, %c0_19] : memref<304x128xf32, #tpu.memory_space<vmem>>, vector<16x128xf32>
    tpu.vector_store %arg9[%c8, %c0_19], %35 {strides = array<i32>} : memref<304x128xf32, #tpu.memory_space<vmem>>, vector<16x128xf32>,
    %c24 = arith.constant 24 : index
    %c0_20 = arith.constant 0 : index
    %44 = vector.load %arg9[%c24, %c0_20] : memref<304x128xf32, #tpu.memory_space<vmem>>, vector<256x128xf32>
    tpu.vector_store %arg9[%c24, %c0_20], %12 {strides = array<i32>} : memref<304x128xf32, #tpu.memory_space<vmem>>, vector<256x128xf32>,
    %c280 = arith.constant 280 : index
    %c0_21 = arith.constant 0 : index
    %45 = vector.load %arg9[%c280, %c0_21] : memref<304x128xf32, #tpu.memory_space<vmem>>, vector<16x128xf32>
    tpu.vector_store %arg9[%c280, %c0_21], %40 {strides = array<i32>} : memref<304x128xf32, #tpu.memory_space<vmem>>, vector<16x128xf32>,
    %c296 = arith.constant 296 : index
    %c0_22 = arith.constant 0 : index
    %46 = vector.load %arg9[%c296, %c0_22] : memref<304x128xf32, #tpu.memory_space<vmem>>, vector<8x128xf32>
    tpu.vector_store %arg9[%c296, %c0_22], %41 {strides = array<i32>} : memref<304x128xf32, #tpu.memory_space<vmem>>, vector<8x128xf32>,
    %47 = tpu.iota {dimensions = array<i32: 0>} : vector<256x1xi32>
    %c16_i32 = arith.constant 16 : i32
    %c0_i32_23 = arith.constant 0 : i32
    %48 = arith.cmpi eq, %c16_i32, %c0_i32_23 : i32
    %c1_i32 = arith.constant 1 : i32
    %49 = arith.select %48, %c1_i32, %c16_i32 : i32
    %50 = vector.broadcast %49 : i32 to vector<256x1xi32>
    %51 = arith.remsi %47, %50 : vector<256x1xi32>
    %c0_i32_24 = arith.constant 0 : i32
    %52 = vector.broadcast %c0_i32_24 : i32 to vector<256x1xi32>
    %53 = arith.cmpi ne, %51, %52 : vector<256x1xi32>
    %c0_i32_25 = arith.constant 0 : i32
    %54 = vector.broadcast %c0_i32_25 : i32 to vector<256x1xi32>
    %55 = arith.cmpi slt, %51, %54 : vector<256x1xi32>
    %c0_i32_26 = arith.constant 0 : i32
    %56 = arith.cmpi slt, %49, %c0_i32_26 : i32
    %57 = vector.broadcast %56 : i1 to vector<256x1xi1>
    %58 = vector.broadcast %57 : vector<256x1xi1> to vector<256x1xi1>
    %59 = arith.xori %55, %58 : vector<256x1xi1>
    %60 = arith.andi %59, %53 : vector<256x1xi1>
    %61 = vector.broadcast %49 : i32 to vector<256x1xi32>
    %62 = arith.addi %51, %61 : vector<256x1xi32>
    %63 = arith.select %60, %62, %51 : vector<256x1xi1>, vector<256x1xi32>
    %c0_i32_27 = arith.constant 0 : i32
    %64 = vector.broadcast %c0_i32_27 : i32 to vector<256x1xi32>
    %65 = arith.cmpi sgt, %63, %64 : vector<256x1xi32>
    %66 = arith.extui %65 : vector<256x1xi1> to vector<256x1xi32>
    %67 = arith.sitofp %66 : vector<256x1xi32> to vector<256x1xf32>
    %c15_i32 = arith.constant 15 : i32
    %68 = vector.broadcast %c15_i32 : i32 to vector<256x1xi32>
    %69 = arith.cmpi slt, %63, %68 : vector<256x1xi32>
    %70 = arith.extui %69 : vector<256x1xi1> to vector<256x1xi32>
    %71 = arith.sitofp %70 : vector<256x1xi32> to vector<256x1xf32>
    %c0_28 = arith.constant 0 : index
    %c0_29 = arith.constant 0 : index
    %c0_30 = arith.constant 0 : index
    %72 = vector.load %arg6[%c0_28, %c0_29, %c0_30] : memref<9x1x128xf32, #tpu.memory_space<vmem>>, vector<9x1x128xf32>
    %c8_31 = arith.constant 8 : index
    %c0_32 = arith.constant 0 : index
    %73 = vector.load %arg9[%c8_31, %c0_32] : memref<304x128xf32, #tpu.memory_space<vmem>>, vector<256x128xf32>
    %74 = vector.extract_strided_slice %72 {offsets = [1, 0, 0], sizes = [1, 1, 128], strides = [1, 1, 1]} : vector<9x1x128xf32> to vector<1x1x128xf32>
    %75 = vector.shape_cast %74 : vector<1x1x128xf32> to vector<1x128xf32>
    %76 = vector.broadcast %75 : vector<1x128xf32> to vector<256x128xf32>
    %77 = arith.mulf %73, %76 : vector<256x128xf32>
    %c24_33 = arith.constant 24 : index
    %c0_34 = arith.constant 0 : index
    %78 = vector.load %arg9[%c24_33, %c0_34] : memref<304x128xf32, #tpu.memory_space<vmem>>, vector<256x128xf32>
    %79 = vector.extract_strided_slice %72 {offsets = [4, 0, 0], sizes = [1, 1, 128], strides = [1, 1, 1]} : vector<9x1x128xf32> to vector<1x1x128xf32>
    %80 = vector.shape_cast %79 : vector<1x1x128xf32> to vector<1x128xf32>
    %81 = vector.broadcast %80 : vector<1x128xf32> to vector<256x128xf32>
    %82 = arith.mulf %78, %81 : vector<256x128xf32>
    %83 = arith.addf %77, %82 : vector<256x128xf32>
    %c40 = arith.constant 40 : index
    %c0_35 = arith.constant 0 : index
    %84 = vector.load %arg9[%c40, %c0_35] : memref<304x128xf32, #tpu.memory_space<vmem>>, vector<256x128xf32>
    %85 = vector.extract_strided_slice %72 {offsets = [7, 0, 0], sizes = [1, 1, 128], strides = [1, 1, 1]} : vector<9x1x128xf32> to vector<1x1x128xf32>
    %86 = vector.shape_cast %85 : vector<1x1x128xf32> to vector<1x128xf32>
    %87 = vector.broadcast %86 : vector<1x128xf32> to vector<256x128xf32>
    %88 = arith.mulf %84, %87 : vector<256x128xf32>
    %89 = arith.addf %83, %88 : vector<256x128xf32>
    %c7 = arith.constant 7 : index
    %c0_36 = arith.constant 0 : index
    %90 = vector.load %arg9[%c7, %c0_36] : memref<304x128xf32, #tpu.memory_space<vmem>>, vector<256x128xf32>
    %91 = vector.extract_strided_slice %72 {offsets = [0, 0, 0], sizes = [1, 1, 128], strides = [1, 1, 1]} : vector<9x1x128xf32> to vector<1x1x128xf32>
    %92 = vector.shape_cast %91 : vector<1x1x128xf32> to vector<1x128xf32>
    %93 = vector.broadcast %92 : vector<1x128xf32> to vector<256x128xf32>
    %94 = arith.mulf %90, %93 : vector<256x128xf32>
    %c23 = arith.constant 23 : index
    %c0_37 = arith.constant 0 : index
    %95 = vector.load %arg9[%c23, %c0_37] : memref<304x128xf32, #tpu.memory_space<vmem>>, vector<256x128xf32>
    %96 = vector.extract_strided_slice %72 {offsets = [3, 0, 0], sizes = [1, 1, 128], strides = [1, 1, 1]} : vector<9x1x128xf32> to vector<1x1x128xf32>
    %97 = vector.shape_cast %96 : vector<1x1x128xf32> to vector<1x128xf32>
    %98 = vector.broadcast %97 : vector<1x128xf32> to vector<256x128xf32>
    %99 = arith.mulf %95, %98 : vector<256x128xf32>
    %100 = arith.addf %94, %99 : vector<256x128xf32>
    %c39 = arith.constant 39 : index
    %c0_38 = arith.constant 0 : index
    %101 = vector.load %arg9[%c39, %c0_38] : memref<304x128xf32, #tpu.memory_space<vmem>>, vector<256x128xf32>
    %102 = vector.extract_strided_slice %72 {offsets = [6, 0, 0], sizes = [1, 1, 128], strides = [1, 1, 1]} : vector<9x1x128xf32> to vector<1x1x128xf32>
    %103 = vector.shape_cast %102 : vector<1x1x128xf32> to vector<1x128xf32>
    %104 = vector.broadcast %103 : vector<1x128xf32> to vector<256x128xf32>
    %105 = arith.mulf %101, %104 : vector<256x128xf32>
    %106 = arith.addf %100, %105 : vector<256x128xf32>
    %c9 = arith.constant 9 : index
    %c0_39 = arith.constant 0 : index
    %107 = vector.load %arg9[%c9, %c0_39] : memref<304x128xf32, #tpu.memory_space<vmem>>, vector<256x128xf32>
    %108 = vector.extract_strided_slice %72 {offsets = [2, 0, 0], sizes = [1, 1, 128], strides = [1, 1, 1]} : vector<9x1x128xf32> to vector<1x1x128xf32>
    %109 = vector.shape_cast %108 : vector<1x1x128xf32> to vector<1x128xf32>
    %110 = vector.broadcast %109 : vector<1x128xf32> to vector<256x128xf32>
    %111 = arith.mulf %107, %110 : vector<256x128xf32>
    %c25 = arith.constant 25 : index
    %c0_40 = arith.constant 0 : index
    %112 = vector.load %arg9[%c25, %c0_40] : memref<304x128xf32, #tpu.memory_space<vmem>>, vector<256x128xf32>
    %113 = vector.extract_strided_slice %72 {offsets = [5, 0, 0], sizes = [1, 1, 128], strides = [1, 1, 1]} : vector<9x1x128xf32> to vector<1x1x128xf32>
    %114 = vector.shape_cast %113 : vector<1x1x128xf32> to vector<1x128xf32>
    %115 = vector.broadcast %114 : vector<1x128xf32> to vector<256x128xf32>
    %116 = arith.mulf %112, %115 : vector<256x128xf32>
    %117 = arith.addf %111, %116 : vector<256x128xf32>
    %c41 = arith.constant 41 : index
    %c0_41 = arith.constant 0 : index
    %118 = vector.load %arg9[%c41, %c0_41] : memref<304x128xf32, #tpu.memory_space<vmem>>, vector<256x128xf32>
    %119 = vector.extract_strided_slice %72 {offsets = [8, 0, 0], sizes = [1, 1, 128], strides = [1, 1, 1]} : vector<9x1x128xf32> to vector<1x1x128xf32>
    %120 = vector.shape_cast %119 : vector<1x1x128xf32> to vector<1x128xf32>
    %121 = vector.broadcast %120 : vector<1x128xf32> to vector<256x128xf32>
    %122 = arith.mulf %118, %121 : vector<256x128xf32>
    %123 = arith.addf %117, %122 : vector<256x128xf32>
    %124 = vector.broadcast %67 : vector<256x1xf32> to vector<256x128xf32>
    %125 = arith.mulf %106, %124 : vector<256x128xf32>
    %126 = arith.addf %89, %125 : vector<256x128xf32>
    %127 = vector.broadcast %71 : vector<256x1xf32> to vector<256x128xf32>
    %128 = arith.mulf %123, %127 : vector<256x128xf32>
    %129 = arith.addf %126, %128 : vector<256x128xf32>
    %130 = arith.truncf %129 : vector<256x128xf32> to vector<256x128xbf16>
    %c0_42 = arith.constant 0 : index
    %c0_43 = arith.constant 0 : index
    %c0_44 = arith.constant 0 : index
    %131 = vector.load %arg7[%c0_42, %c0_43, %c0_44] : memref<1x256x128xbf16, #tpu.memory_space<vmem>>, vector<1x256x128xbf16>
    %132 = vector.shape_cast %131 : vector<1x256x128xbf16> to vector<256x128xbf16>
    %133 = vector.shape_cast %130 : vector<256x128xbf16> to vector<1x256x128xbf16>
    tpu.vector_store %arg7[%c0_42, %c0_43, %c0_44], %133 {strides = array<i32>} : memref<1x256x128xbf16, #tpu.memory_space<vmem>>, vector<1x256x128xbf16>,
    %cst_45 = arith.constant dense<0.000000e+00> : vector<128xf32>
    %134 = vector.multi_reduction <add>, %129, %cst_45 [0] : vector<256x128xf32> to vector<128xf32>
    %135 = vector.shape_cast %134 : vector<128xf32> to vector<1x128xf32>
    %136 = arith.mulf %129, %129 : vector<256x128xf32>
    %cst_46 = arith.constant dense<0.000000e+00> : vector<128xf32>
    %137 = vector.multi_reduction <add>, %136, %cst_46 [0] : vector<256x128xf32> to vector<128xf32>
    %138 = vector.shape_cast %137 : vector<128xf32> to vector<1x128xf32>
    %c0_i32_47 = arith.constant 0 : i32
    %139 = arith.cmpi eq, %arg1, %c0_i32_47 : i32
    %140 = arith.extui %139 : i1 to i32
    %c0_i32_48 = arith.constant 0 : i32
    %141 = arith.cmpi ne, %140, %c0_i32_48 : i32
    scf.if %141 {
      %c0_51 = arith.constant 0 : index
      %c0_52 = arith.constant 0 : index
      %c0_53 = arith.constant 0 : index
      %c0_54 = arith.constant 0 : index
      %145 = vector.load %arg8[%c0_51, %c0_52, %c0_53, %c0_54] : memref<1x2x1x128xf32, #tpu.memory_space<vmem>>, vector<1x1x1x128xf32>
      %146 = vector.shape_cast %145 : vector<1x1x1x128xf32> to vector<1x128xf32>
      %147 = vector.shape_cast %135 : vector<1x128xf32> to vector<1x1x1x128xf32>
      tpu.vector_store %arg8[%c0_51, %c0_52, %c0_53, %c0_54], %147 {strides = array<i32>} : memref<1x2x1x128xf32, #tpu.memory_space<vmem>>, vector<1x1x1x128xf32>,
      %c0_55 = arith.constant 0 : index
      %c1_56 = arith.constant 1 : index
      %c0_57 = arith.constant 0 : index
      %c0_58 = arith.constant 0 : index
      %148 = vector.load %arg8[%c0_55, %c1_56, %c0_57, %c0_58] : memref<1x2x1x128xf32, #tpu.memory_space<vmem>>, vector<1x1x1x128xf32>
      %149 = vector.shape_cast %148 : vector<1x1x1x128xf32> to vector<1x128xf32>
      %150 = vector.shape_cast %138 : vector<1x128xf32> to vector<1x1x1x128xf32>
      tpu.vector_store %arg8[%c0_55, %c1_56, %c0_57, %c0_58], %150 {strides = array<i32>} : memref<1x2x1x128xf32, #tpu.memory_space<vmem>>, vector<1x1x1x128xf32>,
    } else {
    }
    %c0_i32_49 = arith.constant 0 : i32
    %142 = arith.cmpi ne, %arg1, %c0_i32_49 : i32
    %143 = arith.extui %142 : i1 to i32
    %c0_i32_50 = arith.constant 0 : i32
    %144 = arith.cmpi ne, %143, %c0_i32_50 : i32
    scf.if %144 {
      %c0_51 = arith.constant 0 : index
      %c0_52 = arith.constant 0 : index
      %c0_53 = arith.constant 0 : index
      %c0_54 = arith.constant 0 : index
      %145 = vector.load %arg8[%c0_51, %c0_52, %c0_53, %c0_54] : memref<1x2x1x128xf32, #tpu.memory_space<vmem>>, vector<1x1x1x128xf32>
      %146 = vector.shape_cast %145 : vector<1x1x1x128xf32> to vector<1x128xf32>
      %147 = arith.addf %146, %135 : vector<1x128xf32>
      %c0_55 = arith.constant 0 : index
      %c0_56 = arith.constant 0 : index
      %c0_57 = arith.constant 0 : index
      %c0_58 = arith.constant 0 : index
      %148 = vector.load %arg8[%c0_55, %c0_56, %c0_57, %c0_58] : memref<1x2x1x128xf32, #tpu.memory_space<vmem>>, vector<1x1x1x128xf32>
      %149 = vector.shape_cast %148 : vector<1x1x1x128xf32> to vector<1x128xf32>
      %150 = vector.shape_cast %147 : vector<1x128xf32> to vector<1x1x1x128xf32>
      tpu.vector_store %arg8[%c0_55, %c0_56, %c0_57, %c0_58], %150 {strides = array<i32>} : memref<1x2x1x128xf32, #tpu.memory_space<vmem>>, vector<1x1x1x128xf32>,
      %c0_59 = arith.constant 0 : index
      %c1_60 = arith.constant 1 : index
      %c0_61 = arith.constant 0 : index
      %c0_62 = arith.constant 0 : index
      %151 = vector.load %arg8[%c0_59, %c1_60, %c0_61, %c0_62] : memref<1x2x1x128xf32, #tpu.memory_space<vmem>>, vector<1x1x1x128xf32>
      %152 = vector.shape_cast %151 : vector<1x1x1x128xf32> to vector<1x128xf32>
      %153 = arith.addf %152, %138 : vector<1x128xf32>
      %c0_63 = arith.constant 0 : index
      %c1_64 = arith.constant 1 : index
      %c0_65 = arith.constant 0 : index
      %c0_66 = arith.constant 0 : index
      %154 = vector.load %arg8[%c0_63, %c1_64, %c0_65, %c0_66] : memref<1x2x1x128xf32, #tpu.memory_space<vmem>>, vector<1x1x1x128xf32>
      %155 = vector.shape_cast %154 : vector<1x1x1x128xf32> to vector<1x128xf32>
      %156 = vector.shape_cast %153 : vector<1x128xf32> to vector<1x1x1x128xf32>
      tpu.vector_store %arg8[%c0_63, %c1_64, %c0_65, %c0_66], %156 {strides = array<i32>} : memref<1x2x1x128xf32, #tpu.memory_space<vmem>>, vector<1x1x1x128xf32>,
    } else {
    }
    return
  }
  func.func @transform_0(%arg0: i32, %arg1: i32) -> (i32, i32, i32) {
    %c0_i32 = arith.constant 0 : i32
    %c0_i32_0 = arith.constant 0 : i32
    return %arg0, %arg1, %c0_i32 : i32, i32, i32
  }
  func.func @transform_1(%arg0: i32, %arg1: i32) -> (i32, i32, i32) {
    %c16_i32 = arith.constant 16 : i32
    %0 = arith.muli %arg0, %c16_i32 : i32
    %c16_i32_0 = arith.constant 16 : i32
    %1 = arith.muli %arg1, %c16_i32_0 : i32
    %c1_i32 = arith.constant 1 : i32
    %2 = arith.subi %1, %c1_i32 : i32
    %c0_i32 = arith.constant 0 : i32
    %3 = arith.maxsi %2, %c0_i32 : i32
    %4 = arith.addi %0, %3 : i32
    %c0_i32_1 = arith.constant 0 : i32
    %c0_i32_2 = arith.constant 0 : i32
    %c0_i32_3 = arith.constant 0 : i32
    return %4, %c0_i32_1, %c0_i32_2 : i32, i32, i32
  }
  func.func @transform_2(%arg0: i32, %arg1: i32) -> (i32, i32, i32) {
    %c16_i32 = arith.constant 16 : i32
    %0 = arith.muli %arg0, %c16_i32 : i32
    %c16_i32_0 = arith.constant 16 : i32
    %1 = arith.muli %arg1, %c16_i32_0 : i32
    %c16_i32_1 = arith.constant 16 : i32
    %2 = arith.addi %1, %c16_i32_1 : i32
    %c15_i32 = arith.constant 15 : i32
    %3 = arith.minsi %2, %c15_i32 : i32
    %4 = arith.addi %0, %3 : i32
    %c0_i32 = arith.constant 0 : i32
    %c0_i32_2 = arith.constant 0 : i32
    %c0_i32_3 = arith.constant 0 : i32
    return %4, %c0_i32, %c0_i32_2 : i32, i32, i32
  }
  func.func @transform_3(%arg0: i32, %arg1: i32) -> (i32, i32, i32) {
    %c0_i32 = arith.constant 0 : i32
    %c0_i32_0 = arith.constant 0 : i32
    %c0_i32_1 = arith.constant 0 : i32
    %c0_i32_2 = arith.constant 0 : i32
    return %c0_i32, %c0_i32_0, %c0_i32_1 : i32, i32, i32
  }
  func.func @transform_4(%arg0: i32, %arg1: i32) -> (i32, i32, i32) {
    %c0_i32 = arith.constant 0 : i32
    %c0_i32_0 = arith.constant 0 : i32
    %c0_i32_1 = arith.constant 0 : i32
    %c0_i32_2 = arith.constant 0 : i32
    return %c0_i32, %c0_i32_0, %c0_i32_1 : i32, i32, i32
  }
  func.func @transform_5(%arg0: i32, %arg1: i32) -> (i32, i32, i32) {
    %c0_i32 = arith.constant 0 : i32
    %c0_i32_0 = arith.constant 0 : i32
    return %arg0, %arg1, %c0_i32 : i32, i32, i32
  }
  func.func @transform_6(%arg0: i32, %arg1: i32) -> (i32, i32, i32, i32) {
    %c0_i32 = arith.constant 0 : i32
    %c0_i32_0 = arith.constant 0 : i32
    %c0_i32_1 = arith.constant 0 : i32
    %c0_i32_2 = arith.constant 0 : i32
    return %arg0, %c0_i32, %c0_i32_0, %c0_i32_1 : i32, i32, i32, i32
  }
}

module attributes {stable_mosaic.version = 11 : i64} {
  func.func @_pointwise_kernel(%arg0: i32, %arg1: i32, %arg2: memref<1x256x128xbf16, #tpu.memory_space<vmem>>, %arg3: memref<2x1x128xf32, #tpu.memory_space<vmem>>, %arg4: memref<128x128xbf16, #tpu.memory_space<vmem>>, %arg5: memref<1x256x128xbf16, #tpu.memory_space<vmem>>, %arg6: memref<1x2x1x128xf32, #tpu.memory_space<vmem>>) attributes {dimension_semantics = [#tpu.dimension_semantics<parallel>, #tpu.dimension_semantics<arbitrary>], iteration_bounds = array<i64: 2, 1>, scalar_prefetch = 0 : i64, scratch_operands = 0 : i64, tpu.core_type = #tpu.core_type<tc>, window_params = [{transform_indices = @transform_0, window_bounds = array<i64: 1, 256, 128>}, {pipeline_mode = #tpu.pipeline_mode<synchronous>, transform_indices = @transform_1, window_bounds = array<i64: 2, 1, 128>}, {pipeline_mode = #tpu.pipeline_mode<synchronous>, transform_indices = @transform_2, window_bounds = array<i64: 128, 128>}, {transform_indices = @transform_3, window_bounds = array<i64: 1, 256, 128>}, {transform_indices = @transform_4, window_bounds = array<i64: 1, 2, 1, 128>}]} {
    %c0 = arith.constant 0 : index
    %c0_0 = arith.constant 0 : index
    %c0_1 = arith.constant 0 : index
    %0 = vector.load %arg2[%c0, %c0_0, %c0_1] : memref<1x256x128xbf16, #tpu.memory_space<vmem>>, vector<1x256x128xbf16>
    %1 = vector.shape_cast %0 : vector<1x256x128xbf16> to vector<256x128xbf16>
    %2 = arith.extf %1 : vector<256x128xbf16> to vector<256x128xf32>
    %c0_2 = arith.constant 0 : index
    %c0_3 = arith.constant 0 : index
    %c0_4 = arith.constant 0 : index
    %3 = vector.load %arg3[%c0_2, %c0_3, %c0_4] : memref<2x1x128xf32, #tpu.memory_space<vmem>>, vector<1x1x128xf32>
    %4 = vector.shape_cast %3 : vector<1x1x128xf32> to vector<1x128xf32>
    %5 = vector.broadcast %4 : vector<1x128xf32> to vector<256x128xf32>
    %6 = arith.mulf %2, %5 : vector<256x128xf32>
    %c1 = arith.constant 1 : index
    %c0_5 = arith.constant 0 : index
    %c0_6 = arith.constant 0 : index
    %7 = vector.load %arg3[%c1, %c0_5, %c0_6] : memref<2x1x128xf32, #tpu.memory_space<vmem>>, vector<1x1x128xf32>
    %8 = vector.shape_cast %7 : vector<1x1x128xf32> to vector<1x128xf32>
    %9 = vector.broadcast %8 : vector<1x128xf32> to vector<256x128xf32>
    %10 = arith.addf %6, %9 : vector<256x128xf32>
    %cst = arith.constant 0.000000e+00 : f32
    %11 = vector.broadcast %cst : f32 to vector<256x128xf32>
    %12 = arith.maximumf %10, %11 : vector<256x128xf32>
    %13 = arith.truncf %12 : vector<256x128xf32> to vector<256x128xbf16>
    %c0_7 = arith.constant 0 : index
    %c0_8 = arith.constant 0 : index
    %14 = vector.load %arg4[%c0_7, %c0_8] : memref<128x128xbf16, #tpu.memory_space<vmem>>, vector<128x128xbf16>
    %cst_9 = arith.constant dense<0.000000e+00> : vector<256x128xf32>
    %15 = tpu.matmul %13, %14, %cst_9 {dimension_numbers = #tpu.dot_dimension_numbers<[1], [0], [0], [1], [0, 0, 1, 1], [], []>} : vector<256x128xbf16>, vector<128x128xbf16>, vector<256x128xf32> -> vector<256x128xf32>
    %16 = arith.truncf %15 : vector<256x128xf32> to vector<256x128xbf16>
    %c0_10 = arith.constant 0 : index
    %c0_11 = arith.constant 0 : index
    %c0_12 = arith.constant 0 : index
    %17 = vector.load %arg5[%c0_10, %c0_11, %c0_12] : memref<1x256x128xbf16, #tpu.memory_space<vmem>>, vector<1x256x128xbf16>
    %18 = vector.shape_cast %17 : vector<1x256x128xbf16> to vector<256x128xbf16>
    %19 = vector.shape_cast %16 : vector<256x128xbf16> to vector<1x256x128xbf16>
    tpu.vector_store %arg5[%c0_10, %c0_11, %c0_12], %19 {strides = array<i32>} : memref<1x256x128xbf16, #tpu.memory_space<vmem>>, vector<1x256x128xbf16>,
    %cst_13 = arith.constant dense<0.000000e+00> : vector<128xf32>
    %20 = vector.multi_reduction <add>, %15, %cst_13 [0] : vector<256x128xf32> to vector<128xf32>
    %21 = vector.shape_cast %20 : vector<128xf32> to vector<1x128xf32>
    %22 = arith.mulf %15, %15 : vector<256x128xf32>
    %cst_14 = arith.constant dense<0.000000e+00> : vector<128xf32>
    %23 = vector.multi_reduction <add>, %22, %cst_14 [0] : vector<256x128xf32> to vector<128xf32>
    %24 = vector.shape_cast %23 : vector<128xf32> to vector<1x128xf32>
    %c0_i32 = arith.constant 0 : i32
    %25 = arith.cmpi eq, %arg1, %c0_i32 : i32
    %26 = arith.extui %25 : i1 to i32
    %c0_i32_15 = arith.constant 0 : i32
    %27 = arith.cmpi ne, %26, %c0_i32_15 : i32
    scf.if %27 {
      %c0_18 = arith.constant 0 : index
      %c0_19 = arith.constant 0 : index
      %c0_20 = arith.constant 0 : index
      %c0_21 = arith.constant 0 : index
      %31 = vector.load %arg6[%c0_18, %c0_19, %c0_20, %c0_21] : memref<1x2x1x128xf32, #tpu.memory_space<vmem>>, vector<1x1x1x128xf32>
      %32 = vector.shape_cast %31 : vector<1x1x1x128xf32> to vector<1x128xf32>
      %33 = vector.shape_cast %21 : vector<1x128xf32> to vector<1x1x1x128xf32>
      tpu.vector_store %arg6[%c0_18, %c0_19, %c0_20, %c0_21], %33 {strides = array<i32>} : memref<1x2x1x128xf32, #tpu.memory_space<vmem>>, vector<1x1x1x128xf32>,
      %c0_22 = arith.constant 0 : index
      %c1_23 = arith.constant 1 : index
      %c0_24 = arith.constant 0 : index
      %c0_25 = arith.constant 0 : index
      %34 = vector.load %arg6[%c0_22, %c1_23, %c0_24, %c0_25] : memref<1x2x1x128xf32, #tpu.memory_space<vmem>>, vector<1x1x1x128xf32>
      %35 = vector.shape_cast %34 : vector<1x1x1x128xf32> to vector<1x128xf32>
      %36 = vector.shape_cast %24 : vector<1x128xf32> to vector<1x1x1x128xf32>
      tpu.vector_store %arg6[%c0_22, %c1_23, %c0_24, %c0_25], %36 {strides = array<i32>} : memref<1x2x1x128xf32, #tpu.memory_space<vmem>>, vector<1x1x1x128xf32>,
    } else {
    }
    %c0_i32_16 = arith.constant 0 : i32
    %28 = arith.cmpi ne, %arg1, %c0_i32_16 : i32
    %29 = arith.extui %28 : i1 to i32
    %c0_i32_17 = arith.constant 0 : i32
    %30 = arith.cmpi ne, %29, %c0_i32_17 : i32
    scf.if %30 {
      %c0_18 = arith.constant 0 : index
      %c0_19 = arith.constant 0 : index
      %c0_20 = arith.constant 0 : index
      %c0_21 = arith.constant 0 : index
      %31 = vector.load %arg6[%c0_18, %c0_19, %c0_20, %c0_21] : memref<1x2x1x128xf32, #tpu.memory_space<vmem>>, vector<1x1x1x128xf32>
      %32 = vector.shape_cast %31 : vector<1x1x1x128xf32> to vector<1x128xf32>
      %33 = arith.addf %32, %21 : vector<1x128xf32>
      %c0_22 = arith.constant 0 : index
      %c0_23 = arith.constant 0 : index
      %c0_24 = arith.constant 0 : index
      %c0_25 = arith.constant 0 : index
      %34 = vector.load %arg6[%c0_22, %c0_23, %c0_24, %c0_25] : memref<1x2x1x128xf32, #tpu.memory_space<vmem>>, vector<1x1x1x128xf32>
      %35 = vector.shape_cast %34 : vector<1x1x1x128xf32> to vector<1x128xf32>
      %36 = vector.shape_cast %33 : vector<1x128xf32> to vector<1x1x1x128xf32>
      tpu.vector_store %arg6[%c0_22, %c0_23, %c0_24, %c0_25], %36 {strides = array<i32>} : memref<1x2x1x128xf32, #tpu.memory_space<vmem>>, vector<1x1x1x128xf32>,
      %c0_26 = arith.constant 0 : index
      %c1_27 = arith.constant 1 : index
      %c0_28 = arith.constant 0 : index
      %c0_29 = arith.constant 0 : index
      %37 = vector.load %arg6[%c0_26, %c1_27, %c0_28, %c0_29] : memref<1x2x1x128xf32, #tpu.memory_space<vmem>>, vector<1x1x1x128xf32>
      %38 = vector.shape_cast %37 : vector<1x1x1x128xf32> to vector<1x128xf32>
      %39 = arith.addf %38, %24 : vector<1x128xf32>
      %c0_30 = arith.constant 0 : index
      %c1_31 = arith.constant 1 : index
      %c0_32 = arith.constant 0 : index
      %c0_33 = arith.constant 0 : index
      %40 = vector.load %arg6[%c0_30, %c1_31, %c0_32, %c0_33] : memref<1x2x1x128xf32, #tpu.memory_space<vmem>>, vector<1x1x1x128xf32>
      %41 = vector.shape_cast %40 : vector<1x1x1x128xf32> to vector<1x128xf32>
      %42 = vector.shape_cast %39 : vector<1x128xf32> to vector<1x1x1x128xf32>
      tpu.vector_store %arg6[%c0_30, %c1_31, %c0_32, %c0_33], %42 {strides = array<i32>} : memref<1x2x1x128xf32, #tpu.memory_space<vmem>>, vector<1x1x1x128xf32>,
    } else {
    }
    return
  }
  func.func @transform_0(%arg0: i32, %arg1: i32) -> (i32, i32, i32) {
    %c0_i32 = arith.constant 0 : i32
    %c0_i32_0 = arith.constant 0 : i32
    return %arg0, %arg1, %c0_i32 : i32, i32, i32
  }
  func.func @transform_1(%arg0: i32, %arg1: i32) -> (i32, i32, i32) {
    %c0_i32 = arith.constant 0 : i32
    %c0_i32_0 = arith.constant 0 : i32
    %c0_i32_1 = arith.constant 0 : i32
    %c0_i32_2 = arith.constant 0 : i32
    return %c0_i32, %c0_i32_0, %c0_i32_1 : i32, i32, i32
  }
  func.func @transform_2(%arg0: i32, %arg1: i32) -> (i32, i32) {
    %c0_i32 = arith.constant 0 : i32
    %c0_i32_0 = arith.constant 0 : i32
    %c0_i32_1 = arith.constant 0 : i32
    return %c0_i32, %c0_i32_0 : i32, i32
  }
  func.func @transform_3(%arg0: i32, %arg1: i32) -> (i32, i32, i32) {
    %c0_i32 = arith.constant 0 : i32
    %c0_i32_0 = arith.constant 0 : i32
    return %arg0, %arg1, %c0_i32 : i32, i32, i32
  }
  func.func @transform_4(%arg0: i32, %arg1: i32) -> (i32, i32, i32, i32) {
    %c0_i32 = arith.constant 0 : i32
    %c0_i32_0 = arith.constant 0 : i32
    %c0_i32_1 = arith.constant 0 : i32
    %c0_i32_2 = arith.constant 0 : i32
    return %arg0, %c0_i32, %c0_i32_0, %c0_i32_1 : i32, i32, i32, i32
  }
}

module attributes {stable_mosaic.version = 11 : i64} {
  func.func @_final_shortcut_kernel(%arg0: i32, %arg1: i32, %arg2: memref<1x256x128xbf16, #tpu.memory_space<vmem>>, %arg3: memref<2x1x128xf32, #tpu.memory_space<vmem>>, %arg4: memref<1x256x128xbf16, #tpu.memory_space<vmem>>, %arg5: memref<2x1x128xf32, #tpu.memory_space<vmem>>, %arg6: memref<1x256x128xf32, #tpu.memory_space<vmem>>) attributes {dimension_semantics = [#tpu.dimension_semantics<parallel>, #tpu.dimension_semantics<parallel>], iteration_bounds = array<i64: 2, 1>, scalar_prefetch = 0 : i64, scratch_operands = 0 : i64, tpu.core_type = #tpu.core_type<tc>, window_params = [{transform_indices = @transform_0, window_bounds = array<i64: 1, 256, 128>}, {pipeline_mode = #tpu.pipeline_mode<synchronous>, transform_indices = @transform_1, window_bounds = array<i64: 2, 1, 128>}, {transform_indices = @transform_2, window_bounds = array<i64: 1, 256, 128>}, {pipeline_mode = #tpu.pipeline_mode<synchronous>, transform_indices = @transform_3, window_bounds = array<i64: 2, 1, 128>}, {transform_indices = @transform_4, window_bounds = array<i64: 1, 256, 128>}]} {
    %c0 = arith.constant 0 : index
    %c0_0 = arith.constant 0 : index
    %c0_1 = arith.constant 0 : index
    %0 = vector.load %arg2[%c0, %c0_0, %c0_1] : memref<1x256x128xbf16, #tpu.memory_space<vmem>>, vector<1x256x128xbf16>
    %1 = vector.shape_cast %0 : vector<1x256x128xbf16> to vector<256x128xbf16>
    %2 = arith.extf %1 : vector<256x128xbf16> to vector<256x128xf32>
    %c0_2 = arith.constant 0 : index
    %c0_3 = arith.constant 0 : index
    %c0_4 = arith.constant 0 : index
    %3 = vector.load %arg3[%c0_2, %c0_3, %c0_4] : memref<2x1x128xf32, #tpu.memory_space<vmem>>, vector<1x1x128xf32>
    %4 = vector.shape_cast %3 : vector<1x1x128xf32> to vector<1x128xf32>
    %5 = vector.broadcast %4 : vector<1x128xf32> to vector<256x128xf32>
    %6 = arith.mulf %2, %5 : vector<256x128xf32>
    %c1 = arith.constant 1 : index
    %c0_5 = arith.constant 0 : index
    %c0_6 = arith.constant 0 : index
    %7 = vector.load %arg3[%c1, %c0_5, %c0_6] : memref<2x1x128xf32, #tpu.memory_space<vmem>>, vector<1x1x128xf32>
    %8 = vector.shape_cast %7 : vector<1x1x128xf32> to vector<1x128xf32>
    %9 = vector.broadcast %8 : vector<1x128xf32> to vector<256x128xf32>
    %10 = arith.addf %6, %9 : vector<256x128xf32>
    %c0_7 = arith.constant 0 : index
    %c0_8 = arith.constant 0 : index
    %c0_9 = arith.constant 0 : index
    %11 = vector.load %arg4[%c0_7, %c0_8, %c0_9] : memref<1x256x128xbf16, #tpu.memory_space<vmem>>, vector<1x256x128xbf16>
    %12 = vector.shape_cast %11 : vector<1x256x128xbf16> to vector<256x128xbf16>
    %13 = arith.extf %12 : vector<256x128xbf16> to vector<256x128xf32>
    %c0_10 = arith.constant 0 : index
    %c0_11 = arith.constant 0 : index
    %c0_12 = arith.constant 0 : index
    %14 = vector.load %arg5[%c0_10, %c0_11, %c0_12] : memref<2x1x128xf32, #tpu.memory_space<vmem>>, vector<1x1x128xf32>
    %15 = vector.shape_cast %14 : vector<1x1x128xf32> to vector<1x128xf32>
    %16 = vector.broadcast %15 : vector<1x128xf32> to vector<256x128xf32>
    %17 = arith.mulf %13, %16 : vector<256x128xf32>
    %18 = arith.addf %10, %17 : vector<256x128xf32>
    %c1_13 = arith.constant 1 : index
    %c0_14 = arith.constant 0 : index
    %c0_15 = arith.constant 0 : index
    %19 = vector.load %arg5[%c1_13, %c0_14, %c0_15] : memref<2x1x128xf32, #tpu.memory_space<vmem>>, vector<1x1x128xf32>
    %20 = vector.shape_cast %19 : vector<1x1x128xf32> to vector<1x128xf32>
    %21 = vector.broadcast %20 : vector<1x128xf32> to vector<256x128xf32>
    %22 = arith.addf %18, %21 : vector<256x128xf32>
    %c0_16 = arith.constant 0 : index
    %c0_17 = arith.constant 0 : index
    %c0_18 = arith.constant 0 : index
    %23 = vector.load %arg6[%c0_16, %c0_17, %c0_18] : memref<1x256x128xf32, #tpu.memory_space<vmem>>, vector<1x256x128xf32>
    %24 = vector.shape_cast %23 : vector<1x256x128xf32> to vector<256x128xf32>
    %25 = vector.shape_cast %22 : vector<256x128xf32> to vector<1x256x128xf32>
    tpu.vector_store %arg6[%c0_16, %c0_17, %c0_18], %25 {strides = array<i32>} : memref<1x256x128xf32, #tpu.memory_space<vmem>>, vector<1x256x128xf32>,
    return
  }
  func.func @transform_0(%arg0: i32, %arg1: i32) -> (i32, i32, i32) {
    %c0_i32 = arith.constant 0 : i32
    %c0_i32_0 = arith.constant 0 : i32
    return %arg0, %arg1, %c0_i32 : i32, i32, i32
  }
  func.func @transform_1(%arg0: i32, %arg1: i32) -> (i32, i32, i32) {
    %c0_i32 = arith.constant 0 : i32
    %c0_i32_0 = arith.constant 0 : i32
    %c0_i32_1 = arith.constant 0 : i32
    %c0_i32_2 = arith.constant 0 : i32
    return %c0_i32, %c0_i32_0, %c0_i32_1 : i32, i32, i32
  }
  func.func @transform_2(%arg0: i32, %arg1: i32) -> (i32, i32, i32) {
    %c0_i32 = arith.constant 0 : i32
    %c0_i32_0 = arith.constant 0 : i32
    return %arg0, %arg1, %c0_i32 : i32, i32, i32
  }
  func.func @transform_3(%arg0: i32, %arg1: i32) -> (i32, i32, i32) {
    %c0_i32 = arith.constant 0 : i32
    %c0_i32_0 = arith.constant 0 : i32
    %c0_i32_1 = arith.constant 0 : i32
    %c0_i32_2 = arith.constant 0 : i32
    return %c0_i32, %c0_i32_0, %c0_i32_1 : i32, i32, i32
  }
  func.func @transform_4(%arg0: i32, %arg1: i32) -> (i32, i32, i32) {
    %c0_i32 = arith.constant 0 : i32
    %c0_i32_0 = arith.constant 0 : i32
    return %arg0, %arg1, %c0_i32 : i32, i32, i32
  }
}

</mosaic_0001>

<bundles_post_ra>
// kernel: mobilenetv2_block.7
= control target key start
LH: loop header
LB: loop body
LE: loop exit
PB: predicated region body
PF: predicated region fallthrough
CT: control target
= control target key end

     0   :  { %s981_s15 = smov 0   ;;  %s983_s16 = smov 0   ;;  %s1239_s0 = inlined_call_operand.vmem [shape: bf16[2,256,128], index: 0, kind: input, shape index: {}]   ;;  %s1240_s1 = inlined_call_operand.vmem [shape: f32[2,1,128], index: 1, kind: input, shape index: {}]   ;;  %s1241_s2 = inlined_call_operand.vmem [shape: bf16[2,256,128], index: 2, kind: input, shape index: {}]   ;;  %s1242_s3 = inlined_call_operand.vmem [shape: f32[2,1,128], index: 3, kind: input, shape index: {}]   ;;  %s1243_s4 = inlined_call_operand.vmem [shape: f32[2,256,128], index: 4, kind: output, shape index: {}]  }
   0x1   :  { %s985_s17 = smov 0  }
   0x2 LB: > { %s26_s18 = sadd.s32 1, %s950_s16  ;;  %p732_p0 = scmp.ge.s32.totalorder %s954_s17, 1  ;;  %s954_s17 = sphi %s985_s17, %s14_s17   ;;  %s950_s16 = sphi %s983_s16, %s1245_s16   ;;  %s946_s15 = sphi %s981_s15, %s1244_s15  }
   0x3   : > { %p28_p1 = scmp.ge.s32.totalorder %s26_s18, 2  ;;  %p200_p2 = scmp.lt.s32.totalorder %s954_s17, 3 }
   0x5   : > { %s1247_s18 = smov (%p28_p1, %s26_s18), 0  ;;  %p201_p3 = pnand %p732_p0, %p200_p2 }
   0x6   : > { %p244_p4 = scmp.lt.s32.totalorder (!%p201_p3), %s946_s15, 1  ;;  %v1015_v0 = vld [vmem:[%s1240_s1] ss:$0 sm:$0xff] (!%p201_p3)  ;;  %v1029_v10 = vld [vmem:[%s1240_s1 + $0x1] ss:$0 sm:$0xff] (!%p201_p3) }
   0x7   : > { %204 = sbr.rel (%p201_p3) target bundleno = 80 (0x50), region = 36  ;;  %v1020_v1 = vld [vmem:[%s1242_s3] ss:$0 sm:$0xff] (!%p201_p3)  ;;  %v1047_v29 = vld [vmem:[%s1242_s3 + $0x1] ss:$0 sm:$0xff] (!%p201_p3) }
   0xe   : > { %s1249_s15 = smov (!%p244_p4, %s946_s15), 1 }
   0xf   : > { %s747_s19 = sshll.u32 %s1249_s15, 7  ;;  %s749_s6 = sshll.u32 %s1249_s15, 8 }
  0x10   : > { %s1005_s22 = scalar_lea.vmem %s1239_s0, %s747_s19  ;;  %s1010_s25 = scalar_lea.vmem %s1241_s2, %s747_s19 }
  0x11   : > { %v751_v2 = vld [vmem:[%s1005_s22] sm:$0xff]   ;;  %v878_v4 = vld [vmem:[%s1005_s22 + $0x8] sm:$0xff]   ;;  %v879_v15 = vld [vmem:[%s1005_s22 + $0x10] sm:$0xff]   ;;  %s1058_s11 = scalar_lea.vmem %s1243_s4, %s749_s6 }
  0x12   : > { %v815_v3 = vld [vmem:[%s1010_s25] sm:$0xff]   ;;  %v752_v5 = vunpack.c.l.bf16 %v751_v2  ;;  %v753_v7 = vunpack.c.h.bf16 %v751_v2  ;;  %v893_v9 = vld [vmem:[%s1010_s25 + $0x8] sm:$0xff]   ;;  %v756_v11 = vunpack.c.l.bf16 %v878_v4  ;;  %v757_v13 = vunpack.c.h.bf16 %v878_v4  ;;  %v894_v16 = vld [vmem:[%s1010_s25 + $0x10] sm:$0xff]  }
  0x13   : > { %v816_v6 = vunpack.c.l.bf16 %v815_v3  ;;  %v817_v8 = vunpack.c.h.bf16 %v815_v3  ;;  %v820_v12 = vunpack.c.l.bf16 %v893_v9  ;;  %v821_v14 = vunpack.c.h.bf16 %v893_v9  ;;  %v880_v34 = vld [vmem:[%s1005_s22 + $0x18] sm:$0xff]   ;;  %v881_v48 = vld [vmem:[%s1005_s22 + $0x20] sm:$0xff]   ;;  %v882_v62 = vld [vmem:[%s1005_s22 + $0x28] sm:$0xff]  }
  0x14   : > { %v344_v17 = vmul.f32 %v752_v5, %v1015_v0  ;;  %v345_v19 = vmul.f32 %v753_v7, %v1015_v0  ;;  %v346_v21 = vmul.f32 %v756_v11, %v1015_v0  ;;  %v347_v23 = vmul.f32 %v757_v13, %v1015_v0  ;;  %v895_v39 = vld [vmem:[%s1010_s25 + $0x18] sm:$0xff]   ;;  %v896_v49 = vld [vmem:[%s1010_s25 + $0x20] sm:$0xff]   ;;  %v897_v5 = vld [vmem:[%s1010_s25 + $0x28] sm:$0xff]  }
  0x15   : > { %v487_v18 = vmul.f32 %v816_v6, %v1020_v1  ;;  %v488_v20 = vmul.f32 %v817_v8, %v1020_v1  ;;  %v489_v22 = vmul.f32 %v820_v12, %v1020_v1  ;;  %v490_v24 = vmul.f32 %v821_v14, %v1020_v1 }
  0x16   : > { %v384_v25 = vadd.f32 %v1029_v10, %v344_v17  ;;  %v385_v26 = vadd.f32 %v1029_v10, %v345_v19  ;;  %v760_v27 = vunpack.c.l.bf16 %v879_v15  ;;  %v824_v28 = vunpack.c.l.bf16 %v894_v16  ;;  %v883_v19 = vld [vmem:[%s1005_s22 + $0x30] sm:$0xff]  }
  0x17   : > { %v386_v30 = vadd.f32 %v1029_v10, %v346_v21  ;;  %v387_v31 = vadd.f32 %v1029_v10, %v347_v23  ;;  %v761_v32 = vunpack.c.h.bf16 %v879_v15  ;;  %v825_v33 = vunpack.c.h.bf16 %v894_v16 }
  0x18   : > { %v519_v35 = vadd.f32 %v487_v18, %v384_v25  ;;  %v520_v36 = vadd.f32 %v488_v20, %v385_v26  ;;  %v348_v37 = vmul.f32 %v760_v27, %v1015_v0  ;;  %v491_v38 = vmul.f32 %v824_v28, %v1020_v1 }
  0x19   : > { %v521_v40 = vadd.f32 %v489_v22, %v386_v30  ;;  %v522_v41 = vadd.f32 %v490_v24, %v387_v31  ;;  %v349_v42 = vmul.f32 %v761_v32, %v1015_v0  ;;  %v492_v43 = vmul.f32 %v825_v33, %v1020_v1  ;;  %v898_v24 = vld [vmem:[%s1010_s25 + $0x30] sm:$0xff]  }
  0x1a   : > { %v559_v44 = vadd.f32 %v1047_v29, %v519_v35  ;;  %v560_v45 = vadd.f32 %v1047_v29, %v520_v36  ;;  %v388_v46 = vadd.f32 %v1029_v10, %v348_v37  ;;  %v764_v47 = vunpack.c.l.bf16 %v880_v34 }
  0x1b   : > { %v561_v50 = vadd.f32 %v1047_v29, %v521_v40  ;;  %v562_v51 = vadd.f32 %v1047_v29, %v522_v41  ;;  %v389_v52 = vadd.f32 %v1029_v10, %v349_v42  ;;  %v828_v53 = vunpack.c.l.bf16 %v895_v39 }
  0x1c   : > { %591 = vst [vmem:[%s1058_s11] sm:$0xff] %v559_v44  ;;  %592 = vst [vmem:[%s1058_s11 + $0x8] sm:$0xff] %v560_v45  ;;  %v523_v54 = vadd.f32 %v491_v38, %v388_v46  ;;  %v350_v55 = vmul.f32 %v764_v47, %v1015_v0  ;;  %v765_v56 = vunpack.c.h.bf16 %v880_v34  ;;  %v829_v57 = vunpack.c.h.bf16 %v895_v39  ;;  %v884_v34 = vld [vmem:[%s1005_s22 + $0x38] sm:$0xff]  }
  0x1d   : > { %593 = vst [vmem:[%s1058_s11 + $0x10] sm:$0xff] %v561_v50  ;;  %594 = vst [vmem:[%s1058_s11 + $0x18] sm:$0xff] %v562_v51  ;;  %v524_v58 = vadd.f32 %v492_v43, %v389_v52  ;;  %v493_v59 = vmul.f32 %v828_v53, %v1020_v1  ;;  %v768_v60 = vunpack.c.l.bf16 %v881_v48  ;;  %v832_v61 = vunpack.c.l.bf16 %v896_v49  ;;  %v899_v43 = vld [vmem:[%s1010_s25 + $0x38] sm:$0xff]   ;;  %v885_v52 = vld [vmem:[%s1005_s22 + $0x40] sm:$0xff]  }
  0x1e   : > { %v563_v63 = vadd.f32 %v1047_v29, %v523_v54  ;;  %v390_v2 = vadd.f32 %v1029_v10, %v350_v55  ;;  %v351_v3 = vmul.f32 %v765_v56, %v1015_v0  ;;  %v494_v4 = vmul.f32 %v829_v57, %v1020_v1  ;;  %v900_v57 = vld [vmem:[%s1010_s25 + $0x40] sm:$0xff]  }
  0x1f   : > { %v564_v6 = vadd.f32 %v1047_v29, %v524_v58  ;;  %v352_v7 = vmul.f32 %v768_v60, %v1015_v0  ;;  %v495_v8 = vmul.f32 %v832_v61, %v1020_v1  ;;  %v769_v9 = vunpack.c.h.bf16 %v881_v48 }
  0x20   : > { %595 = vst [vmem:[%s1058_s11 + $0x20] sm:$0xff] %v563_v63  ;;  %v525_v11 = vadd.f32 %v493_v59, %v390_v2  ;;  %v391_v12 = vadd.f32 %v1029_v10, %v351_v3  ;;  %v833_v13 = vunpack.c.h.bf16 %v896_v49  ;;  %v772_v14 = vunpack.c.l.bf16 %v882_v62 }
  0x21   : > { %596 = vst [vmem:[%s1058_s11 + $0x28] sm:$0xff] %v564_v6  ;;  %v392_v15 = vadd.f32 %v1029_v10, %v352_v7  ;;  %v353_v16 = vmul.f32 %v769_v9, %v1015_v0  ;;  %v836_v17 = vunpack.c.l.bf16 %v897_v5  ;;  %v773_v18 = vunpack.c.h.bf16 %v882_v62 }
  0x22   : > { %v565_v20 = vadd.f32 %v1047_v29, %v525_v11  ;;  %v526_v21 = vadd.f32 %v494_v4, %v391_v12  ;;  %v496_v22 = vmul.f32 %v833_v13, %v1020_v1  ;;  %v354_v23 = vmul.f32 %v772_v14, %v1015_v0  ;;  %v886_v4 = vld [vmem:[%s1005_s22 + $0x48] sm:$0xff]  }
  0x23   : > { %v527_v25 = vadd.f32 %v495_v8, %v392_v15  ;;  %v393_v26 = vadd.f32 %v1029_v10, %v353_v16  ;;  %v497_v27 = vmul.f32 %v836_v17, %v1020_v1  ;;  %v355_v28 = vmul.f32 %v773_v18, %v1015_v0  ;;  %v901_v14 = vld [vmem:[%s1010_s25 + $0x48] sm:$0xff]  }
  0x24   : > { %597 = vst [vmem:[%s1058_s11 + $0x30] sm:$0xff] %v565_v20  ;;  %v566_v30 = vadd.f32 %v1047_v29, %v526_v21  ;;  %v394_v31 = vadd.f32 %v1029_v10, %v354_v23  ;;  %v837_v32 = vunpack.c.h.bf16 %v897_v5  ;;  %v776_v33 = vunpack.c.l.bf16 %v883_v19  ;;  %v887_v23 = vld [vmem:[%s1005_s22 + $0x50] sm:$0xff]  }
  0x25   : > { %v567_v35 = vadd.f32 %v1047_v29, %v527_v25  ;;  %v528_v36 = vadd.f32 %v496_v22, %v393_v26  ;;  %v395_v37 = vadd.f32 %v1029_v10, %v355_v28  ;;  %v840_v38 = vunpack.c.l.bf16 %v898_v24  ;;  %v902_v28 = vld [vmem:[%s1010_s25 + $0x50] sm:$0xff]  }
  0x26   : > { %598 = vst [vmem:[%s1058_s11 + $0x38] sm:$0xff] %v566_v30  ;;  %v529_v39 = vadd.f32 %v497_v27, %v394_v31  ;;  %v498_v40 = vmul.f32 %v837_v32, %v1020_v1  ;;  %v356_v41 = vmul.f32 %v776_v33, %v1015_v0  ;;  %v777_v42 = vunpack.c.h.bf16 %v883_v19 }
  0x27   : > { %599 = vst [vmem:[%s1058_s11 + $0x40] sm:$0xff] %v567_v35  ;;  %v568_v44 = vadd.f32 %v1047_v29, %v528_v36  ;;  %v499_v45 = vmul.f32 %v840_v38, %v1020_v1  ;;  %v841_v46 = vunpack.c.h.bf16 %v898_v24  ;;  %v780_v47 = vunpack.c.l.bf16 %v884_v34  ;;  %v888_v38 = vld [vmem:[%s1005_s22 + $0x58] sm:$0xff]  }
  0x28   : > { %v569_v48 = vadd.f32 %v1047_v29, %v529_v39  ;;  %v530_v49 = vadd.f32 %v498_v40, %v395_v37  ;;  %v396_v50 = vadd.f32 %v1029_v10, %v356_v41  ;;  %v357_v51 = vmul.f32 %v777_v42, %v1015_v0 }
  0x29   : > { %600 = vst [vmem:[%s1058_s11 + $0x48] sm:$0xff] %v568_v44  ;;  %v500_v53 = vmul.f32 %v841_v46, %v1020_v1  ;;  %v358_v54 = vmul.f32 %v780_v47, %v1015_v0  ;;  %v844_v55 = vunpack.c.l.bf16 %v899_v43  ;;  %v781_v56 = vunpack.c.h.bf16 %v884_v34  ;;  %v903_v47 = vld [vmem:[%s1010_s25 + $0x58] sm:$0xff]  }
  0x2a   : > { %601 = vst [vmem:[%s1058_s11 + $0x50] sm:$0xff] %v569_v48  ;;  %v570_v58 = vadd.f32 %v1047_v29, %v530_v49  ;;  %v531_v59 = vadd.f32 %v499_v45, %v396_v50  ;;  %v397_v60 = vadd.f32 %v1029_v10, %v357_v51  ;;  %v845_v61 = vunpack.c.h.bf16 %v899_v43 }
  0x2b   : > { %v398_v62 = vadd.f32 %v1029_v10, %v358_v54  ;;  %v501_v63 = vmul.f32 %v844_v55, %v1020_v1  ;;  %v359_v2 = vmul.f32 %v781_v56, %v1015_v0  ;;  %v784_v3 = vunpack.c.l.bf16 %v885_v52  ;;  %v889_v56 = vld [vmem:[%s1005_s22 + $0x60] sm:$0xff]  }
  0x2c   : > { %602 = vst [vmem:[%s1058_s11 + $0x58] sm:$0xff] %v570_v58  ;;  %v571_v5 = vadd.f32 %v1047_v29, %v531_v59  ;;  %v532_v6 = vadd.f32 %v500_v53, %v397_v60  ;;  %v502_v7 = vmul.f32 %v845_v61, %v1020_v1  ;;  %v848_v8 = vunpack.c.l.bf16 %v900_v57  ;;  %v904_v61 = vld [vmem:[%s1010_s25 + $0x60] sm:$0xff]  }
  0x2d   : > { %v533_v9 = vadd.f32 %v501_v63, %v398_v62  ;;  %v399_v11 = vadd.f32 %v1029_v10, %v359_v2  ;;  %v360_v12 = vmul.f32 %v784_v3, %v1015_v0  ;;  %v785_v13 = vunpack.c.h.bf16 %v885_v52 }
  0x2e   : > { %603 = vst [vmem:[%s1058_s11 + $0x60] sm:$0xff] %v571_v5  ;;  %v572_v15 = vadd.f32 %v1047_v29, %v532_v6  ;;  %v503_v16 = vmul.f32 %v848_v8, %v1020_v1  ;;  %v849_v17 = vunpack.c.h.bf16 %v900_v57  ;;  %v788_v18 = vunpack.c.l.bf16 %v886_v4  ;;  %v890_v8 = vld [vmem:[%s1005_s22 + $0x68] sm:$0xff]  }
  0x2f   : > { %v573_v19 = vadd.f32 %v1047_v29, %v533_v9  ;;  %v534_v20 = vadd.f32 %v502_v7, %v399_v11  ;;  %v400_v21 = vadd.f32 %v1029_v10, %v360_v12  ;;  %v361_v22 = vmul.f32 %v785_v13, %v1015_v0 }
  0x30   : > { %604 = vst [vmem:[%s1058_s11 + $0x68] sm:$0xff] %v572_v15  ;;  %v504_v24 = vmul.f32 %v849_v17, %v1020_v1  ;;  %v362_v25 = vmul.f32 %v788_v18, %v1015_v0  ;;  %v852_v26 = vunpack.c.l.bf16 %v901_v14  ;;  %v789_v27 = vunpack.c.h.bf16 %v886_v4  ;;  %v905_v18 = vld [vmem:[%s1010_s25 + $0x68] sm:$0xff]  }
  0x31   : > { %605 = vst [vmem:[%s1058_s11 + $0x70] sm:$0xff] %v573_v19  ;;  %v574_v30 = vadd.f32 %v1047_v29, %v534_v20  ;;  %v535_v31 = vadd.f32 %v503_v16, %v400_v21  ;;  %v401_v32 = vadd.f32 %v1029_v10, %v361_v22  ;;  %v853_v33 = vunpack.c.h.bf16 %v901_v14 }
  0x32   : > { %v402_v34 = vadd.f32 %v1029_v10, %v362_v25  ;;  %v505_v35 = vmul.f32 %v852_v26, %v1020_v1  ;;  %v363_v36 = vmul.f32 %v789_v27, %v1015_v0  ;;  %v792_v37 = vunpack.c.l.bf16 %v887_v23  ;;  %v891_v27 = vld [vmem:[%s1005_s22 + $0x70] sm:$0xff]  }
  0x33   : > { %606 = vst [vmem:[%s1058_s11 + $0x78] sm:$0xff] %v574_v30  ;;  %v575_v39 = vadd.f32 %v1047_v29, %v535_v31  ;;  %v536_v40 = vadd.f32 %v504_v24, %v401_v32  ;;  %v506_v41 = vmul.f32 %v853_v33, %v1020_v1  ;;  %v856_v42 = vunpack.c.l.bf16 %v902_v28  ;;  %v906_v33 = vld [vmem:[%s1010_s25 + $0x70] sm:$0xff]  }
  0x34   : > { %v537_v43 = vadd.f32 %v505_v35, %v402_v34  ;;  %v403_v44 = vadd.f32 %v1029_v10, %v363_v36  ;;  %v364_v45 = vmul.f32 %v792_v37, %v1015_v0  ;;  %v793_v46 = vunpack.c.h.bf16 %v887_v23 }
  0x35   : > { %607 = vst [vmem:[%s1058_s11 + $0x80] sm:$0xff] %v575_v39  ;;  %v576_v48 = vadd.f32 %v1047_v29, %v536_v40  ;;  %v507_v49 = vmul.f32 %v856_v42, %v1020_v1  ;;  %v857_v50 = vunpack.c.h.bf16 %v902_v28  ;;  %v796_v51 = vunpack.c.l.bf16 %v888_v38  ;;  %v892_v42 = vld [vmem:[%s1005_s22 + $0x78] sm:$0xff]  }
  0x36   : > { %v577_v52 = vadd.f32 %v1047_v29, %v537_v43  ;;  %v538_v53 = vadd.f32 %v506_v41, %v403_v44  ;;  %v404_v54 = vadd.f32 %v1029_v10, %v364_v45  ;;  %v365_v55 = vmul.f32 %v793_v46, %v1015_v0 }
  0x37   : > { %608 = vst [vmem:[%s1058_s11 + $0x88] sm:$0xff] %v576_v48  ;;  %v508_v57 = vmul.f32 %v857_v50, %v1020_v1  ;;  %v366_v58 = vmul.f32 %v796_v51, %v1015_v0  ;;  %v860_v59 = vunpack.c.l.bf16 %v903_v47  ;;  %v797_v60 = vunpack.c.h.bf16 %v888_v38  ;;  %v907_v51 = vld [vmem:[%s1010_s25 + $0x78] sm:$0xff]  }
  0x38   : > { %609 = vst [vmem:[%s1058_s11 + $0x90] sm:$0xff] %v577_v52  ;;  %v578_v62 = vadd.f32 %v1047_v29, %v538_v53  ;;  %v539_v63 = vadd.f32 %v507_v49, %v404_v54  ;;  %v405_v2 = vadd.f32 %v1029_v10, %v365_v55  ;;  %v861_v3 = vunpack.c.h.bf16 %v903_v47 }
  0x39   : > { %v406_v4 = vadd.f32 %v1029_v10, %v366_v58  ;;  %v509_v5 = vmul.f32 %v860_v59, %v1020_v1  ;;  %v367_v6 = vmul.f32 %v797_v60, %v1015_v0  ;;  %v800_v7 = vunpack.c.l.bf16 %v889_v56 }
  0x3a   : > { %610 = vst [vmem:[%s1058_s11 + $0x98] sm:$0xff] %v578_v62  ;;  %v579_v9 = vadd.f32 %v1047_v29, %v539_v63  ;;  %v540_v11 = vadd.f32 %v508_v57, %v405_v2  ;;  %v510_v12 = vmul.f32 %v861_v3, %v1020_v1  ;;  %v864_v13 = vunpack.c.l.bf16 %v904_v61 }
  0x3b   : > { %v541_v14 = vadd.f32 %v509_v5, %v406_v4  ;;  %v407_v15 = vadd.f32 %v1029_v10, %v367_v6  ;;  %v368_v16 = vmul.f32 %v800_v7, %v1015_v0  ;;  %v801_v17 = vunpack.c.h.bf16 %v889_v56 }
  0x3c   : > { %611 = vst [vmem:[%s1058_s11 + $0xa0] sm:$0xff] %v579_v9  ;;  %v580_v19 = vadd.f32 %v1047_v29, %v540_v11  ;;  %v511_v20 = vmul.f32 %v864_v13, %v1020_v1  ;;  %v865_v21 = vunpack.c.h.bf16 %v904_v61  ;;  %v804_v22 = vunpack.c.l.bf16 %v890_v8 }
  0x3d   : > { %v581_v23 = vadd.f32 %v1047_v29, %v541_v14  ;;  %v542_v24 = vadd.f32 %v510_v12, %v407_v15  ;;  %v408_v25 = vadd.f32 %v1029_v10, %v368_v16  ;;  %v369_v26 = vmul.f32 %v801_v17, %v1015_v0 }
  0x3e   : > { %612 = vst [vmem:[%s1058_s11 + $0xa8] sm:$0xff] %v580_v19  ;;  %v512_v28 = vmul.f32 %v865_v21, %v1020_v1  ;;  %v370_v30 = vmul.f32 %v804_v22, %v1015_v0  ;;  %v868_v31 = vunpack.c.l.bf16 %v905_v18  ;;  %v805_v32 = vunpack.c.h.bf16 %v890_v8 }
  0x3f   : > { %613 = vst [vmem:[%s1058_s11 + $0xb0] sm:$0xff] %v581_v23  ;;  %v582_v34 = vadd.f32 %v1047_v29, %v542_v24  ;;  %v543_v35 = vadd.f32 %v511_v20, %v408_v25  ;;  %v409_v36 = vadd.f32 %v1029_v10, %v369_v26  ;;  %v869_v37 = vunpack.c.h.bf16 %v905_v18 }
  0x40   : > { %v410_v38 = vadd.f32 %v1029_v10, %v370_v30  ;;  %v513_v39 = vmul.f32 %v868_v31, %v1020_v1  ;;  %v371_v40 = vmul.f32 %v805_v32, %v1015_v0  ;;  %v808_v41 = vunpack.c.l.bf16 %v891_v27 }
  0x41   : > { %614 = vst [vmem:[%s1058_s11 + $0xb8] sm:$0xff] %v582_v34  ;;  %v583_v43 = vadd.f32 %v1047_v29, %v543_v35  ;;  %v544_v44 = vadd.f32 %v512_v28, %v409_v36  ;;  %v514_v45 = vmul.f32 %v869_v37, %v1020_v1  ;;  %v872_v46 = vunpack.c.l.bf16 %v906_v33 }
  0x42   : > { %v545_v47 = vadd.f32 %v513_v39, %v410_v38  ;;  %v411_v48 = vadd.f32 %v1029_v10, %v371_v40  ;;  %v372_v49 = vmul.f32 %v808_v41, %v1015_v0  ;;  %v809_v50 = vunpack.c.h.bf16 %v891_v27 }
  0x43   : > { %615 = vst [vmem:[%s1058_s11 + $0xc0] sm:$0xff] %v583_v43  ;;  %v584_v52 = vadd.f32 %v1047_v29, %v544_v44  ;;  %v515_v53 = vmul.f32 %v872_v46, %v1020_v1  ;;  %v873_v54 = vunpack.c.h.bf16 %v906_v33  ;;  %v812_v55 = vunpack.c.l.bf16 %v892_v42 }
  0x44   : > { %v585_v56 = vadd.f32 %v1047_v29, %v545_v47  ;;  %v546_v57 = vadd.f32 %v514_v45, %v411_v48  ;;  %v412_v58 = vadd.f32 %v1029_v10, %v372_v49  ;;  %v373_v59 = vmul.f32 %v809_v50, %v1015_v0 }
  0x45   : > { %616 = vst [vmem:[%s1058_s11 + $0xc8] sm:$0xff] %v584_v52  ;;  %v516_v60 = vmul.f32 %v873_v54, %v1020_v1  ;;  %v374_v61 = vmul.f32 %v812_v55, %v1015_v0  ;;  %v876_v62 = vunpack.c.l.bf16 %v907_v51  ;;  %v813_v63 = vunpack.c.h.bf16 %v892_v42 }
  0x46   : > { %617 = vst [vmem:[%s1058_s11 + $0xd0] sm:$0xff] %v585_v56  ;;  %v586_v2 = vadd.f32 %v1047_v29, %v546_v57  ;;  %v547_v3 = vadd.f32 %v515_v53, %v412_v58  ;;  %v413_v4 = vadd.f32 %v1029_v10, %v373_v59  ;;  %v877_v5 = vunpack.c.h.bf16 %v907_v51 }
  0x47   : > { %v414_v6 = vadd.f32 %v1029_v10, %v374_v61  ;;  %v517_v7 = vmul.f32 %v876_v62, %v1020_v1  ;;  %v375_v8 = vmul.f32 %v813_v63, %v1015_v0 }
  0x48   : > { %618 = vst [vmem:[%s1058_s11 + $0xd8] sm:$0xff] %v586_v2  ;;  %v587_v9 = vadd.f32 %v1047_v29, %v547_v3  ;;  %v548_v11 = vadd.f32 %v516_v60, %v413_v4  ;;  %v518_v12 = vmul.f32 %v877_v5, %v1020_v1 }
  0x49   : > { %v549_v13 = vadd.f32 %v517_v7, %v414_v6  ;;  %v415_v14 = vadd.f32 %v1029_v10, %v375_v8 }
  0x4a   : > { %619 = vst [vmem:[%s1058_s11 + $0xe0] sm:$0xff] %v587_v9  ;;  %v588_v15 = vadd.f32 %v1047_v29, %v548_v11 }
  0x4b   : > { %v589_v16 = vadd.f32 %v1047_v29, %v549_v13  ;;  %v550_v17 = vadd.f32 %v518_v12, %v415_v14 }
  0x4c   : > { %620 = vst [vmem:[%s1058_s11 + $0xe8] sm:$0xff] %v588_v15 }
  0x4d   : > { %621 = vst [vmem:[%s1058_s11 + $0xf0] sm:$0xff] %v589_v16  ;;  %v590_v18 = vadd.f32 %v1047_v29, %v550_v17 }
  0x4f   : > { %622 = vst [vmem:[%s1058_s11 + $0xf8] sm:$0xff] %v590_v18 }
  0x50 PF: > { %s14_s17 = sadd.s32 1, %s954_s17   ;;  %s1244_s15 = smov %s950_s16 }
  0x51   : > { %p11_p5 = scmp.ge.s32.totalorder %s14_s17, 4   ;;  %s1245_s16 = smov %s1247_s18 }
  0x53   :  { %13 = sbr.rel (!%p11_p5) target bundleno = 2 (0x2), region = 71 }

// kernel: mobilenetv2_block.6
= control target key start
LH: loop header
LB: loop body
LE: loop exit
PB: predicated region body
PF: predicated region fallthrough
CT: control target
= control target key end

     0   :  { %s1502_s15 = smov 0   ;;  %s1504_s16 = smov 0   ;;  %s1782_s0 = inlined_call_operand.vmem [shape: bf16[2,256,128], index: 0, kind: input, shape index: {}]   ;;  %s1783_s1 = inlined_call_operand.vmem [shape: f32[2,1,128], index: 1, kind: input, shape index: {}]   ;;  %s1784_s2 = inlined_call_operand.vmem [shape: bf16[128,128], index: 2, kind: input, shape index: {}]   ;;  %s1785_s3 = inlined_call_operand.vmem [shape: bf16[2,256,128], index: 3, kind: output, shape index: {0}]   ;;  %s1786_s4 = inlined_call_operand.vmem [shape: f32[2,2,1,128], index: 4, kind: output, shape index: {1}]  }
   0x1   :  { %s1506_s17 = smov 0  }
   0x2 LB: > { %s27_s18 = sadd.s32 1, %s1471_s16  ;;  %p1071_p0 = scmp.ge.s32.totalorder %s1475_s17, 1  ;;  %s1475_s17 = sphi %s1506_s17, %s15_s17   ;;  %s1471_s16 = sphi %s1504_s16, %s1788_s16   ;;  %s1467_s15 = sphi %s1502_s15, %s1787_s15  }
   0x3   : > { %p29_p1 = scmp.ge.s32.totalorder %s27_s18, 2  ;;  %p186_p2 = scmp.lt.s32.totalorder %s1475_s17, 3 }
   0x5   : > { %s1790_s18 = smov (%p29_p1, %s27_s18), 0  ;;  %p187_p3 = pnand %p1071_p0, %p186_p2 }
   0x6   : > { %v1445_v0 = vld [vmem:[%s1784_s2] sm:$0xff] (!%p187_p3)   ;;  %p225_p4 = scmp.lt.s32.totalorder (!%p187_p3), %s1467_s15, 1  ;;  %v1446_v1 = vld [vmem:[%s1784_s2 + $0x8] sm:$0xff] (!%p187_p3)   ;;  %v1447_v2 = vld [vmem:[%s1784_s2 + $0x10] sm:$0xff] (!%p187_p3)  }
   0x7   : > { %190 = sbr.rel (%p187_p3) target bundleno = 331 (0x14b), region = 32  ;;  %1357 = vmatprep.subr.bf16.mxu0 (!%p187_p3), %v1445_v0  ;;  %1405 = vmatprep.subr.bf16.mxu1 (!%p187_p3), %v1445_v0  ;;  %v1448_v3 = vld [vmem:[%s1784_s2 + $0x18] sm:$0xff] (!%p187_p3)   ;;  %v1546_v5 = vld [vmem:[%s1783_s1] ss:$0 sm:$0xff] (!%p187_p3)  ;;  %v1554_v11 = vld [vmem:[%s1783_s1 + $0x1] ss:$0 sm:$0xff] (!%p187_p3) }
   0x8   : > { %1358 = vmatpush3.bf16.msra.mxu0 (!%p187_p3), %v1445_v0  ;;  %1413 = vmatpush3.bf16.msra.mxu1 (!%p187_p3), %v1445_v0  ;;  %v1449_v20 = vld [vmem:[%s1784_s2 + $0x20] sm:$0xff] (!%p187_p3)   ;;  %v1450_v34 = vld [vmem:[%s1784_s2 + $0x28] sm:$0xff] (!%p187_p3)   ;;  %v1451_v49 = vld [vmem:[%s1784_s2 + $0x30] sm:$0xff] (!%p187_p3)  }
   0x9   : > { %1359 = vmatprep.subr.bf16.mxu0 (!%p187_p3), %v1446_v1  ;;  %1406 = vmatprep.subr.bf16.mxu1 (!%p187_p3), %v1446_v1  ;;  %v1452_v63 = vld [vmem:[%s1784_s2 + $0x38] sm:$0xff] (!%p187_p3)  }
   0xc   : > { %1360 = vmatpush3.bf16.msra.mxu0 (!%p187_p3), %v1446_v1  ;;  %1414 = vmatpush3.bf16.msra.mxu1 (!%p187_p3), %v1446_v1 }
   0xd   : > { %1361 = vmatprep.subr.bf16.mxu0 (!%p187_p3), %v1447_v2  ;;  %1407 = vmatprep.subr.bf16.mxu1 (!%p187_p3), %v1447_v2 }
   0xe   : > { %s1792_s15 = smov (!%p225_p4, %s1467_s15), 1 }
   0xf   : > { %s1125_s25 = sshll.u32 %s1792_s15, 7  ;;  %s1076_s24 = sshll.u32 %s1792_s15, 1 }
  0x10   : > { %s1537_s28 = scalar_lea.vmem %s1782_s0, %s1125_s25  ;;  %1362 = vmatpush3.bf16.msra.mxu0 %v1447_v2  ;;  %1415 = vmatpush3.bf16.msra.mxu1 %v1447_v2  ;;  %s1679_s23 = scalar_lea.vmem %s1785_s3, %s1125_s25 }
  0x11   : > { %v1160_v4 = vld [vmem:[%s1537_s28] sm:$0xff]   ;;  %v1303_v8 = vld [vmem:[%s1537_s28 + $0x8] sm:$0xff]   ;;  %v1304_v9 = vld [vmem:[%s1537_s28 + $0x10] sm:$0xff]   ;;  %1363 = vmatprep.subr.bf16.mxu0 %v1448_v3  ;;  %1408 = vmatprep.subr.bf16.mxu1 %v1448_v3  ;;  %s247_s27 = scalar_lea.vmem %s1786_s4, %s1076_s24 }
  0x12   : > { %v1161_v6 = vunpack.c.l.bf16 %v1160_v4  ;;  %v1162_v7 = vunpack.c.h.bf16 %v1160_v4  ;;  %v1305_v10 = vld [vmem:[%s1537_s28 + $0x18] sm:$0xff]   ;;  %v1165_v12 = vunpack.c.l.bf16 %v1303_v8  ;;  %v1166_v13 = vunpack.c.h.bf16 %v1303_v8  ;;  %v1306_v29 = vld [vmem:[%s1537_s28 + $0x20] sm:$0xff]   ;;  %v1307_v33 = vld [vmem:[%s1537_s28 + $0x28] sm:$0xff]  }
  0x13   : > { %v1169_v14 = vunpack.c.l.bf16 %v1304_v9  ;;  %v1170_v15 = vunpack.c.h.bf16 %v1304_v9  ;;  %v1173_v18 = vunpack.c.l.bf16 %v1305_v10  ;;  %v1174_v19 = vunpack.c.h.bf16 %v1305_v10  ;;  %v1308_v42 = vld [vmem:[%s1537_s28 + $0x30] sm:$0xff]   ;;  %v1583_v48 = vld [vmem:[%s1537_s28 + $0x38] sm:$0xff]   ;;  %v1310_v60 = vld [vmem:[%s1537_s28 + $0x40] sm:$0xff]  }
  0x14   : > { %v320_v16 = vmul.f32 %v1161_v6, %v1546_v5  ;;  %v321_v17 = vmul.f32 %v1162_v7, %v1546_v5  ;;  %v322_v21 = vmul.f32 %v1165_v12, %v1546_v5  ;;  %v323_v22 = vmul.f32 %v1166_v13, %v1546_v5  ;;  %1364 = vmatpush3.bf16.msra.mxu0 %v1448_v3  ;;  %v1312_v9 = vld [vmem:[%s1537_s28 + $0x50] sm:$0xff]  }
  0x15   : > { %v324_v23 = vmul.f32 %v1169_v14, %v1546_v5  ;;  %v325_v24 = vmul.f32 %v1170_v15, %v1546_v5  ;;  %v326_v27 = vmul.f32 %v1173_v18, %v1546_v5  ;;  %v327_v28 = vmul.f32 %v1174_v19, %v1546_v5  ;;  %1416 = vmatpush3.bf16.msra.mxu1 %v1448_v3  ;;  %v1311_v3 = vld [vmem:[%s1537_s28 + $0x48] sm:$0xff]   ;;  %v1313_v19 = vld [vmem:[%s1537_s28 + $0x58] sm:$0xff]  }
  0x16   : > { %v360_v25 = vadd.f32 %v1554_v11, %v320_v16  ;;  %v361_v26 = vadd.f32 %v1554_v11, %v321_v17  ;;  %v362_v32 = vadd.f32 %v1554_v11, %v322_v21  ;;  %1365 = vmatprep.subr.bf16.mxu0 %v1449_v20  ;;  %v363_v35 = vadd.f32 %v1554_v11, %v323_v22 }
  0x17   : > { %v364_v36 = vadd.f32 %v1554_v11, %v324_v23  ;;  %v365_v37 = vadd.f32 %v1554_v11, %v325_v24  ;;  %1409 = vmatprep.subr.bf16.mxu1 %v1449_v20  ;;  %v366_v39 = vadd.f32 %v1554_v11, %v326_v27  ;;  %v367_v40 = vadd.f32 %v1554_v11, %v327_v28 }
  0x18   : > { %v392_v30 = vmax.f32 %v360_v25, 0.0  ;;  %v393_v31 = vmax.f32 %v361_v26, 0.0  ;;  %v1177_v41 = vunpack.c.l.bf16 %v1306_v29  ;;  %v1178_v43 = vunpack.c.h.bf16 %v1306_v29  ;;  %1366 = vmatpush3.bf16.msra.mxu0 %v1449_v20 }
  0x19   : > { %v1181_v44 = vunpack.c.l.bf16 %v1307_v33  ;;  %v394_v45 = vmax.f32 %v362_v32, 0.0  ;;  %v1182_v47 = vunpack.c.h.bf16 %v1307_v33  ;;  %1367 = vmatprep.subr.bf16.mxu0 %v1450_v34  ;;  %v395_v50 = vmax.f32 %v363_v35, 0.0  ;;  %1417 = vmatpush3.bf16.msra.mxu1 %v1449_v20  ;;  %v1314_v32 = vld [vmem:[%s1537_s28 + $0x60] sm:$0xff]  }
  0x1a   : > { %v424_v38 = vpack.c.bf16 %v393_v31, %v392_v30  ;;  %v328_v46 = vmul.f32 %v1177_v41, %v1546_v5  ;;  %v396_v51 = vmax.f32 %v364_v36, 0.0  ;;  %v397_v52 = vmax.f32 %v365_v37, 0.0  ;;  %1410 = vmatprep.subr.bf16.mxu1 %v1450_v34 }
  0x1b   : > { %v1185_v53 = vunpack.c.l.bf16 %v1308_v42  ;;  %v398_v54 = vmax.f32 %v366_v39, 0.0  ;;  %v399_v55 = vmax.f32 %v367_v40, 0.0  ;;  %v329_v56 = vmul.f32 %v1178_v43, %v1546_v5 }
  0x1c   : > { %1373 = vmatprep.mubr.bf16.mxu0 %v424_v38  ;;  %v330_v57 = vmul.f32 %v1181_v44, %v1546_v5  ;;  %v1186_v58 = vunpack.c.h.bf16 %v1308_v42  ;;  %v1189_v59 = vunpack.c.l.bf16 %v1583_v48  ;;  %1368 = vmatpush3.bf16.msra.mxu0 %v1450_v34  ;;  %v1593_v61 = vadd.f32 %v1554_v11, %v328_v46 }
  0x1d   : > { %v331_v62 = vmul.f32 %v1182_v47, %v1546_v5  ;;  %1369 = vmatprep.subr.bf16.mxu0 %v1451_v49  ;;  %v425_v0 = vpack.c.bf16 %v395_v50, %v394_v45  ;;  %v426_v1 = vpack.c.bf16 %v397_v52, %v396_v51  ;;  %1418 = vmatpush3.bf16.msra.mxu1 %v1450_v34  ;;  %v1190_v7 = vunpack.c.h.bf16 %v1583_v48  ;;  %v1315_v45 = vld [vmem:[%s1537_s28 + $0x68] sm:$0xff]  }
  0x1e   : > { %v332_v2 = vmul.f32 %v1185_v53, %v1546_v5  ;;  %v1601_v4 = vpack.c.bf16 %v399_v55, %v398_v54  ;;  %v1604_v6 = vadd.f32 %v1554_v11, %v329_v56  ;;  %1411 = vmatprep.subr.bf16.mxu1 %v1451_v49  ;;  %v1193_v8 = vunpack.c.l.bf16 %v1310_v60  ;;  %v1316_v55 = vld [vmem:[%s1537_s28 + $0x70] sm:$0xff]  }
  0x1f   : > { %v1609_v10 = vadd.f32 %v1554_v11, %v330_v57  ;;  %v1612_v12 = vmul.f32 %v1186_v58, %v1546_v5  ;;  %v1615_v13 = vmul.f32 %v1189_v59, %v1546_v5  ;;  %v1194_v14 = vunpack.c.h.bf16 %v1310_v60 }
  0x20   : > { %1370 = vmatpush3.bf16.msra.mxu0 %v1451_v49  ;;  %v400_v15 = vmax.f32 %v1593_v61, 0.0  ;;  %v1619_v16 = vadd.f32 %v1554_v11, %v331_v62  ;;  %v336_v17 = vmul.f32 %v1193_v8, %v1546_v5  ;;  %v1197_v18 = vunpack.c.l.bf16 %v1311_v3 }
  0x21   : > { %1371 = vmatprep.subr.bf16.mxu0 %v1452_v63  ;;  %1419 = vmatpush3.bf16.msra.mxu1 %v1451_v49  ;;  %v1624_v20 = vadd.f32 %v1554_v11, %v332_v2  ;;  %v337_v21 = vmul.f32 %v1194_v14, %v1546_v5  ;;  %v1198_v22 = vunpack.c.h.bf16 %v1311_v3  ;;  %v1201_v23 = vunpack.c.l.bf16 %v1312_v9 }
  0x22   : > { %v401_v24 = vmax.f32 %v1604_v6, 0.0  ;;  %1412 = vmatprep.subr.bf16.mxu1 %v1452_v63  ;;  %v376_v25 = vadd.f32 %v1554_v11, %v336_v17  ;;  %v338_v26 = vmul.f32 %v1197_v18, %v1546_v5  ;;  %v1202_v27 = vunpack.c.h.bf16 %v1312_v9  ;;  %v1317_v17 = vld [vmem:[%s1537_s28 + $0x78] sm:$0xff]  }
  0x23   : > { %v377_v28 = vadd.f32 %v1554_v11, %v337_v21  ;;  %v339_v29 = vmul.f32 %v1198_v22, %v1546_v5  ;;  %v340_v30 = vmul.f32 %v1201_v23, %v1546_v5  ;;  %v1205_v31 = vunpack.c.l.bf16 %v1313_v19 }
  0x24   : > { %1372 = vmatpush3.bf16.msra.mxu0 %v1452_v63  ;;  %v408_v33 = vmax.f32 %v376_v25, 0.0  ;;  %v378_v34 = vadd.f32 %v1554_v11, %v338_v26  ;;  %v341_v35 = vmul.f32 %v1202_v27, %v1546_v5  ;;  %v1206_v36 = vunpack.c.h.bf16 %v1313_v19 }
  0x25   : > { %1420 = vmatpush3.bf16.msra.mxu1 %v1452_v63  ;;  %v409_v37 = vmax.f32 %v377_v28, 0.0  ;;  %v379_v38 = vadd.f32 %v1554_v11, %v339_v29  ;;  %v380_v39 = vadd.f32 %v1554_v11, %v340_v30  ;;  %v342_v40 = vmul.f32 %v1205_v31, %v1546_v5 }
  0x26   : > { %v410_v41 = vmax.f32 %v378_v34, 0.0  ;;  %v381_v42 = vadd.f32 %v1554_v11, %v341_v35  ;;  %v343_v43 = vmul.f32 %v1206_v36, %v1546_v5  ;;  %v1209_v44 = vunpack.c.l.bf16 %v1314_v32 }
  0x27   : > { %1374 = vmatmul.mubr.bf16.vlgmr.msra.gmra.mrb[0].mxu0 %v425_v0  ;;  %v432_v46 = vpack.c.bf16 %v409_v37, %v408_v33  ;;  %v411_v47 = vmax.f32 %v379_v38, 0.0  ;;  %v412_v49 = vmax.f32 %v380_v39, 0.0  ;;  %v382_v50 = vadd.f32 %v1554_v11, %v342_v40 }
  0x28   : > { %1377 = vmatprep.mubr.bf16.mxu0 %v426_v1  ;;  %v413_v51 = vmax.f32 %v381_v42, 0.0  ;;  %v383_v52 = vadd.f32 %v1554_v11, %v343_v43  ;;  %v1210_v53 = vunpack.c.h.bf16 %v1314_v32  ;;  %v344_v54 = vmul.f32 %v1209_v44, %v1546_v5 }
  0x29   : > { %1389 = vmatprep.mubr.bf16.mxu1 %v432_v46  ;;  %v433_v56 = vpack.c.bf16 %v411_v47, %v410_v41  ;;  %v414_v57 = vmax.f32 %v382_v50, 0.0  ;;  %v1213_v58 = vunpack.c.l.bf16 %v1315_v45  ;;  %v1214_v59 = vunpack.c.h.bf16 %v1315_v45 }
  0x2a   : > { %v434_v60 = vpack.c.bf16 %v413_v51, %v412_v49  ;;  %v415_v61 = vmax.f32 %v383_v52, 0.0  ;;  %v345_v62 = vmul.f32 %v1210_v53, %v1546_v5  ;;  %v384_v63 = vadd.f32 %v1554_v11, %v344_v54 }
  0x2b   : > { %1390 = vmatmul.mubr.bf16.vlgmr.msra.gmra.mrb[0].mxu1 %v433_v56  ;;  %v346_v0 = vmul.f32 %v1213_v58, %v1546_v5  ;;  %v347_v1 = vmul.f32 %v1214_v59, %v1546_v5  ;;  %v1217_v2 = vunpack.c.l.bf16 %v1316_v55  ;;  %v1218_v3 = vunpack.c.h.bf16 %v1316_v55 }
  0x2c   : > { %v428_v6 = vpack.c.bf16 %v401_v24, %v400_v15  ;;  %v373_v8 = vadd.f32 %v1554_v11, %v1612_v12  ;;  %1393 = vmatprep.mubr.bf16.mxu1 %v434_v60  ;;  %v385_v9 = vadd.f32 %v1554_v11, %v345_v62  ;;  %v416_v14 = vmax.f32 %v384_v63, 0.0 }
  0x2d   : > { %v402_v18 = vmax.f32 %v1609_v10, 0.0  ;;  %v335_v19 = vmul.f32 %v1190_v7, %v1546_v5  ;;  %v348_v21 = vmul.f32 %v1217_v2, %v1546_v5  ;;  %v349_v22 = vmul.f32 %v1218_v3, %v1546_v5 }
  0x2e   : > { %v403_v15 = vmax.f32 %v1619_v16, 0.0  ;;  %v404_v23 = vmax.f32 %v1624_v20, 0.0  ;;  %v435_v12 = vpack.c.bf16 %v415_v61, %v414_v57  ;;  %v417_v24 = vmax.f32 %v385_v9, 0.0 }
  0x2f   : > { %1378 = vmatmul.mubr.bf16.gmra.mrb[4].mxu0 %v1601_v4  ;;  %v386_v25 = vadd.f32 %v1554_v11, %v346_v0  ;;  %v387_v10 = vadd.f32 %v1554_v11, %v347_v1  ;;  %v1221_v26 = vunpack.c.l.bf16 %v1317_v17  ;;  %v1222_v27 = vunpack.c.h.bf16 %v1317_v17 }
  0x30   : > { %1381 = vmatprep.mubr.bf16.mxu0 %v428_v6  ;;  %v405_v48 = vmax.f32 %v373_v8, 0.0  ;;  %v436_v7 = vpack.c.bf16 %v417_v24, %v416_v14  ;;  %v388_v28 = vadd.f32 %v1554_v11, %v348_v21  ;;  %v389_v29 = vadd.f32 %v1554_v11, %v349_v22 }
  0x31   : > { %v429_v16 = vpack.c.bf16 %v403_v15, %v402_v18  ;;  %v374_v20 = vadd.f32 %v1554_v11, %v1615_v13  ;;  %v375_v30 = vadd.f32 %v1554_v11, %v335_v19  ;;  %v418_v4 = vmax.f32 %v386_v25, 0.0 }
  0x32   : > { %v419_v31 = vmax.f32 %v387_v10, 0.0  ;;  %v350_v32 = vmul.f32 %v1221_v26, %v1546_v5  ;;  %v351_v33 = vmul.f32 %v1222_v27, %v1546_v5  ;;  %v430_v34 = vpack.c.bf16 %v405_v48, %v404_v23 }
  0x33   : > { %1394 = vmatmul.mubr.bf16.gmra.mrb[4].mxu1 %v435_v12  ;;  %v420_v35 = vmax.f32 %v388_v28, 0.0  ;;  %v421_v36 = vmax.f32 %v389_v29, 0.0  ;;  %v406_v37 = vmax.f32 %v374_v20, 0.0  ;;  %v407_v38 = vmax.f32 %v375_v30, 0.0 }
  0x34   : > { %1397 = vmatprep.mubr.bf16.mxu1 %v436_v7  ;;  %v437_v39 = vpack.c.bf16 %v419_v31, %v418_v4  ;;  %v390_v13 = vadd.f32 %v1554_v11, %v350_v32  ;;  %v391_v40 = vadd.f32 %v1554_v11, %v351_v33 }
  0x35   : > { %v438_v41 = vpack.c.bf16 %v421_v36, %v420_v35  ;;  %v431_v42 = vpack.c.bf16 %v407_v38, %v406_v37 }
  0x36   : > { %v422_v43 = vmax.f32 %v390_v13, 0.0  ;;  %v423_v44 = vmax.f32 %v391_v40, 0.0 }
  0x37   : > { %1382 = vmatmul.mubr.bf16.gmra.mrb[8].mxu0 %v429_v16 }
  0x38   : > { %1385 = vmatprep.mubr.bf16.mxu0 %v430_v34  ;;  %v439_v5 = vpack.c.bf16 %v423_v44, %v422_v43 }
  0x3b   : > { %1398 = vmatmul.mubr.bf16.gmra.mrb[8].mxu1 %v437_v39 }
  0x3c   : > { %1401 = vmatprep.mubr.bf16.mxu1 %v438_v41 }
  0x3f   : > { %1386 = vmatmul.mubr.bf16.gmra.mrb[12].mxu0 %v431_v42 }
  0x43   : > { %1402 = vmatmul.mubr.bf16.gmra.mrb[12].mxu1 %v439_v5 }
  0xfa   : > { %v1375_v45 = vpop.f32.mrb[0].mxu0 }
  0xfb   : > { %v538_v46 = vpop.f32.mrb[1].mxu0  ;;  %v864_v56 = vmul.f32 %v1375_v45, %v1375_v45 }
  0xfc   : > { %v1376_v11 = vpop.f32.mrb[2].mxu0  ;;  %v862_v50 = vmul.f32 %v538_v46, %v538_v46 }
  0xfd   : > { %v1231_v47 = vpack.c.bf16 %v1376_v11, %v1375_v45  ;;  %v541_v49 = vpop.f32.mrb[3].mxu0  ;;  %v865_v62 = vmul.f32 %v1376_v11, %v1376_v11 }
  0xfe   : > { %v1226_v51 = vpack.c.bf16 %v541_v49, %v538_v46  ;;  %v825_v52 = vadd.f32 %v541_v49, %v538_v46  ;;  %v863_v53 = vmul.f32 %v541_v49, %v541_v49  ;;  %v1681_v54 = vpop.f32.mrb[0].mxu1 }
  0xff   : > { %1318 = vst [vmem:[%s1679_s23 + $0x8] sm:$0xff] %v1231_v47   ;;  %v1684_v55 = vpop.f32.mrb[1].mxu1 }
 0x100   : > { %1227 = vst [vmem:[%s1679_s23] sm:$0xff] %v1226_v51   ;;  %v826_v57 = vadd.f32 %v1375_v45, %v825_v52  ;;  %v894_v58 = vadd.f32 %v863_v53, %v862_v50  ;;  %v1687_v59 = vpop.f32.mrb[2].mxu1 }
 0x101   : > { %v1271_v60 = vpack.c.bf16 %v1687_v59, %v1681_v54  ;;  %v1691_v61 = vpop.f32.mrb[3].mxu1 }
 0x102   : > { %v895_v63 = vadd.f32 %v894_v58, %v864_v56  ;;  %v1379_v0 = vpop.f32.mrb[4].mxu0  ;;  %v827_v1 = vadd.f32 %v1376_v11, %v826_v57  ;;  %v1266_v2 = vpack.c.bf16 %v1691_v61, %v1684_v55 }
 0x103   : > { %v554_v3 = vpop.f32.mrb[5].mxu0  ;;  %1326 = vst [vmem:[%s1679_s23 + $0x48] sm:$0xff] %v1271_v60   ;;  %v868_v24 = vmul.f32 %v1379_v0, %v1379_v0 }
 0x104   : > { %v828_v6 = vadd.f32 %v827_v1, %v554_v3  ;;  %v866_v8 = vmul.f32 %v554_v3, %v554_v3  ;;  %v896_v9 = vadd.f32 %v895_v63, %v865_v62  ;;  %v1380_v14 = vpop.f32.mrb[6].mxu0  ;;  %1325 = vst [vmem:[%s1679_s23 + $0x40] sm:$0xff] %v1266_v2  }
 0x105   : > { %v1241_v17 = vpack.c.bf16 %v1380_v14, %v1379_v0  ;;  %v557_v18 = vpop.f32.mrb[7].mxu0  ;;  %v869_v7 = vmul.f32 %v1380_v14, %v1380_v14 }
 0x106   : > { %v897_v19 = vadd.f32 %v896_v9, %v866_v8  ;;  %v1236_v21 = vpack.c.bf16 %v557_v18, %v554_v3  ;;  %v829_v22 = vadd.f32 %v828_v6, %v557_v18  ;;  %v867_v15 = vmul.f32 %v557_v18, %v557_v18  ;;  %v1697_v23 = vpop.f32.mrb[4].mxu1 }
 0x107   : > { %1320 = vst [vmem:[%s1679_s23 + $0x18] sm:$0xff] %v1241_v17   ;;  %v1700_v12 = vpop.f32.mrb[5].mxu1  ;;  %v878_v17 = vmul.f32 %v1684_v55, %v1684_v55 }
 0x108   : > { %1319 = vst [vmem:[%s1679_s23 + $0x10] sm:$0xff] %v1236_v21   ;;  %v830_v25 = vadd.f32 %v1379_v0, %v829_v22  ;;  %v898_v10 = vadd.f32 %v897_v19, %v867_v15  ;;  %v1703_v26 = vpop.f32.mrb[6].mxu1 }
 0x109   : > { %v1281_v27 = vpack.c.bf16 %v1703_v26, %v1697_v23  ;;  %v1707_v48 = vpop.f32.mrb[7].mxu1 }
 0x10a   : > { %v899_v28 = vadd.f32 %v898_v10, %v868_v24  ;;  %v1383_v29 = vpop.f32.mrb[8].mxu0  ;;  %v831_v16 = vadd.f32 %v1380_v14, %v830_v25  ;;  %v1276_v20 = vpack.c.bf16 %v1707_v48, %v1700_v12 }
 0x10b   : > { %v570_v30 = vpop.f32.mrb[9].mxu0  ;;  %1328 = vst [vmem:[%s1679_s23 + $0x58] sm:$0xff] %v1281_v27   ;;  %v872_v41 = vmul.f32 %v1383_v29, %v1383_v29 }
 0x10c   : > { %v832_v4 = vadd.f32 %v831_v16, %v570_v30  ;;  %v870_v31 = vmul.f32 %v570_v30, %v570_v30  ;;  %v900_v32 = vadd.f32 %v899_v28, %v869_v7  ;;  %v1384_v33 = vpop.f32.mrb[10].mxu0  ;;  %1327 = vst [vmem:[%s1679_s23 + $0x50] sm:$0xff] %v1276_v20   ;;  %v879_v28 = vmul.f32 %v1691_v61, %v1691_v61 }
 0x10d   : > { %v1251_v34 = vpack.c.bf16 %v1384_v33, %v1383_v29  ;;  %v573_v35 = vpop.f32.mrb[11].mxu0  ;;  %v873_v46 = vmul.f32 %v1384_v33, %v1384_v33 }
 0x10e   : > { %v901_v36 = vadd.f32 %v900_v32, %v870_v31  ;;  %v1246_v37 = vpack.c.bf16 %v573_v35, %v570_v30  ;;  %v833_v38 = vadd.f32 %v832_v4, %v573_v35  ;;  %v871_v39 = vmul.f32 %v573_v35, %v573_v35  ;;  %v1713_v13 = vpop.f32.mrb[8].mxu1 }
 0x10f   : > { %1322 = vst [vmem:[%s1679_s23 + $0x28] sm:$0xff] %v1251_v34   ;;  %v1716_v40 = vpop.f32.mrb[9].mxu1  ;;  %v881_v30 = vmul.f32 %v1687_v59, %v1687_v59  ;;  %v882_v31 = vmul.f32 %v1700_v12, %v1700_v12  ;;  %v883_v35 = vmul.f32 %v1707_v48, %v1707_v48 }
 0x110   : > { %1321 = vst [vmem:[%s1679_s23 + $0x20] sm:$0xff] %v1246_v37   ;;  %v834_v42 = vadd.f32 %v1383_v29, %v833_v38  ;;  %v902_v43 = vadd.f32 %v901_v36, %v871_v39  ;;  %v1719_v44 = vpop.f32.mrb[10].mxu1  ;;  %v880_v29 = vmul.f32 %v1681_v54, %v1681_v54 }
 0x111   : > { %v1291_v5 = vpack.c.bf16 %v1719_v44, %v1713_v13  ;;  %v1723_v45 = vpop.f32.mrb[11].mxu1 }
 0x112   : > { %v903_v11 = vadd.f32 %v902_v43, %v872_v41  ;;  %v1387_v47 = vpop.f32.mrb[12].mxu0  ;;  %v835_v49 = vadd.f32 %v1384_v33, %v834_v42  ;;  %v1286_v50 = vpack.c.bf16 %v1723_v45, %v1716_v40 }
 0x113   : > { %v586_v51 = vpop.f32.mrb[13].mxu0  ;;  %1330 = vst [vmem:[%s1679_s23 + $0x68] sm:$0xff] %v1291_v5   ;;  %v876_v6 = vmul.f32 %v1387_v47, %v1387_v47  ;;  %v887_v5 = vmul.f32 %v1723_v45, %v1723_v45 }
 0x114   : > { %v836_v52 = vadd.f32 %v835_v49, %v586_v51  ;;  %v874_v53 = vmul.f32 %v586_v51, %v586_v51  ;;  %v904_v56 = vadd.f32 %v903_v11, %v873_v46  ;;  %v1388_v57 = vpop.f32.mrb[14].mxu0  ;;  %1329 = vst [vmem:[%s1679_s23 + $0x60] sm:$0xff] %v1286_v50  }
 0x115   : > { %v1261_v58 = vpack.c.bf16 %v1388_v57, %v1387_v47  ;;  %v589_v60 = vpop.f32.mrb[15].mxu0  ;;  %v877_v21 = vmul.f32 %v1388_v57, %v1388_v57 }
 0x116   : > { %v905_v62 = vadd.f32 %v904_v56, %v874_v53  ;;  %v1256_v63 = vpack.c.bf16 %v589_v60, %v586_v51  ;;  %v837_v0 = vadd.f32 %v836_v52, %v589_v60  ;;  %v875_v1 = vmul.f32 %v589_v60, %v589_v60  ;;  %v1403_v2 = vpop.f32.mrb[12].mxu1 }
 0x117   : > { %1324 = vst [vmem:[%s1679_s23 + $0x38] sm:$0xff] %v1261_v58   ;;  %v650_v3 = vpop.f32.mrb[13].mxu1 }
 0x118   : > { %1323 = vst [vmem:[%s1679_s23 + $0x30] sm:$0xff] %v1256_v63   ;;  %v838_v8 = vadd.f32 %v1387_v47, %v837_v0  ;;  %v906_v9 = vadd.f32 %v905_v62, %v875_v1  ;;  %v1404_v14 = vpop.f32.mrb[14].mxu1 }
 0x119   : > { %v1301_v18 = vpack.c.bf16 %v1404_v14, %v1403_v2  ;;  %v653_v19 = vpop.f32.mrb[15].mxu1  ;;  %v893_v60 = vmul.f32 %v1404_v14, %v1404_v14 }
 0x11a   : > { %v907_v22 = vadd.f32 %v906_v9, %v876_v6  ;;  %v839_v15 = vadd.f32 %v1388_v57, %v838_v8  ;;  %v1296_v24 = vpack.c.bf16 %v653_v19, %v650_v3  ;;  %v891_v56 = vmul.f32 %v653_v19, %v653_v19 }
 0x11b   : > { %1332 = vst [vmem:[%s1679_s23 + $0x78] sm:$0xff] %v1301_v18  }
 0x11c   : > { %v840_v25 = vadd.f32 %v839_v15, %v1684_v55  ;;  %v908_v10 = vadd.f32 %v907_v22, %v877_v21  ;;  %1331 = vst [vmem:[%s1679_s23 + $0x70] sm:$0xff] %v1296_v24  }
 0x11e   : > { %v909_v27 = vadd.f32 %v908_v10, %v878_v17  ;;  %v841_v7 = vadd.f32 %v840_v25, %v1691_v61 }
 0x120   : > { %v842_v16 = vadd.f32 %v1681_v54, %v841_v7  ;;  %v910_v20 = vadd.f32 %v909_v27, %v879_v28  ;;  %v884_v54 = vmul.f32 %v1697_v23, %v1697_v23 }
 0x122   : > { %v911_v4 = vadd.f32 %v910_v20, %v880_v29  ;;  %v843_v55 = vadd.f32 %v1687_v59, %v842_v16  ;;  %v885_v59 = vmul.f32 %v1703_v26, %v1703_v26 }
 0x124   : > { %v844_v32 = vadd.f32 %v843_v55, %v1700_v12  ;;  %v912_v33 = vadd.f32 %v911_v4, %v881_v30  ;;  %v886_v12 = vmul.f32 %v1716_v40, %v1716_v40 }
 0x126   : > { %v913_v34 = vadd.f32 %v912_v33, %v882_v31  ;;  %v845_v61 = vadd.f32 %v844_v32, %v1707_v48 }
 0x128   : > { %v846_v36 = vadd.f32 %v1697_v23, %v845_v61  ;;  %v914_v37 = vadd.f32 %v913_v34, %v883_v35  ;;  %v888_v23 = vmul.f32 %v1713_v13, %v1713_v13 }
 0x12a   : > { %v915_v38 = vadd.f32 %v914_v37, %v884_v54  ;;  %v847_v39 = vadd.f32 %v1703_v26, %v846_v36  ;;  %v889_v26 = vmul.f32 %v1719_v44, %v1719_v44 }
 0x12c   : > { %v848_v41 = vadd.f32 %v847_v39, %v1716_v40  ;;  %v916_v42 = vadd.f32 %v915_v38, %v885_v59  ;;  %v890_v40 = vmul.f32 %v650_v3, %v650_v3 }
 0x12e   : > { %v917_v43 = vadd.f32 %v916_v42, %v886_v12  ;;  %v849_v48 = vadd.f32 %v848_v41, %v1723_v45  ;;  %v892_v45 = vmul.f32 %v1403_v2, %v1403_v2 }
 0x130   : > { %v850_v46 = vadd.f32 %v1713_v13, %v849_v48  ;;  %v918_v11 = vadd.f32 %v917_v43, %v887_v5 }
 0x132   : > { %v919_v47 = vadd.f32 %v918_v11, %v888_v23  ;;  %v851_v49 = vadd.f32 %v1719_v44, %v850_v46 }
 0x134   : > { %v852_v50 = vadd.f32 %v851_v49, %v650_v3  ;;  %v920_v51 = vadd.f32 %v919_v47, %v889_v26 }
 0x136   : > { %v921_v52 = vadd.f32 %v920_v51, %v890_v40  ;;  %v853_v53 = vadd.f32 %v852_v50, %v653_v19 }
 0x138   : > { %v854_v57 = vadd.f32 %v1403_v2, %v853_v53  ;;  %v922_v58 = vadd.f32 %v921_v52, %v891_v56 }
 0x13a   : > { %v855_v62 = vadd.f32 %v1404_v14, %v854_v57  ;;  %v923_v13 = vadd.f32 %v922_v58, %v892_v45 }
 0x13c   : > { %v856_v63 = vrot.slane %v855_v62, 4  ;;  %v924_v0 = vadd.f32 %v923_v13, %v893_v60 }
 0x13e   : > { %v857_v1 = vadd.f32 %v856_v63, %v855_v62  ;;  %v925_v6 = vrot.slane %v924_v0, 4 }
 0x140   : > { %v858_v8 = vrot.slane %v857_v1, 2  ;;  %v926_v9 = vadd.f32 %v925_v6, %v924_v0 }
 0x142   : > { %v859_v44 = vadd.f32 %v858_v8, %v857_v1  ;;  %v927_v3 = vrot.slane %v926_v9, 2 }
 0x144   : > { %v860_v17 = vrot.slane %v859_v44, 1  ;;  %v928_v18 = vadd.f32 %v927_v3, %v926_v9 }
 0x146   : > { %v861_v2 = vadd.f32 %v860_v17, %v859_v44  ;;  %v929_v19 = vrot.slane %v928_v18, 1 }
 0x148   : > { %v930_v21 = vadd.f32 %v929_v19, %v928_v18  ;;  %935 = vst [vmem:[%s247_s27] sm:$0x1] %v861_v2 }
 0x14a   : > { %1120 = vst [vmem:[%s247_s27 + $0x1] sm:$0x1] %v930_v21 }
 0x14b PF: > { %s15_s17 = sadd.s32 1, %s1475_s17   ;;  %s1787_s15 = smov %s1471_s16 }
 0x14c   : > { %p12_p5 = scmp.ge.s32.totalorder %s15_s17, 4   ;;  %s1788_s16 = smov %s1790_s18 }
 0x14e   :  { %14 = sbr.rel (!%p12_p5) target bundleno = 2 (0x2), region = 85 }

// kernel: mobilenetv2_block.4
= control target key start
LH: loop header
LB: loop body
LE: loop exit
PB: predicated region body
PF: predicated region fallthrough
CT: control target
= control target key end

     0   :  { %s1878_s15 = smov 0   ;;  %s1880_s16 = smov 0   ;;  %s2252_s0 = inlined_call_operand.vmem [shape: f32[2,256,128], index: 0, kind: input, shape index: {}]   ;;  %s2253_s1 = inlined_call_operand.vmem [shape: bf16[128,256], index: 1, kind: input, shape index: {}]   ;;  %s2254_s2 = inlined_call_operand.vmem [shape: bf16[2,256,128], index: 2, kind: output, shape index: {0}]   ;;  %s2255_s3 = inlined_call_operand.vmem [shape: bf16[2,256,128], index: 3, kind: output, shape index: {1}]   ;;  %s2256_s4 = inlined_call_operand.vmem [shape: f32[2,2,1,256], index: 4, kind: output, shape index: {2}]  }
   0x1   :  { %s1882_s17 = smov 0  }
   0x2 LB: > { %s27_s18 = sadd.s32 1, %s1845_s16  ;;  %p1411_p0 = scmp.ge.s32.totalorder %s1849_s17, 1  ;;  %s1849_s17 = sphi %s1882_s17, %s15_s17   ;;  %s1845_s16 = sphi %s1880_s16, %s2258_s16   ;;  %s1841_s15 = sphi %s1878_s15, %s2257_s15  }
   0x3   : > { %p29_p1 = scmp.ge.s32.totalorder %s27_s18, 2  ;;  %p190_p2 = scmp.lt.s32.totalorder %s1849_s17, 3 }
   0x5   : > { %s2260_s18 = smov (%p29_p1, %s27_s18), 0  ;;  %p191_p3 = pnand %p1411_p0, %p190_p2 }
   0x6   : > { %v1803_v0 = vld [vmem:[%s2253_s1 + $0x4] ss:$8 sps:$4 sm:$0xff] (!%p191_p3)   ;;  %v1805_v1 = vld [vmem:[%s2253_s1] ss:$8 sps:$4 sm:$0xff] (!%p191_p3)   ;;  %v1851_v2 = vmov (!%p191_p3), 0   ;;  %p238_p4 = scmp.lt.s32.totalorder (!%p191_p3), %s1841_s15, 1 }
   0x7   : > { %194 = sbr.rel (%p191_p3) target bundleno = 366 (0x16e), region = 28  ;;  %448 = vmatprep.mubr.bf16.mxu0 (!%p191_p3), %v1851_v2  ;;  %528 = vmatprep.mubr.bf16.mxu1 (!%p191_p3), %v1851_v2  ;;  %v1806_v3 = vld [vmem:[%s2253_s1 + $0x14] ss:$8 sps:$4 sm:$0xff] (!%p191_p3)   ;;  %v1808_v4 = vld [vmem:[%s2253_s1 + $0x10] ss:$8 sps:$4 sm:$0xff] (!%p191_p3)  }
   0x8   : > { %416 = vmatprep.subr.bf16.mxu0 (!%p191_p3), %v1803_v0  ;;  %1761 = vmatprep.subr.bf16.mxu1 (!%p191_p3), %v1803_v0  ;;  %v1809_v5 = vld [vmem:[%s2253_s1 + $0x24] ss:$8 sps:$4 sm:$0xff] (!%p191_p3)   ;;  %v1811_v6 = vld [vmem:[%s2253_s1 + $0x20] ss:$8 sps:$4 sm:$0xff] (!%p191_p3)   ;;  %v1812_v7 = vld [vmem:[%s2253_s1 + $0x34] ss:$8 sps:$4 sm:$0xff] (!%p191_p3)  }
   0x9   : > { %417 = vmatpush1.bf16.msra.mxu0 (!%p191_p3), %v1805_v1  ;;  %1769 = vmatpush1.bf16.msra.mxu1 (!%p191_p3), %v1805_v1  ;;  %v1814_v8 = vld [vmem:[%s2253_s1 + $0x30] ss:$8 sps:$4 sm:$0xff] (!%p191_p3)   ;;  %v1815_v9 = vld [vmem:[%s2253_s1 + $0x44] ss:$8 sps:$4 sm:$0xff] (!%p191_p3)   ;;  %v1817_v10 = vld [vmem:[%s2253_s1 + $0x40] ss:$8 sps:$4 sm:$0xff] (!%p191_p3)  }
   0xa   : > { %418 = vmatprep.subr.bf16.mxu0 (!%p191_p3), %v1806_v3  ;;  %1762 = vmatprep.subr.bf16.mxu1 (!%p191_p3), %v1806_v3  ;;  %v1818_v11 = vld [vmem:[%s2253_s1 + $0x54] ss:$8 sps:$4 sm:$0xff] (!%p191_p3)   ;;  %v1820_v12 = vld [vmem:[%s2253_s1 + $0x50] ss:$8 sps:$4 sm:$0xff] (!%p191_p3)   ;;  %v1821_v13 = vld [vmem:[%s2253_s1 + $0x64] ss:$8 sps:$4 sm:$0xff] (!%p191_p3)  }
   0xb   : > { %v1823_v14 = vld [vmem:[%s2253_s1 + $0x60] ss:$8 sps:$4 sm:$0xff] (!%p191_p3)   ;;  %v1824_v15 = vld [vmem:[%s2253_s1 + $0x74] ss:$8 sps:$4 sm:$0xff] (!%p191_p3)   ;;  %v1826_v16 = vld [vmem:[%s2253_s1 + $0x70] ss:$8 sps:$4 sm:$0xff] (!%p191_p3)  }
   0xd   : > { %419 = vmatpush1.bf16.msra.mxu0 (!%p191_p3), %v1808_v4  ;;  %1770 = vmatpush1.bf16.msra.mxu1 (!%p191_p3), %v1808_v4 }
   0xe   : > { %420 = vmatprep.subr.bf16.mxu0 %v1809_v5  ;;  %1763 = vmatprep.subr.bf16.mxu1 %v1809_v5  ;;  %s2262_s15 = smov (!%p238_p4, %s1841_s15), 1 }
   0xf   : > { %s1504_s23 = sshll.u32 %s2262_s15, 8  ;;  %s1505_s7 = sshll.u32 %s2262_s15, 7 }
  0x10   : > { %s1950_s28 = scalar_lea.vmem %s2252_s0, %s1504_s23  ;;  %s2012_s10 = scalar_lea.vmem %s2254_s2, %s1505_s7 }
  0x11   : > { %421 = vmatpush1.bf16.msra.mxu0 %v1811_v6  ;;  %1771 = vmatpush1.bf16.msra.mxu1 %v1811_v6  ;;  %v272_v17 = vld [vmem:[%s1950_s28] sm:$0xff]  ;;  %v273_v18 = vld [vmem:[%s1950_s28 + $0x8] sm:$0xff]  ;;  %v274_v23 = vld [vmem:[%s1950_s28 + $0x10] sm:$0xff]  ;;  %s2019_s13 = scalar_lea.vmem %s2255_s3, %s1505_s7  ;;  %s1418_s14 = sshll.u32 %s2262_s15, 2 }
  0x12   : > { %422 = vmatprep.subr.bf16.mxu0 %v1812_v7  ;;  %1764 = vmatprep.subr.bf16.mxu1 %v1812_v7  ;;  %v288_v19 = vld [vmem:[%s1950_s28 + $0x80] sm:$0xff]  ;;  %v289_v20 = vld [vmem:[%s1950_s28 + $0x88] sm:$0xff]  ;;  %v304_v21 = vpack.c.bf16 %v273_v18, %v272_v17  ;;  %v275_v24 = vld [vmem:[%s1950_s28 + $0x18] sm:$0xff]  ;;  %s270_s21 = scalar_lea.vmem %s2256_s4, %s1418_s14 }
  0x13   : > { %v312_v22 = vpack.c.bf16 %v289_v20, %v288_v19  ;;  %v290_v25 = vld [vmem:[%s1950_s28 + $0x90] sm:$0xff]  ;;  %v291_v26 = vld [vmem:[%s1950_s28 + $0x98] sm:$0xff]  ;;  %v305_v27 = vpack.c.bf16 %v275_v24, %v274_v23  ;;  %v276_v29 = vld [vmem:[%s1950_s28 + $0x20] sm:$0xff] }
  0x14   : > { %v313_v28 = vpack.c.bf16 %v291_v26, %v290_v25  ;;  %v277_v30 = vld [vmem:[%s1950_s28 + $0x28] sm:$0xff]  ;;  %v292_v31 = vld [vmem:[%s1950_s28 + $0xa0] sm:$0xff]  ;;  %v278_v35 = vld [vmem:[%s1950_s28 + $0x30] sm:$0xff] }
  0x15   : > { %423 = vmatpush1.bf16.msra.mxu0 %v1814_v8  ;;  %1772 = vmatpush1.bf16.msra.mxu1 %v1814_v8  ;;  %v293_v32 = vld [vmem:[%s1950_s28 + $0xa8] sm:$0xff]  ;;  %v306_v33 = vpack.c.bf16 %v277_v30, %v276_v29  ;;  %v279_v36 = vld [vmem:[%s1950_s28 + $0x38] sm:$0xff]  ;;  %v294_v37 = vld [vmem:[%s1950_s28 + $0xb0] sm:$0xff] }
  0x16   : > { %424 = vmatprep.subr.bf16.mxu0 %v1815_v9  ;;  %1765 = vmatprep.subr.bf16.mxu1 %v1815_v9  ;;  %v314_v34 = vpack.c.bf16 %v293_v32, %v292_v31  ;;  %v295_v38 = vld [vmem:[%s1950_s28 + $0xb8] sm:$0xff]  ;;  %v307_v39 = vpack.c.bf16 %v279_v36, %v278_v35  ;;  %v280_v41 = vld [vmem:[%s1950_s28 + $0x40] sm:$0xff]  ;;  %v281_v42 = vld [vmem:[%s1950_s28 + $0x48] sm:$0xff] }
  0x17   : > { %v315_v40 = vpack.c.bf16 %v295_v38, %v294_v37  ;;  %v296_v43 = vld [vmem:[%s1950_s28 + $0xc0] sm:$0xff]  ;;  %v297_v44 = vld [vmem:[%s1950_s28 + $0xc8] sm:$0xff]  ;;  %v308_v45 = vpack.c.bf16 %v281_v42, %v280_v41  ;;  %v282_v47 = vld [vmem:[%s1950_s28 + $0x50] sm:$0xff] }
  0x18   : > { %v316_v46 = vpack.c.bf16 %v297_v44, %v296_v43  ;;  %v283_v48 = vld [vmem:[%s1950_s28 + $0x58] sm:$0xff]  ;;  %v298_v49 = vld [vmem:[%s1950_s28 + $0xd0] sm:$0xff]  ;;  %v284_v53 = vld [vmem:[%s1950_s28 + $0x60] sm:$0xff] }
  0x19   : > { %425 = vmatpush1.bf16.msra.mxu0 %v1817_v10  ;;  %1773 = vmatpush1.bf16.msra.mxu1 %v1817_v10  ;;  %v299_v50 = vld [vmem:[%s1950_s28 + $0xd8] sm:$0xff]  ;;  %v309_v51 = vpack.c.bf16 %v283_v48, %v282_v47  ;;  %v285_v54 = vld [vmem:[%s1950_s28 + $0x68] sm:$0xff]  ;;  %v300_v55 = vld [vmem:[%s1950_s28 + $0xe0] sm:$0xff] }
  0x1a   : > { %426 = vmatprep.subr.bf16.mxu0 %v1818_v11  ;;  %1766 = vmatprep.subr.bf16.mxu1 %v1818_v11  ;;  %v317_v52 = vpack.c.bf16 %v299_v50, %v298_v49  ;;  %v301_v56 = vld [vmem:[%s1950_s28 + $0xe8] sm:$0xff]  ;;  %v310_v57 = vpack.c.bf16 %v285_v54, %v284_v53  ;;  %v286_v59 = vld [vmem:[%s1950_s28 + $0x70] sm:$0xff]  ;;  %v287_v60 = vld [vmem:[%s1950_s28 + $0x78] sm:$0xff] }
  0x1b   : > { %v318_v58 = vpack.c.bf16 %v301_v56, %v300_v55  ;;  %v302_v61 = vld [vmem:[%s1950_s28 + $0xf0] sm:$0xff]  ;;  %v303_v62 = vld [vmem:[%s1950_s28 + $0xf8] sm:$0xff]  ;;  %v311_v63 = vpack.c.bf16 %v287_v60, %v286_v59 }
  0x1c   : > { %v319_v0 = vpack.c.bf16 %v303_v62, %v302_v61 }
  0x1d   : > { %427 = vmatpush1.bf16.msra.mxu0 %v1820_v12  ;;  %1774 = vmatpush1.bf16.msra.mxu1 %v1820_v12 }
  0x1e   : > { %428 = vmatprep.subr.bf16.mxu0 %v1821_v13  ;;  %1767 = vmatprep.subr.bf16.mxu1 %v1821_v13 }
  0x21   : > { %429 = vmatpush1.bf16.msra.mxu0 %v1823_v14  ;;  %1775 = vmatpush1.bf16.msra.mxu1 %v1823_v14 }
  0x22   : > { %430 = vmatprep.subr.bf16.mxu0 %v1824_v15  ;;  %1768 = vmatprep.subr.bf16.mxu1 %v1824_v15 }
  0x25   : > { %431 = vmatpush1.bf16.msra.mxu0 %v1826_v16  ;;  %1776 = vmatpush1.bf16.msra.mxu1 %v1826_v16 }
  0x28   : > { %449 = vmatmul.mubr.bf16.vlgmr.msra.gmra.mrb[0].mxu0 %v304_v21  ;;  %529 = vmatmul.mubr.bf16.vlgmr.msra.gmra.mrb[0].mxu1 %v312_v22 }
  0x29   : > { %458 = vmatprep.mubr.bf16.mxu0 %v1851_v2  ;;  %538 = vmatprep.mubr.bf16.mxu1 %v1851_v2 }
  0x30   : > { %459 = vmatmul.mubr.bf16.gmra.mrb[4].mxu0 %v305_v27  ;;  %539 = vmatmul.mubr.bf16.gmra.mrb[4].mxu1 %v313_v28 }
  0x31   : > { %468 = vmatprep.mubr.bf16.mxu0 %v1851_v2  ;;  %548 = vmatprep.mubr.bf16.mxu1 %v1851_v2 }
  0x38   : > { %469 = vmatmul.mubr.bf16.gmra.mrb[8].mxu0 %v306_v33  ;;  %549 = vmatmul.mubr.bf16.gmra.mrb[8].mxu1 %v314_v34 }
  0x39   : > { %478 = vmatprep.mubr.bf16.mxu0 %v1851_v2  ;;  %558 = vmatprep.mubr.bf16.mxu1 %v1851_v2 }
  0x40   : > { %479 = vmatmul.mubr.bf16.gmra.mrb[12].mxu0 %v307_v39  ;;  %559 = vmatmul.mubr.bf16.gmra.mrb[12].mxu1 %v315_v40 }
  0x41   : > { %488 = vmatprep.mubr.bf16.mxu0 %v1851_v2  ;;  %568 = vmatprep.mubr.bf16.mxu1 %v1851_v2 }
  0x48   : > { %489 = vmatmul.mubr.bf16.gmra.mrb[16].mxu0 %v308_v45  ;;  %569 = vmatmul.mubr.bf16.gmra.mrb[16].mxu1 %v316_v46 }
  0x49   : > { %498 = vmatprep.mubr.bf16.mxu0 %v1851_v2  ;;  %578 = vmatprep.mubr.bf16.mxu1 %v1851_v2 }
  0x50   : > { %499 = vmatmul.mubr.bf16.gmra.mrb[20].mxu0 %v309_v51  ;;  %579 = vmatmul.mubr.bf16.gmra.mrb[20].mxu1 %v317_v52 }
  0x51   : > { %508 = vmatprep.mubr.bf16.mxu0 %v1851_v2  ;;  %588 = vmatprep.mubr.bf16.mxu1 %v1851_v2 }
  0x58   : > { %509 = vmatmul.mubr.bf16.gmra.mrb[24].mxu0 %v310_v57  ;;  %589 = vmatmul.mubr.bf16.gmra.mrb[24].mxu1 %v318_v58 }
  0x59   : > { %518 = vmatprep.mubr.bf16.mxu0 %v1851_v2  ;;  %598 = vmatprep.mubr.bf16.mxu1 %v1851_v2 }
  0x60   : > { %519 = vmatmul.mubr.bf16.gmra.mrb[28].mxu0 %v311_v63  ;;  %599 = vmatmul.mubr.bf16.gmra.mrb[28].mxu1 %v319_v0 }
  0xfb   : > { %v450_v1 = vpop.f32.mrb[0].mxu0  ;;  %v2005_v3 = vpop.f32.mrb[0].mxu1 }
  0xfc   : > { %v452_v4 = vpop.f32.mrb[1].mxu0  ;;  %v2007_v5 = vpop.f32.mrb[1].mxu1  ;;  %v1003_v6 = vmul.f32 %v450_v1, %v450_v1 }
  0xfd   : > { %v454_v2 = vpop.f32.mrb[2].mxu0  ;;  %v2014_v7 = vpop.f32.mrb[2].mxu1  ;;  %v1004_v14 = vmul.f32 %v452_v4, %v452_v4 }
  0xfe   : > { %v1574_v8 = vpack.c.bf16 %v454_v2, %v450_v1  ;;  %v929_v9 = vadd.f32 %v454_v2, %v450_v1  ;;  %v1005_v10 = vmul.f32 %v454_v2, %v454_v2  ;;  %v456_v11 = vpop.f32.mrb[3].mxu0  ;;  %v1614_v12 = vpack.c.bf16 %v2014_v7, %v2005_v3  ;;  %v2023_v13 = vpop.f32.mrb[3].mxu1 }
  0xff   : > { %v1654_v15 = vpack.c.bf16 %v456_v11, %v452_v4  ;;  %v966_v16 = vadd.f32 %v456_v11, %v452_v4  ;;  %v1006_v17 = vmul.f32 %v456_v11, %v456_v11  ;;  %v1694_v19 = vpack.c.bf16 %v2023_v13, %v2007_v5 }
 0x100   : > { %1575 = vst [vmem:[%s2012_s10] sm:$0xff] %v1574_v8   ;;  %v1067_v18 = vadd.f32 %v1005_v10, %v1003_v6  ;;  %1738 = vst [vmem:[%s2012_s10 + $0x40] sm:$0xff] %v1614_v12  }
 0x101   : > { %1655 = vst [vmem:[%s2019_s13] sm:$0xff] %v1654_v15   ;;  %v1104_v20 = vadd.f32 %v1006_v17, %v1004_v14  ;;  %1753 = vst [vmem:[%s2019_s13 + $0x40] sm:$0xff] %v1694_v19  }
 0x103   : > { %v460_v21 = vpop.f32.mrb[4].mxu0  ;;  %v2031_v22 = vpop.f32.mrb[4].mxu1 }
 0x104   : > { %v930_v23 = vadd.f32 %v929_v9, %v460_v21  ;;  %v1007_v24 = vmul.f32 %v460_v21, %v460_v21  ;;  %v462_v25 = vpop.f32.mrb[5].mxu0  ;;  %v2033_v26 = vpop.f32.mrb[5].mxu1 }
 0x105   : > { %v967_v27 = vadd.f32 %v966_v16, %v462_v25  ;;  %v1008_v28 = vmul.f32 %v462_v25, %v462_v25  ;;  %v464_v29 = vpop.f32.mrb[6].mxu0  ;;  %v2035_v30 = vpop.f32.mrb[6].mxu1 }
 0x106   : > { %v1068_v31 = vadd.f32 %v1067_v18, %v1007_v24  ;;  %v1579_v32 = vpack.c.bf16 %v464_v29, %v460_v21  ;;  %v931_v33 = vadd.f32 %v930_v23, %v464_v29  ;;  %v1009_v34 = vmul.f32 %v464_v29, %v464_v29  ;;  %v466_v35 = vpop.f32.mrb[7].mxu0  ;;  %v2037_v36 = vpop.f32.mrb[7].mxu1 }
 0x107   : > { %v1105_v37 = vadd.f32 %v1104_v20, %v1008_v28  ;;  %v1659_v38 = vpack.c.bf16 %v466_v35, %v462_v25  ;;  %v968_v39 = vadd.f32 %v967_v27, %v466_v35  ;;  %v1010_v40 = vmul.f32 %v466_v35, %v466_v35 }
 0x108   : > { %1731 = vst [vmem:[%s2012_s10 + $0x8] sm:$0xff] %v1579_v32   ;;  %v1069_v41 = vadd.f32 %v1068_v31, %v1009_v34  ;;  %v1619_v42 = vpack.c.bf16 %v2035_v30, %v2031_v22  ;;  %v1699_v43 = vpack.c.bf16 %v2037_v36, %v2033_v26 }
 0x109   : > { %1746 = vst [vmem:[%s2019_s13 + $0x8] sm:$0xff] %v1659_v38   ;;  %v1106_v44 = vadd.f32 %v1105_v37, %v1010_v40 }
 0x10a   : > { %1739 = vst [vmem:[%s2012_s10 + $0x48] sm:$0xff] %v1619_v42   ;;  %1754 = vst [vmem:[%s2019_s13 + $0x48] sm:$0xff] %v1699_v43  }
 0x10b   : > { %v470_v45 = vpop.f32.mrb[8].mxu0  ;;  %v2047_v46 = vpop.f32.mrb[8].mxu1 }
 0x10c   : > { %v932_v47 = vadd.f32 %v931_v33, %v470_v45  ;;  %v1011_v48 = vmul.f32 %v470_v45, %v470_v45  ;;  %v472_v49 = vpop.f32.mrb[9].mxu0  ;;  %v2049_v50 = vpop.f32.mrb[9].mxu1 }
 0x10d   : > { %v969_v51 = vadd.f32 %v968_v39, %v472_v49  ;;  %v1012_v52 = vmul.f32 %v472_v49, %v472_v49  ;;  %v474_v53 = vpop.f32.mrb[10].mxu0  ;;  %v2051_v54 = vpop.f32.mrb[10].mxu1 }
 0x10e   : > { %v1070_v55 = vadd.f32 %v1069_v41, %v1011_v48  ;;  %v1584_v56 = vpack.c.bf16 %v474_v53, %v470_v45  ;;  %v933_v57 = vadd.f32 %v932_v47, %v474_v53  ;;  %v1013_v58 = vmul.f32 %v474_v53, %v474_v53  ;;  %v476_v59 = vpop.f32.mrb[11].mxu0  ;;  %v2053_v60 = vpop.f32.mrb[11].mxu1 }
 0x10f   : > { %v1107_v61 = vadd.f32 %v1106_v44, %v1012_v52  ;;  %v1664_v62 = vpack.c.bf16 %v476_v59, %v472_v49  ;;  %v970_v63 = vadd.f32 %v969_v51, %v476_v59  ;;  %v1014_v0 = vmul.f32 %v476_v59, %v476_v59 }
 0x110   : > { %1732 = vst [vmem:[%s2012_s10 + $0x10] sm:$0xff] %v1584_v56   ;;  %v1071_v1 = vadd.f32 %v1070_v55, %v1013_v58  ;;  %v1624_v4 = vpack.c.bf16 %v2051_v54, %v2047_v46  ;;  %v1704_v6 = vpack.c.bf16 %v2053_v60, %v2049_v50 }
 0x111   : > { %1747 = vst [vmem:[%s2019_s13 + $0x10] sm:$0xff] %v1664_v62   ;;  %v1108_v2 = vadd.f32 %v1107_v61, %v1014_v0 }
 0x112   : > { %1740 = vst [vmem:[%s2012_s10 + $0x50] sm:$0xff] %v1624_v4   ;;  %1755 = vst [vmem:[%s2019_s13 + $0x50] sm:$0xff] %v1704_v6  }
 0x113   : > { %v480_v8 = vpop.f32.mrb[12].mxu0  ;;  %v2063_v9 = vpop.f32.mrb[12].mxu1 }
 0x114   : > { %v934_v10 = vadd.f32 %v933_v57, %v480_v8  ;;  %v1015_v11 = vmul.f32 %v480_v8, %v480_v8  ;;  %v482_v12 = vpop.f32.mrb[13].mxu0  ;;  %v2065_v14 = vpop.f32.mrb[13].mxu1 }
 0x115   : > { %v971_v15 = vadd.f32 %v970_v63, %v482_v12  ;;  %v1016_v16 = vmul.f32 %v482_v12, %v482_v12  ;;  %v484_v17 = vpop.f32.mrb[14].mxu0  ;;  %v2067_v18 = vpop.f32.mrb[14].mxu1 }
 0x116   : > { %v1072_v19 = vadd.f32 %v1071_v1, %v1015_v11  ;;  %v1589_v20 = vpack.c.bf16 %v484_v17, %v480_v8  ;;  %v935_v21 = vadd.f32 %v934_v10, %v484_v17  ;;  %v1017_v23 = vmul.f32 %v484_v17, %v484_v17  ;;  %v486_v24 = vpop.f32.mrb[15].mxu0  ;;  %v2069_v25 = vpop.f32.mrb[15].mxu1 }
 0x117   : > { %v1109_v27 = vadd.f32 %v1108_v2, %v1016_v16  ;;  %v1669_v28 = vpack.c.bf16 %v486_v24, %v482_v12  ;;  %v972_v29 = vadd.f32 %v971_v15, %v486_v24  ;;  %v1018_v31 = vmul.f32 %v486_v24, %v486_v24 }
 0x118   : > { %1733 = vst [vmem:[%s2012_s10 + $0x18] sm:$0xff] %v1589_v20   ;;  %v1073_v32 = vadd.f32 %v1072_v19, %v1017_v23  ;;  %v1629_v33 = vpack.c.bf16 %v2067_v18, %v2063_v9  ;;  %v1709_v34 = vpack.c.bf16 %v2069_v25, %v2065_v14 }
 0x119   : > { %1748 = vst [vmem:[%s2019_s13 + $0x18] sm:$0xff] %v1669_v28   ;;  %v1110_v35 = vadd.f32 %v1109_v27, %v1018_v31 }
 0x11a   : > { %1741 = vst [vmem:[%s2012_s10 + $0x58] sm:$0xff] %v1629_v33   ;;  %1756 = vst [vmem:[%s2019_s13 + $0x58] sm:$0xff] %v1709_v34  }
 0x11b   : > { %v490_v37 = vpop.f32.mrb[16].mxu0  ;;  %v2079_v38 = vpop.f32.mrb[16].mxu1 }
 0x11c   : > { %v936_v39 = vadd.f32 %v935_v21, %v490_v37  ;;  %v1019_v40 = vmul.f32 %v490_v37, %v490_v37  ;;  %v492_v41 = vpop.f32.mrb[17].mxu0  ;;  %v2081_v42 = vpop.f32.mrb[17].mxu1 }
 0x11d   : > { %v973_v43 = vadd.f32 %v972_v29, %v492_v41  ;;  %v1020_v44 = vmul.f32 %v492_v41, %v492_v41  ;;  %v494_v45 = vpop.f32.mrb[18].mxu0  ;;  %v2083_v47 = vpop.f32.mrb[18].mxu1 }
 0x11e   : > { %v1074_v48 = vadd.f32 %v1073_v32, %v1019_v40  ;;  %v1594_v49 = vpack.c.bf16 %v494_v45, %v490_v37  ;;  %v937_v51 = vadd.f32 %v936_v39, %v494_v45  ;;  %v1021_v52 = vmul.f32 %v494_v45, %v494_v45  ;;  %v496_v53 = vpop.f32.mrb[19].mxu0  ;;  %v2085_v55 = vpop.f32.mrb[19].mxu1 }
 0x11f   : > { %v1111_v56 = vadd.f32 %v1110_v35, %v1020_v44  ;;  %v1674_v57 = vpack.c.bf16 %v496_v53, %v492_v41  ;;  %v974_v58 = vadd.f32 %v973_v43, %v496_v53  ;;  %v1022_v59 = vmul.f32 %v496_v53, %v496_v53 }
 0x120   : > { %1734 = vst [vmem:[%s2012_s10 + $0x20] sm:$0xff] %v1594_v49   ;;  %v1075_v61 = vadd.f32 %v1074_v48, %v1021_v52  ;;  %v1634_v62 = vpack.c.bf16 %v2083_v47, %v2079_v38  ;;  %v1714_v63 = vpack.c.bf16 %v2085_v55, %v2081_v42 }
 0x121   : > { %1749 = vst [vmem:[%s2019_s13 + $0x20] sm:$0xff] %v1674_v57   ;;  %v1112_v0 = vadd.f32 %v1111_v56, %v1022_v59 }
 0x122   : > { %1742 = vst [vmem:[%s2012_s10 + $0x60] sm:$0xff] %v1634_v62   ;;  %1757 = vst [vmem:[%s2019_s13 + $0x60] sm:$0xff] %v1714_v63  }
 0x123   : > { %v500_v1 = vpop.f32.mrb[20].mxu0  ;;  %v2095_v4 = vpop.f32.mrb[20].mxu1 }
 0x124   : > { %v938_v6 = vadd.f32 %v937_v51, %v500_v1  ;;  %v1023_v2 = vmul.f32 %v500_v1, %v500_v1  ;;  %v502_v8 = vpop.f32.mrb[21].mxu0  ;;  %v2097_v10 = vpop.f32.mrb[21].mxu1 }
 0x125   : > { %v975_v11 = vadd.f32 %v974_v58, %v502_v8  ;;  %v1024_v12 = vmul.f32 %v502_v8, %v502_v8  ;;  %v504_v15 = vpop.f32.mrb[22].mxu0  ;;  %v2099_v16 = vpop.f32.mrb[22].mxu1 }
 0x126   : > { %v1076_v17 = vadd.f32 %v1075_v61, %v1023_v2  ;;  %v1599_v19 = vpack.c.bf16 %v504_v15, %v500_v1  ;;  %v939_v20 = vadd.f32 %v938_v6, %v504_v15  ;;  %v1025_v21 = vmul.f32 %v504_v15, %v504_v15  ;;  %v506_v23 = vpop.f32.mrb[23].mxu0  ;;  %v2101_v24 = vpop.f32.mrb[23].mxu1 }
 0x127   : > { %v1113_v27 = vadd.f32 %v1112_v0, %v1024_v12  ;;  %v1679_v28 = vpack.c.bf16 %v506_v23, %v502_v8  ;;  %v976_v29 = vadd.f32 %v975_v11, %v506_v23  ;;  %v1026_v31 = vmul.f32 %v506_v23, %v506_v23 }
 0x128   : > { %1735 = vst [vmem:[%s2012_s10 + $0x28] sm:$0xff] %v1599_v19   ;;  %v1077_v32 = vadd.f32 %v1076_v17, %v1025_v21  ;;  %v1639_v33 = vpack.c.bf16 %v2099_v16, %v2095_v4  ;;  %v1719_v34 = vpack.c.bf16 %v2101_v24, %v2097_v10 }
 0x129   : > { %1750 = vst [vmem:[%s2019_s13 + $0x28] sm:$0xff] %v1679_v28   ;;  %v1114_v35 = vadd.f32 %v1113_v27, %v1026_v31 }
 0x12a   : > { %1743 = vst [vmem:[%s2012_s10 + $0x68] sm:$0xff] %v1639_v33   ;;  %1758 = vst [vmem:[%s2019_s13 + $0x68] sm:$0xff] %v1719_v34  }
 0x12b   : > { %v510_v37 = vpop.f32.mrb[24].mxu0  ;;  %v2111_v39 = vpop.f32.mrb[24].mxu1 }
 0x12c   : > { %v940_v40 = vadd.f32 %v939_v20, %v510_v37  ;;  %v1027_v41 = vmul.f32 %v510_v37, %v510_v37  ;;  %v512_v43 = vpop.f32.mrb[25].mxu0  ;;  %v2113_v44 = vpop.f32.mrb[25].mxu1 }
 0x12d   : > { %v977_v45 = vadd.f32 %v976_v29, %v512_v43  ;;  %v1028_v48 = vmul.f32 %v512_v43, %v512_v43  ;;  %v514_v49 = vpop.f32.mrb[26].mxu0  ;;  %v2115_v51 = vpop.f32.mrb[26].mxu1 }
 0x12e   : > { %v1078_v52 = vadd.f32 %v1077_v32, %v1027_v41  ;;  %v1604_v53 = vpack.c.bf16 %v514_v49, %v510_v37  ;;  %v941_v56 = vadd.f32 %v940_v40, %v514_v49  ;;  %v1029_v57 = vmul.f32 %v514_v49, %v514_v49  ;;  %v516_v58 = vpop.f32.mrb[27].mxu0  ;;  %v2117_v59 = vpop.f32.mrb[27].mxu1 }
 0x12f   : > { %v1115_v61 = vadd.f32 %v1114_v35, %v1028_v48  ;;  %v1684_v62 = vpack.c.bf16 %v516_v58, %v512_v43  ;;  %v978_v63 = vadd.f32 %v977_v45, %v516_v58  ;;  %v1030_v0 = vmul.f32 %v516_v58, %v516_v58 }
 0x130   : > { %1736 = vst [vmem:[%s2012_s10 + $0x30] sm:$0xff] %v1604_v53   ;;  %v1079_v1 = vadd.f32 %v1078_v52, %v1029_v57  ;;  %v1644_v6 = vpack.c.bf16 %v2115_v51, %v2111_v39  ;;  %v1724_v2 = vpack.c.bf16 %v2117_v59, %v2113_v44  ;;  %v1035_v45 = vmul.f32 %v2005_v3, %v2005_v3 }
 0x131   : > { %1751 = vst [vmem:[%s2019_s13 + $0x30] sm:$0xff] %v1684_v62   ;;  %v1116_v8 = vadd.f32 %v1115_v61, %v1030_v0  ;;  %v1036_v53 = vmul.f32 %v2007_v5, %v2007_v5  ;;  %v1037_v61 = vmul.f32 %v2014_v7, %v2014_v7 }
 0x132   : > { %1744 = vst [vmem:[%s2012_s10 + $0x70] sm:$0xff] %v1644_v6   ;;  %1759 = vst [vmem:[%s2019_s13 + $0x70] sm:$0xff] %v1724_v2  }
 0x133   : > { %v520_v11 = vpop.f32.mrb[28].mxu0  ;;  %v2127_v12 = vpop.f32.mrb[28].mxu1 }
 0x134   : > { %v942_v15 = vadd.f32 %v941_v56, %v520_v11  ;;  %v1031_v17 = vmul.f32 %v520_v11, %v520_v11  ;;  %v522_v19 = vpop.f32.mrb[29].mxu0  ;;  %v2129_v20 = vpop.f32.mrb[29].mxu1 }
 0x135   : > { %v979_v21 = vadd.f32 %v978_v63, %v522_v19  ;;  %v1032_v23 = vmul.f32 %v522_v19, %v522_v19  ;;  %v524_v27 = vpop.f32.mrb[30].mxu0  ;;  %v2131_v28 = vpop.f32.mrb[30].mxu1  ;;  %v1038_v63 = vmul.f32 %v2023_v13, %v2023_v13 }
 0x136   : > { %v1080_v29 = vadd.f32 %v1079_v1, %v1031_v17  ;;  %v1609_v31 = vpack.c.bf16 %v524_v27, %v520_v11  ;;  %v943_v32 = vadd.f32 %v942_v15, %v524_v27  ;;  %v1033_v33 = vmul.f32 %v524_v27, %v524_v27  ;;  %v526_v34 = vpop.f32.mrb[31].mxu0  ;;  %v2133_v35 = vpop.f32.mrb[31].mxu1 }
 0x137   : > { %v1117_v37 = vadd.f32 %v1116_v8, %v1032_v23  ;;  %v1689_v40 = vpack.c.bf16 %v526_v34, %v522_v19  ;;  %v980_v41 = vadd.f32 %v979_v21, %v526_v34  ;;  %v1034_v43 = vmul.f32 %v526_v34, %v526_v34 }
 0x138   : > { %1737 = vst [vmem:[%s2012_s10 + $0x38] sm:$0xff] %v1609_v31   ;;  %v944_v48 = vadd.f32 %v943_v32, %v2005_v3  ;;  %v1081_v49 = vadd.f32 %v1080_v29, %v1033_v33  ;;  %v1649_v52 = vpack.c.bf16 %v2131_v28, %v2127_v12  ;;  %v1729_v58 = vpack.c.bf16 %v2133_v35, %v2129_v20 }
 0x139   : > { %1752 = vst [vmem:[%s2019_s13 + $0x38] sm:$0xff] %v1689_v40   ;;  %v981_v56 = vadd.f32 %v980_v41, %v2007_v5  ;;  %v1118_v57 = vadd.f32 %v1117_v37, %v1034_v43  ;;  %v1039_v5 = vmul.f32 %v2031_v22, %v2031_v22  ;;  %v1040_v8 = vmul.f32 %v2033_v26, %v2033_v26 }
 0x13a   : > { %v945_v62 = vadd.f32 %v944_v48, %v2014_v7  ;;  %v1082_v3 = vadd.f32 %v1081_v49, %v1035_v45  ;;  %1745 = vst [vmem:[%s2012_s10 + $0x78] sm:$0xff] %v1649_v52   ;;  %1760 = vst [vmem:[%s2019_s13 + $0x78] sm:$0xff] %v1729_v58   ;;  %v1041_v15 = vmul.f32 %v2035_v30, %v2035_v30 }
 0x13b   : > { %v982_v0 = vadd.f32 %v981_v56, %v2023_v13  ;;  %v1119_v1 = vadd.f32 %v1118_v57, %v1036_v53  ;;  %v1042_v19 = vmul.f32 %v2037_v36, %v2037_v36  ;;  %v1051_v57 = vmul.f32 %v2079_v38, %v2079_v38 }
 0x13c   : > { %v946_v6 = vadd.f32 %v945_v62, %v2031_v22  ;;  %v1083_v2 = vadd.f32 %v1082_v3, %v1037_v61  ;;  %v1043_v22 = vmul.f32 %v2047_v46, %v2047_v46  ;;  %v1052_v61 = vmul.f32 %v2081_v42, %v2081_v42 }
 0x13d   : > { %v983_v7 = vadd.f32 %v982_v0, %v2033_v26  ;;  %v1120_v11 = vadd.f32 %v1119_v1, %v1038_v63  ;;  %v1044_v26 = vmul.f32 %v2049_v50, %v2049_v50  ;;  %v1053_v63 = vmul.f32 %v2083_v47, %v2083_v47 }
 0x13e   : > { %v947_v17 = vadd.f32 %v946_v6, %v2035_v30  ;;  %v1084_v13 = vadd.f32 %v1083_v2, %v1039_v5  ;;  %v1045_v30 = vmul.f32 %v2051_v54, %v2051_v54  ;;  %v1054_v1 = vmul.f32 %v2085_v55, %v2085_v55 }
 0x13f   : > { %v984_v21 = vadd.f32 %v983_v7, %v2037_v36  ;;  %v1121_v23 = vadd.f32 %v1120_v11, %v1040_v8  ;;  %v1046_v36 = vmul.f32 %v2053_v60, %v2053_v60  ;;  %v1055_v6 = vmul.f32 %v2095_v4, %v2095_v4 }
 0x140   : > { %v1085_v27 = vadd.f32 %v1084_v13, %v1041_v15  ;;  %v948_v29 = vadd.f32 %v947_v17, %v2047_v46  ;;  %v1047_v46 = vmul.f32 %v2063_v9, %v2063_v9  ;;  %v1056_v8 = vmul.f32 %v2097_v10, %v2097_v10 }
 0x141   : > { %v1122_v31 = vadd.f32 %v1121_v23, %v1042_v19  ;;  %v985_v32 = vadd.f32 %v984_v21, %v2049_v50  ;;  %v1048_v50 = vmul.f32 %v2065_v14, %v2065_v14  ;;  %v1057_v11 = vmul.f32 %v2099_v16, %v2099_v16 }
 0x142   : > { %v949_v33 = vadd.f32 %v948_v29, %v2051_v54  ;;  %v1086_v34 = vadd.f32 %v1085_v27, %v1043_v22  ;;  %v1049_v54 = vmul.f32 %v2067_v18, %v2067_v18  ;;  %v1058_v17 = vmul.f32 %v2101_v24, %v2101_v24 }
 0x143   : > { %v986_v37 = vadd.f32 %v985_v32, %v2053_v60  ;;  %v1123_v40 = vadd.f32 %v1122_v31, %v1044_v26  ;;  %v1050_v60 = vmul.f32 %v2069_v25, %v2069_v25  ;;  %v1059_v19 = vmul.f32 %v2111_v39, %v2111_v39 }
 0x144   : > { %v950_v41 = vadd.f32 %v949_v33, %v2063_v9  ;;  %v1087_v43 = vadd.f32 %v1086_v34, %v1045_v30  ;;  %v1060_v23 = vmul.f32 %v2113_v44, %v2113_v44  ;;  %v1061_v27 = vmul.f32 %v2115_v51, %v2115_v51 }
 0x145   : > { %v987_v45 = vadd.f32 %v986_v37, %v2065_v14  ;;  %v1124_v48 = vadd.f32 %v1123_v40, %v1046_v36  ;;  %v1064_v31 = vmul.f32 %v2129_v20, %v2129_v20  ;;  %v1065_v36 = vmul.f32 %v2131_v28, %v2131_v28 }
 0x146   : > { %v951_v49 = vadd.f32 %v950_v41, %v2067_v18  ;;  %v1088_v52 = vadd.f32 %v1087_v43, %v1047_v46 }
 0x147   : > { %v988_v53 = vadd.f32 %v987_v45, %v2069_v25  ;;  %v1125_v56 = vadd.f32 %v1124_v48, %v1048_v50 }
 0x148   : > { %v952_v9 = vadd.f32 %v951_v49, %v2079_v38  ;;  %v1089_v58 = vadd.f32 %v1088_v52, %v1049_v54  ;;  %v1852_v54 = vmov 1966171168   ;;  %v1151_v52 = vlaneseq }
 0x149   : > { %v989_v14 = vadd.f32 %v988_v53, %v2081_v42  ;;  %v1126_v62 = vadd.f32 %v1125_v56, %v1050_v60  ;;  %v1149_v49 = vunpack.c.l.s4 %v1852_v54 }
 0x14a   : > { %v1090_v18 = vadd.f32 %v1089_v58, %v1051_v57  ;;  %v953_v3 = vadd.f32 %v952_v9, %v2083_v47  ;;  %vm1165_vm0 = vcmp.lt.s32.totalorder %v1151_v52, 256 }
 0x14b   : > { %v1127_v25 = vadd.f32 %v1126_v62, %v1052_v61  ;;  %v990_v0 = vadd.f32 %v989_v14, %v2085_v55  ;;  %v1150_v14 = vunpack.c.0.s8 %v1149_v49  ;;  %v1152_v61 = vshrl.u32 %v1151_v52, 7 }
 0x14c   : > { %v1091_v38 = vadd.f32 %v1090_v18, %v1053_v63  ;;  %v954_v5 = vadd.f32 %v953_v3, %v2095_v4 }
 0x14d   : > { %v1128_v42 = vadd.f32 %v1127_v25, %v1054_v1  ;;  %v991_v2 = vadd.f32 %v990_v0, %v2097_v10 }
 0x14e   : > { %v1092_v7 = vadd.f32 %v1091_v38, %v1055_v6  ;;  %v955_v47 = vadd.f32 %v954_v5, %v2099_v16  ;;  %v1153_v5 = vsub.s32 %v1150_v14, %v1152_v61 }
 0x14f   : > { %v1129_v15 = vadd.f32 %v1128_v42, %v1056_v8  ;;  %v992_v55 = vadd.f32 %v991_v2, %v2101_v24  ;;  %v1063_v24 = vmul.f32 %v2127_v12, %v2127_v12 }
 0x150   : > { %v1093_v13 = vadd.f32 %v1092_v7, %v1057_v11  ;;  %v956_v4 = vadd.f32 %v955_v47, %v2111_v39  ;;  %v1062_v39 = vmul.f32 %v2117_v59, %v2117_v59 }
 0x151   : > { %v1130_v21 = vadd.f32 %v1129_v15, %v1058_v17  ;;  %v993_v10 = vadd.f32 %v992_v55, %v2113_v44 }
 0x152   : > { %v1094_v22 = vadd.f32 %v1093_v13, %v1059_v19  ;;  %v957_v16 = vadd.f32 %v956_v4, %v2115_v51 }
 0x153   : > { %v1131_v29 = vadd.f32 %v1130_v21, %v1060_v23  ;;  %v994_v26 = vadd.f32 %v993_v10, %v2117_v59  ;;  %v1066_v59 = vmul.f32 %v2133_v35, %v2133_v35 }
 0x154   : > { %v1095_v32 = vadd.f32 %v1094_v22, %v1061_v27  ;;  %v958_v44 = vadd.f32 %v957_v16, %v2127_v12 }
 0x155   : > { %v1132_v30 = vadd.f32 %v1131_v29, %v1062_v39  ;;  %v995_v33 = vadd.f32 %v994_v26, %v2129_v20 }
 0x156   : > { %v1096_v34 = vadd.f32 %v1095_v32, %v1063_v24  ;;  %v959_v51 = vadd.f32 %v958_v44, %v2131_v28 }
 0x157   : > { %v1133_v37 = vadd.f32 %v1132_v30, %v1064_v31  ;;  %v996_v40 = vadd.f32 %v995_v33, %v2133_v35 }
 0x158   : > { %v960_v46 = vrot.slane %v959_v51, 4  ;;  %v1097_v41 = vadd.f32 %v1096_v34, %v1065_v36 }
 0x159   : > { %v997_v43 = vrot.slane %v996_v40, 4  ;;  %v1134_v50 = vadd.f32 %v1133_v37, %v1066_v59 }
 0x15a   : > { %v961_v12 = vadd.f32 %v960_v46, %v959_v51  ;;  %v1098_v45 = vrot.slane %v1097_v41, 4 }
 0x15b   : > { %v998_v48 = vadd.f32 %v997_v43, %v996_v40  ;;  %v1135_v20 = vrot.slane %v1134_v50, 4 }
 0x15c   : > { %v962_v60 = vrot.slane %v961_v12, 2  ;;  %v1099_v53 = vadd.f32 %v1098_v45, %v1097_v41 }
 0x15d   : > { %v999_v28 = vrot.slane %v998_v48, 2  ;;  %v1136_v56 = vadd.f32 %v1135_v20, %v1134_v50 }
 0x15e   : > { %v963_v9 = vadd.f32 %v962_v60, %v961_v12  ;;  %v1100_v57 = vrot.slane %v1099_v53, 2 }
 0x15f   : > { %v1000_v58 = vadd.f32 %v999_v28, %v998_v48  ;;  %v1137_v35 = vrot.slane %v1136_v56, 2 }
 0x160   : > { %v964_v62 = vrot.slane %v963_v9, 1  ;;  %v1101_v18 = vadd.f32 %v1100_v57, %v1099_v53 }
 0x161   : > { %v1001_v3 = vrot.slane %v1000_v58, 1  ;;  %v1138_v63 = vadd.f32 %v1137_v35, %v1136_v56 }
 0x162   : > { %v965_v25 = vadd.f32 %v964_v62, %v963_v9  ;;  %v1102_v0 = vrot.slane %v1101_v18, 1 }
 0x163   : > { %v1002_v1 = vadd.f32 %v1001_v3, %v1000_v58  ;;  %v1139_v38 = vrot.slane %v1138_v63, 1 }
 0x164   : > { %v1103_v6 = vadd.f32 %v1102_v0, %v1101_v18 }
 0x165   : > { %v1140_v42 = vadd.f32 %v1139_v38, %v1138_v63  ;;  %v1147_v2 = vcombine.low %v965_v25, %v1002_v1 }
 0x167   : > { %v1154_v8 = vrot.slane %v1147_v2, %v1153_v5  ;;  %v1170_v7 = vcombine.low %v1103_v6, %v1140_v42 }
 0x169   : > { %v1161_v47 = vrot.slane %v1154_v8, %v1153_v5  ;;  %v1177_v11 = vrot.slane %v1170_v7, %v1153_v5 }
 0x16b   : > { %1167 = vst.msk [vmem:[%s270_s21] sm:$0x3] %vm1165_vm0, %v1161_v47  ;;  %v1184_v15 = vrot.slane %v1177_v11, %v1153_v5 }
 0x16d   : > { %1499 = vst.msk [vmem:[%s270_s21 + $0x2] sm:$0x3] %vm1165_vm0, %v1184_v15 }
 0x16e PF: > { %s15_s17 = sadd.s32 1, %s1849_s17   ;;  %s2257_s15 = smov %s1845_s16 }
 0x16f   : > { %p12_p5 = scmp.ge.s32.totalorder %s15_s17, 4   ;;  %s2258_s16 = smov %s2260_s18 }
 0x171   :  { %14 = sbr.rel (!%p12_p5) target bundleno = 2 (0x2), region = 92 }

// kernel: mobilenetv2_block.5
= control target key start
LH: loop header
LB: loop body
LE: loop exit
PB: predicated region body
PF: predicated region fallthrough
CT: control target
= control target key end

     0   :  { %s2904_s21 = smov 0   ;;  %s2906_s22 = smov 0   ;;  %s4260_s0 = inlined_call_operand.vmem [shape: bf16[2,256,128], index: 0, kind: input, shape index: {}, may-alias: {0,1,2}]   ;;  %s4261_s1 = inlined_call_operand.vmem [shape: bf16[32,16,128], index: 1, kind: input, shape index: {}, may-alias: {0,1,2}]   ;;  %s4262_s2 = inlined_call_operand.vmem [shape: bf16[32,16,128], index: 2, kind: input, shape index: {}, may-alias: {0,1,2}]   ;;  %s4263_s3 = inlined_call_operand.vmem [shape: f32[2,1,128], index: 3, kind: input, shape index: {}]   ;;  %s4264_s4 = inlined_call_operand.vmem [shape: f32[9,1,128], index: 4, kind: input, shape index: {}]   ;;  %s4265_s5 = inlined_call_operand.vmem [shape: bf16[2,256,128], index: 5, kind: output, shape index: {0}]   ;;  %s4266_s6 = inlined_call_operand.vmem [shape: f32[2,2,1,128], index: 6, kind: output, shape index: {1}]  }
   0x1   :  { %s2908_s23 = smov 0  }
   0x2 LB: > { %s29_s24 = sadd.s32 1, %s2862_s22  ;;  %p2493_p0 = scmp.ge.s32.totalorder %s2866_s23, 1  ;;  %s2866_s23 = sphi %s2908_s23, %s17_s23   ;;  %s2862_s22 = sphi %s2906_s22, %s4369_s22   ;;  %s2858_s21 = sphi %s2904_s21, %s4368_s21  }
   0x3   : > { %p31_p1 = scmp.ge.s32.totalorder %s29_s24, 2  ;;  %p304_p2 = scmp.lt.s32.totalorder %s2866_s23, 3 }
   0x5   : > { %s4371_s24 = smov (%p31_p1, %s29_s24), 0  ;;  %p305_p3 = pnand %p2493_p0, %p304_p2 }
   0x7   : > { %308 = sbr.rel (%p305_p3) target bundleno = 282 (0x11a), region = 40 }
   0xe   : > { %p369_p4 = scmp.lt.s32.totalorder %s2858_s21, 1  ;;  %v671_v0 = vlaneseq  ;;  %v4267_v1 = vmov 0.0   ;;  %s2924_s25 = sshll.u32 %s2858_s21, 4  ;;  %v2948_v5 = vld [vmem:[%s4263_s3] ss:$0 sm:$0xff] }
   0xf   : > { %633 = vst [vmem:[#allocation2] sm:$0xff] %v4267_v1  ;;  %670 = vst [vmem:[#allocation2 + $0x128] sm:$0xff] %v4267_v1  ;;  %p384_p5 = scmp.lt.s32.totalorder %s2924_s25, 31  ;;  %v2967_v19 = vld [vmem:[%s4263_s3 + $0x1] ss:$0 sm:$0xff]  ;;  %s400_s13 = sadd.s32 15, %s2924_s25 }
  0x10   : > { %s4373_s21 = smov (!%p369_p4, %s2858_s21), 1  ;;  %v2928_v2 = vshrl.u32 %v671_v0, 7  ;;  %4295 = vst [vmem:[#allocation3_spill] sm:$0xff] %v2948_v5  ;;  %4296 = vst [vmem:[#allocation4_spill] sm:$0xff] %v2967_v19  ;;  %p3765_p6 = scmp.lt.s32.totalorder %s400_s13, 31 }
  0x11   : > { %s2586_s26 = sshll.u32 %s4373_s21, 7  ;;  %s2504_s10 = sshll.u32 %s4373_s21, 1 }
  0x12   : > { %v2933_v3 = vadd.s32 32, %v2928_v2  ;;  %v2936_v4 = vadd.s32 40, %v2928_v2  ;;  %s2943_s29 = scalar_lea.vmem %s4260_s0, %s2586_s26  ;;  %v2951_v6 = vadd.s32 8, %v2928_v2  ;;  %v2955_v8 = vadd.s32 16, %v2928_v2  ;;  %s3234_s18 = scalar_lea.vmem %s4265_s5, %s2586_s26 }
  0x13   : > { %v2623_v9 = vld [vmem:[%s2943_s29] sm:$0xff]   ;;  %v2774_v10 = vld [vmem:[%s2943_s29 + $0x8] sm:$0xff]   ;;  %v2775_v11 = vld [vmem:[%s2943_s29 + $0x10] sm:$0xff]   ;;  %s385_s8 = scalar_select %p384_p5, %s2924_s25, 31 }
  0x14   : > { %v736_v12 = vand.u32 15, %v2933_v3  ;;  %v743_v13 = vand.u32 15, %v2936_v4  ;;  %v2625_v14 = vunpack.c.h.bf16 %v2623_v9  ;;  %v2628_v15 = vunpack.c.l.bf16 %v2774_v10  ;;  %v2776_v18 = vld [vmem:[%s2943_s29 + $0x18] sm:$0xff]   ;;  %v2777_v41 = vld [vmem:[%s2943_s29 + $0x20] sm:$0xff]   ;;  %v2778_v46 = vld [vmem:[%s2943_s29 + $0x28] sm:$0xff]   ;;  %s4375_s13 = smov (!%p3765_p6, %s400_s13), 31 }
  0x15   : > { %v2629_v16 = vunpack.c.h.bf16 %v2774_v10  ;;  %v2632_v17 = vunpack.c.l.bf16 %v2775_v11  ;;  %s2587_s11 = sshll.u32 %s385_s8, 3  ;;  %v2624_v20 = vunpack.c.l.bf16 %v2623_v9  ;;  %v2633_v21 = vunpack.c.h.bf16 %v2775_v11  ;;  %v2779_v59 = vld [vmem:[%s2943_s29 + $0x30] sm:$0xff]   ;;  %s2588_s25 = sshll.u32 %s4375_s13, 3 }
  0x16   : > { %v2636_v22 = vunpack.c.l.bf16 %v2776_v18  ;;  %v2637_v23 = vunpack.c.h.bf16 %v2776_v18  ;;  %v500_v24 = vmul.f32 %v2625_v14, %v2948_v5  ;;  %v501_v25 = vmul.f32 %v2628_v15, %v2948_v5  ;;  %s388_s14 = scalar_lea.vmem %s4261_s1, %s2587_s11  ;;  %v2780_v18 = vld [vmem:[%s2943_s29 + $0x38] sm:$0xff]   ;;  %s405_s9 = scalar_lea.vmem %s4262_s2, %s2588_s25 }
  0x17   : > { %v502_v26 = vmul.f32 %v2629_v16, %v2948_v5  ;;  %v503_v27 = vmul.f32 %v2632_v17, %v2948_v5  ;;  %v2687_v28 = vld [vmem:[%s388_s14] sm:$0xff]   ;;  %v499_v29 = vmul.f32 %v2624_v20, %v2948_v5  ;;  %v504_v30 = vmul.f32 %v2633_v21, %v2948_v5  ;;  %s425_s13 = scalar_lea.vmem %s4266_s6, %s2504_s10 }
  0x18   : > { %v505_v31 = vmul.f32 %v2636_v22, %v2948_v5  ;;  %v506_v32 = vmul.f32 %v2637_v23, %v2948_v5  ;;  %v538_v33 = vadd.f32 %v2967_v19, %v500_v24  ;;  %v539_v34 = vadd.f32 %v2967_v19, %v501_v25  ;;  %v2781_v24 = vld [vmem:[%s2943_s29 + $0x40] sm:$0xff]  }
  0x19   : > { %v540_v35 = vadd.f32 %v2967_v19, %v502_v26  ;;  %v541_v36 = vadd.f32 %v2967_v19, %v503_v27  ;;  %v2688_v37 = vunpack.c.l.bf16 %v2687_v28  ;;  %v2689_v38 = vunpack.c.h.bf16 %v2687_v28 }
  0x1a   : > { %v537_v39 = vadd.f32 %v2967_v19, %v499_v29  ;;  %v542_v40 = vadd.f32 %v2967_v19, %v504_v30  ;;  %v2987_v42 = vmax.f32 %v538_v33, 0.0  ;;  %v2989_v43 = vmax.f32 %v539_v34, 0.0  ;;  %v3040_v29 = vld [vmem:[%s2943_s29 + $0x48] sm:$0xff]  }
  0x1b   : > { %v2991_v44 = vmax.f32 %v540_v35, 0.0  ;;  %v2993_v45 = vmax.f32 %v541_v36, 0.0  ;;  %v605_v47 = vmul.f32 %v2688_v37, %v2948_v5  ;;  %v606_v48 = vmul.f32 %v2689_v38, %v2948_v5  ;;  %4297 = vst [vmem:[#allocation5_spill] sm:$0xff] %v3040_v29 }
  0x1c   : > { %v2998_v49 = vmax.f32 %v537_v39, 0.0  ;;  %v3000_v50 = vmax.f32 %v542_v40, 0.0  ;;  %637 = vst [vmem:[#allocation2 + $0x20] sm:$0xff] %v2987_v42  ;;  %638 = vst [vmem:[#allocation2 + $0x28] sm:$0xff] %v2989_v43  ;;  %v543_v51 = vadd.f32 %v2967_v19, %v505_v31  ;;  %v544_v52 = vadd.f32 %v2967_v19, %v506_v32 }
  0x1d   : > { %639 = vst [vmem:[#allocation2 + $0x30] sm:$0xff] %v2991_v44  ;;  %640 = vst [vmem:[#allocation2 + $0x38] sm:$0xff] %v2993_v45  ;;  %v2640_v53 = vunpack.c.l.bf16 %v2777_v41  ;;  %v2641_v54 = vunpack.c.h.bf16 %v2777_v41  ;;  %v607_v55 = vadd.f32 %v2967_v19, %v605_v47  ;;  %v608_v56 = vadd.f32 %v2967_v19, %v606_v48  ;;  %v3062_v41 = vld [vmem:[%s4264_s4 + $0x1] ss:$0 sm:$0xff] }
  0x1e   : > { %636 = vst [vmem:[#allocation2 + $0x18] sm:$0xff] %v2998_v49  ;;  %641 = vst [vmem:[#allocation2 + $0x40] sm:$0xff] %v3000_v50  ;;  %v2644_v57 = vunpack.c.l.bf16 %v2778_v46  ;;  %v2645_v58 = vunpack.c.h.bf16 %v2778_v46  ;;  %v3013_v60 = vmax.f32 %v543_v51, 0.0  ;;  %v3015_v61 = vmax.f32 %v544_v52, 0.0 }
  0x1f   : > { %v507_v62 = vmul.f32 %v2640_v53, %v2948_v5  ;;  %v508_v63 = vmul.f32 %v2641_v54, %v2948_v5  ;;  %v609_v0 = vmax.f32 %v607_v55, 0.0  ;;  %v610_v9 = vmax.f32 %v608_v56, 0.0  ;;  %v3079_v54 = vld [vmem:[%s4264_s4] ss:$0 sm:$0xff]  ;;  %v3084_v55 = vld [vmem:[%s4264_s4 + $0x3] ss:$0 sm:$0xff] }
  0x20   : > { %v509_v10 = vmul.f32 %v2644_v57, %v2948_v5  ;;  %v510_v11 = vmul.f32 %v2645_v58, %v2948_v5  ;;  %642 = vst [vmem:[#allocation2 + $0x48] sm:$0xff] %v3013_v60  ;;  %643 = vst [vmem:[#allocation2 + $0x50] sm:$0xff] %v3015_v61  ;;  %v2648_v16 = vunpack.c.l.bf16 %v2779_v59  ;;  %v2649_v17 = vunpack.c.h.bf16 %v2779_v59  ;;  %v3089_v56 = vld [vmem:[%s4264_s4 + $0x4] ss:$0 sm:$0xff]  ;;  %v3100_v59 = vld [vmem:[%s4264_s4 + $0x6] ss:$0 sm:$0xff] }
  0x21   : > { %v545_v14 = vadd.f32 %v2967_v19, %v507_v62  ;;  %v546_v15 = vadd.f32 %v2967_v19, %v508_v63  ;;  %v3026_v20 = vmul.f32 0.0, %v609_v0  ;;  %v3028_v21 = vmul.f32 0.0, %v610_v9  ;;  %v3105_v62 = vld [vmem:[%s4264_s4 + $0x7] ss:$0 sm:$0xff] }
  0x22   : > { %v547_v22 = vadd.f32 %v2967_v19, %v509_v10  ;;  %v548_v23 = vadd.f32 %v2967_v19, %v510_v11  ;;  %v511_v27 = vmul.f32 %v2648_v16, %v2948_v5  ;;  %v512_v28 = vmul.f32 %v2649_v17, %v2948_v5 }
  0x23   : > { %v3033_v25 = vmax.f32 %v545_v14, 0.0  ;;  %v3035_v26 = vmax.f32 %v546_v15, 0.0  ;;  %634 = vst [vmem:[#allocation2 + $0x8] sm:$0xff] %v3026_v20  ;;  %635 = vst [vmem:[#allocation2 + $0x10] sm:$0xff] %v3028_v21  ;;  %v2652_v32 = vunpack.c.l.bf16 %v2780_v18  ;;  %v2653_v33 = vunpack.c.h.bf16 %v2780_v18  ;;  %v3117_v10 = vld [vmem:[#allocation2 + $0x27] sm:$0xff] }
  0x24   : > { %v3044_v30 = vmax.f32 %v547_v22, 0.0  ;;  %v3046_v31 = vmax.f32 %v548_v23, 0.0  ;;  %v549_v34 = vadd.f32 %v2967_v19, %v511_v27  ;;  %v550_v35 = vadd.f32 %v2967_v19, %v512_v28  ;;  %v3119_v11 = vld [vmem:[#allocation2 + $0x2f] sm:$0xff]  ;;  %v3121_v14 = vld [vmem:[#allocation2 + $0x37] sm:$0xff]  ;;  %v3142_v28 = vld [vmem:[%s4264_s4 + $0x2] ss:$0 sm:$0xff] }
  0x25   : > { %644 = vst [vmem:[#allocation2 + $0x58] sm:$0xff] %v3033_v25  ;;  %645 = vst [vmem:[#allocation2 + $0x60] sm:$0xff] %v3035_v26  ;;  %v2656_v36 = vunpack.c.l.bf16 %v2781_v24  ;;  %v2657_v37 = vunpack.c.h.bf16 %v2781_v24  ;;  %v513_v38 = vmul.f32 %v2652_v32, %v2948_v5  ;;  %v514_v39 = vmul.f32 %v2653_v33, %v2948_v5  ;;  %v3131_v22 = vld [vmem:[#allocation2 + $0x3f] sm:$0xff] }
  0x26   : > { %4298 = vst [vmem:[#allocation6_spill] sm:$0xff] %v3044_v30  ;;  %4299 = vst [vmem:[#allocation7_spill] sm:$0xff] %v3046_v31  ;;  %v2660_v40 = vunpack.c.l.bf16 %v3040_v29  ;;  %vm1092_vm0 = vcmp.gt.s32.totalorder %v736_v12, 0  ;;  %v3064_v46 = vmax.f32 %v549_v34, 0.0  ;;  %v3066_v47 = vmax.f32 %v550_v35, 0.0 }
  0x27   : > { %646 = vst [vmem:[#allocation2 + $0x68] sm:$0xff] %v3044_v30  ;;  %647 = vst [vmem:[#allocation2 + $0x70] sm:$0xff] %v3046_v31  ;;  %v515_v48 = vmul.f32 %v2656_v36, %v2948_v5  ;;  %v516_v51 = vmul.f32 %v2657_v37, %v2948_v5  ;;  %v551_v52 = vadd.f32 %v2967_v19, %v513_v38  ;;  %v3074_v12 = vsel %vm1092_vm0, 1.0, %v4267_v1  ;;  %v3133_v23 = vld [vmem:[#allocation2 + $0x47] sm:$0xff]  ;;  %v3135_v24 = vld [vmem:[#allocation2 + $0x4f] sm:$0xff] }
  0x28   : > { %4300 = vst [vmem:[#allocation8_spill] sm:$0xff] %v3064_v46  ;;  %4301 = vst [vmem:[#allocation9_spill] sm:$0xff] %v3066_v47  ;;  %v552_v53 = vadd.f32 %v2967_v19, %v514_v39  ;;  %v517_v3 = vmul.f32 %v2660_v40, %v2948_v5  ;;  %vm1189_vm1 = vcmp.lt.s32.totalorder %v743_v13, 15  ;;  %v1331_v63 = vmul.f32 %v3062_v41, %v2989_v43  ;;  %v3147_v32 = vld [vmem:[%s4264_s4 + $0x5] ss:$0 sm:$0xff]  ;;  %v3155_v36 = vld [vmem:[#allocation2 + $0x31] sm:$0xff] }
  0x29   : > { %648 = vst [vmem:[#allocation2 + $0x78] sm:$0xff] %v3064_v46  ;;  %649 = vst [vmem:[#allocation2 + $0x80] sm:$0xff] %v3066_v47  ;;  %v553_v57 = vadd.f32 %v2967_v19, %v515_v48  ;;  %v554_v58 = vadd.f32 %v2967_v19, %v516_v51  ;;  %v3109_v0 = vmax.f32 %v551_v52, 0.0  ;;  %v3115_v13 = vsel %vm1189_vm1, 1.0, %v4267_v1  ;;  %v3162_v37 = vld [vmem:[%s4264_s4 + $0x8] ss:$0 sm:$0xff] }
  0x2a   : > { %v3111_v9 = vmax.f32 %v552_v53, 0.0  ;;  %v555_v4 = vadd.f32 %v2967_v19, %v517_v3  ;;  %v1332_v17 = vmul.f32 %v3062_v41, %v2991_v44  ;;  %v1371_v18 = vmul.f32 %v3089_v56, %v2993_v45  ;;  %v3170_v51 = vld [vmem:[#allocation2 + $0x39] sm:$0xff]  ;;  %v3172_v52 = vld [vmem:[#allocation2 + $0x41] sm:$0xff] }
  0x2b   : > { %4302 = vst [vmem:[#allocation10_spill] sm:$0xff] %v3109_v0  ;;  %v3123_v15 = vmax.f32 %v553_v57, 0.0  ;;  %v3125_v16 = vmax.f32 %v554_v58, 0.0  ;;  %650 = vst [vmem:[#allocation2 + $0x88] sm:$0xff] %v3109_v0  ;;  %v1372_v33 = vmul.f32 %v3089_v56, %v3000_v50  ;;  %v1443_v34 = vmul.f32 %v3105_v62, %v3013_v60 }
  0x2c   : > { %4303 = vst [vmem:[#allocation11_spill] sm:$0xff] %v3111_v9  ;;  %651 = vst [vmem:[#allocation2 + $0x90] sm:$0xff] %v3111_v9  ;;  %v587_v27 = vmax.f32 %v555_v4, 0.0  ;;  %v1444_v35 = vmul.f32 %v3105_v62, %v3015_v61  ;;  %v1403_v38 = vadd.f32 %v1371_v18, %v1331_v63  ;;  %v1545_v39 = vmul.f32 %v3079_v54, %v3117_v10  ;;  %v3180_v63 = vld [vmem:[#allocation2 + $0x29] sm:$0xff]  ;;  %v3184_v18 = vld [vmem:[#allocation2 + $0x51] sm:$0xff] }
  0x2d   : > { %4304 = vst [vmem:[#allocation12_spill] sm:$0xff] %v3123_v15  ;;  %4305 = vst [vmem:[#allocation13_spill] sm:$0xff] %v3125_v16  ;;  %v1546_v40 = vmul.f32 %v3079_v54, %v3119_v11  ;;  %v1585_v48 = vmul.f32 %v3084_v55, %v3121_v14  ;;  %v1404_v53 = vadd.f32 %v1372_v33, %v1332_v17  ;;  %v3182_v4 = vld [vmem:[#allocation2 + $0x49] sm:$0xff] }
  0x2e   : > { %652 = vst [vmem:[#allocation2 + $0x98] sm:$0xff] %v3123_v15  ;;  %653 = vst [vmem:[#allocation2 + $0xa0] sm:$0xff] %v3125_v16  ;;  %v1586_v3 = vmul.f32 %v3084_v55, %v3131_v22  ;;  %v1657_v57 = vmul.f32 %v3100_v59, %v3133_v23  ;;  %v1658_v58 = vmul.f32 %v3100_v59, %v3135_v24 }
  0x2f   : > { %654 = vst [vmem:[#allocation2 + $0xa8] sm:$0xff] %v587_v27  ;;  %v1475_v1 = vadd.f32 %v1443_v34, %v1403_v38  ;;  %v1617_v7 = vadd.f32 %v1585_v48, %v1545_v39  ;;  %v1759_v17 = vmul.f32 %v3142_v28, %v3180_v63  ;;  %v1760_v27 = vmul.f32 %v3142_v28, %v3155_v36 }
  0x30   : > { %v1476_v33 = vadd.f32 %v1444_v35, %v1404_v53  ;;  %v1618_v16 = vadd.f32 %v1586_v3, %v1546_v40  ;;  %v1799_v15 = vmul.f32 %v3147_v32, %v3170_v51  ;;  %v1800_v9 = vmul.f32 %v3147_v32, %v3172_v52 }
  0x31   : > { %v1689_v0 = vadd.f32 %v1657_v57, %v1617_v7  ;;  %v1871_v47 = vmul.f32 %v3162_v37, %v3182_v4  ;;  %v1872_v34 = vmul.f32 %v3162_v37, %v3184_v18  ;;  %v715_v38 = vand.u32 15, %v2951_v6  ;;  %v1503_v57 = vld [vmem:[#allocation2 + $0x7] sm:$0xff] }
  0x32   : > { %v1690_v39 = vadd.f32 %v1658_v58, %v1618_v16  ;;  %v1831_v48 = vadd.f32 %v1799_v15, %v1759_v17  ;;  %v1832_v46 = vadd.f32 %v1800_v9, %v1760_v27  ;;  %v4306_v35 = vand.u32 15, %v2928_v2  ;;  %v1504_v16 = vld [vmem:[#allocation2 + $0xf] sm:$0xff]  ;;  %v1505_v58 = vld [vmem:[#allocation2 + $0x17] sm:$0xff]  ;;  %v1506_v17 = vld [vmem:[#allocation2 + $0x1f] sm:$0xff] }
  0x33   : > { %v1935_v40 = vmul.f32 %v3074_v12, %v1689_v0  ;;  %v4307_v53 = vmov 0.0   ;;  %vm1185_vm3 = vcmp.lt.s32.totalorder %v715_v38, 15  ;;  %v1327_v7 = vmul.f32 %v3062_v41, %v3026_v20  ;;  %v3221_v38 = vld [vmem:[#allocation2 + $0x19] sm:$0xff] }
  0x34   : > { %vm1088_vm2 = vcmp.gt.s32.totalorder %v4306_v35, 0  ;;  %v1903_v31 = vadd.f32 %v1871_v47, %v1831_v48  ;;  %v1904_v30 = vadd.f32 %v1872_v34, %v1832_v46  ;;  %v1968_v19 = vadd.f32 %v1690_v39, %v1476_v33  ;;  %v1717_v35 = vld [vmem:[#allocation2 + $0x9] sm:$0xff] }
  0x35   : > { %v2508_v3 = vsel %vm1088_vm2, 1.0, %v4307_v53  ;;  %v2524_v6 = vsel %vm1185_vm3, 1.0, %v4307_v53  ;;  %v1967_v15 = vadd.f32 %v1935_v40, %v1475_v1  ;;  %v1328_v9 = vmul.f32 %v3062_v41, %v3028_v21  ;;  %v1718_v40 = vld [vmem:[#allocation2 + $0x11] sm:$0xff] }
  0x36   : > { %v1367_v12 = vmul.f32 %v3089_v56, %v2998_v49  ;;  %v1368_v0 = vmul.f32 %v3089_v56, %v2987_v42  ;;  %v2000_v20 = vmul.f32 %v3115_v13, %v1904_v30  ;;  %v1439_v46 = vmul.f32 %v3105_v62, %v2989_v43 }
  0x37   : > { %v1440_v1 = vmul.f32 %v3105_v62, %v2991_v44  ;;  %v1541_v47 = vmul.f32 %v3079_v54, %v1503_v57  ;;  %v3218_v21 = vadd.f32 %v1967_v15, %v1903_v31  ;;  %v1542_v34 = vmul.f32 %v3079_v54, %v1504_v16  ;;  %v1720_v57 = vld [vmem:[#allocation2 + $0x21] sm:$0xff] }
  0x38   : > { %v1399_v27 = vadd.f32 %v1367_v12, %v1327_v7  ;;  %v1400_v33 = vadd.f32 %v1368_v0, %v1328_v9  ;;  %v3223_v39 = vadd.f32 %v2000_v20, %v1968_v19  ;;  %v1581_v30 = vmul.f32 %v3084_v55, %v1505_v58 }
  0x39   : > { %v1582_v13 = vmul.f32 %v3084_v55, %v1506_v17  ;;  %v1653_v48 = vmul.f32 %v3100_v59, %v3117_v10  ;;  %v3238_v19 = vmul.f32 %v3218_v21, %v3218_v21  ;;  %v1654_v16 = vmul.f32 %v3100_v59, %v3119_v11 }
  0x3a   : > { %4308 = vst [vmem:[#allocation14_spill] sm:$0xff] %v3223_v39  ;;  %v1471_v31 = vadd.f32 %v1439_v46, %v1399_v27  ;;  %v1472_v7 = vadd.f32 %v1440_v1, %v1400_v33  ;;  %v2707_v15 = vpack.c.bf16 %v3223_v39, %v3218_v21  ;;  %v3246_v9 = vmul.f32 %v3223_v39, %v3223_v39 }
  0x3b   : > { %v1613_v12 = vadd.f32 %v1581_v30, %v1541_v47  ;;  %v1614_v0 = vadd.f32 %v1582_v13, %v1542_v34  ;;  %v1755_v20 = vmul.f32 %v3142_v28, %v1717_v35  ;;  %v1756_v5 = vmul.f32 %v3142_v28, %v1718_v40 }
  0x3c   : > { %4309 = vst [vmem:[#allocation15_spill] sm:$0xff] %v3246_v9  ;;  %v1795_v46 = vmul.f32 %v3147_v32, %v3221_v38  ;;  %v1796_v1 = vmul.f32 %v3147_v32, %v1720_v57  ;;  %2790 = vst [vmem:[%s3234_s18 + $0x10] sm:$0xff] %v2707_v15   ;;  %v1867_v29 = vmul.f32 %v3162_v37, %v3180_v63  ;;  %v675_v30 = vadd.s32 24, %v2928_v2 }
  0x3d   : > { %v1685_v27 = vadd.f32 %v1653_v48, %v1613_v12  ;;  %v1686_v33 = vadd.f32 %v1654_v16, %v1614_v0  ;;  %v1868_v9 = vmul.f32 %v3162_v37, %v3155_v36  ;;  %v722_v13 = vand.u32 15, %v2955_v8 }
  0x3e   : > { %v1827_v47 = vadd.f32 %v1795_v46, %v1755_v20  ;;  %v1828_v34 = vadd.f32 %v1796_v1, %v1756_v5  ;;  %v1329_v39 = vmul.f32 %v3062_v41, %v2998_v49  ;;  %v1330_v48 = vmul.f32 %v3062_v41, %v2987_v42 }
  0x3f   : > { %v1931_v35 = vmul.f32 %v2508_v3, %v1685_v27  ;;  %v1964_v40 = vadd.f32 %v1686_v33, %v1472_v7  ;;  %v729_v12 = vand.u32 15, %v675_v30  ;;  %vm1090_vm4 = vcmp.gt.s32.totalorder %v722_v13, 0 }
  0x40   : > { %v1899_v16 = vadd.f32 %v1867_v29, %v1827_v47  ;;  %v1900_v15 = vadd.f32 %v1868_v9, %v1828_v34  ;;  %v2509_v20 = vsel %vm1090_vm4, 1.0, %v4307_v53  ;;  %v1369_v5 = vmul.f32 %v3089_v56, %v2989_v43 }
  0x41   : > { %v1963_v0 = vadd.f32 %v1931_v35, %v1471_v31  ;;  %v1370_v8 = vmul.f32 %v3089_v56, %v2991_v44  ;;  %vm1187_vm5 = vcmp.lt.s32.totalorder %v729_v12, 15  ;;  %v1441_v49 = vmul.f32 %v3105_v62, %v2993_v45 }
  0x42   : > { %v1996_v3 = vmul.f32 %v2524_v6, %v1900_v15  ;;  %v1442_v42 = vmul.f32 %v3105_v62, %v3000_v50  ;;  %v2525_v7 = vsel %vm1187_vm5, 1.0, %v4307_v53  ;;  %v1401_v31 = vadd.f32 %v1369_v5, %v1329_v39 }
  0x43   : > { %v2027_v29 = vadd.f32 %v1963_v0, %v1899_v16  ;;  %v1402_v9 = vadd.f32 %v1370_v8, %v1330_v48  ;;  %v1543_v43 = vmul.f32 %v3079_v54, %v1505_v58  ;;  %v1544_v1 = vmul.f32 %v3079_v54, %v1506_v17 }
  0x44   : > { %v2028_v46 = vadd.f32 %v1996_v3, %v1964_v40  ;;  %v1583_v44 = vmul.f32 %v3084_v55, %v3117_v10  ;;  %v1473_v27 = vadd.f32 %v1441_v49, %v1401_v31  ;;  %v1584_v47 = vmul.f32 %v3084_v55, %v3119_v11 }
  0x45   : > { %v2256_v6 = vmul.f32 %v2027_v29, %v2027_v29  ;;  %v1474_v33 = vadd.f32 %v1442_v42, %v1402_v9  ;;  %v1655_v40 = vmul.f32 %v3100_v59, %v3121_v14  ;;  %v1656_v58 = vmul.f32 %v3100_v59, %v3131_v22 }
  0x46   : > { %v2697_v34 = vpack.c.bf16 %v2028_v46, %v2027_v29  ;;  %v2219_v30 = vadd.f32 %v2028_v46, %v2027_v29  ;;  %v2257_v13 = vmul.f32 %v2028_v46, %v2028_v46  ;;  %v1615_v39 = vadd.f32 %v1583_v44, %v1543_v43 }
  0x47   : > { %v1616_v35 = vadd.f32 %v1584_v47, %v1544_v1  ;;  %v1757_v10 = vmul.f32 %v3142_v28, %v3221_v38  ;;  %v1758_v48 = vmul.f32 %v3142_v28, %v1720_v57  ;;  %v1797_v11 = vmul.f32 %v3147_v32, %v3180_v63 }
  0x48   : > { %2698 = vst [vmem:[%s3234_s18] sm:$0xff] %v2697_v34   ;;  %v2288_v17 = vadd.f32 %v2257_v13, %v2256_v6  ;;  %v1798_v16 = vmul.f32 %v3147_v32, %v3155_v36  ;;  %v1687_v15 = vadd.f32 %v1655_v40, %v1615_v39  ;;  %v1869_v0 = vmul.f32 %v3162_v37, %v3170_v51  ;;  %v3312_v39 = vld [vmem:[#allocation2 + $0x57] sm:$0xff] }
  0x49   : > { %v1688_v12 = vadd.f32 %v1656_v58, %v1616_v35  ;;  %v1870_v5 = vmul.f32 %v3162_v37, %v3172_v52  ;;  %v1829_v8 = vadd.f32 %v1797_v11, %v1757_v10  ;;  %v678_v3 = vadd.s32 48, %v2928_v2 }
  0x4a   : > { %v1830_v38 = vadd.f32 %v1798_v16, %v1758_v48  ;;  %v679_v57 = vadd.s32 56, %v2928_v2  ;;  %v1933_v49 = vmul.f32 %v2509_v20, %v1687_v15  ;;  %v1333_v63 = vmul.f32 %v3062_v41, %v2993_v45  ;;  %v3318_v48 = vld [vmem:[#allocation2 + $0x5f] sm:$0xff] }
  0x4b   : > { %v1966_v42 = vadd.f32 %v1688_v12, %v1474_v33  ;;  %v1334_v36 = vmul.f32 %v3062_v41, %v3000_v50  ;;  %v1901_v29 = vadd.f32 %v1869_v0, %v1829_v8  ;;  %v750_v9 = vand.u32 15, %v678_v3 }
  0x4c   : > { %v1902_v31 = vadd.f32 %v1870_v5, %v1830_v38  ;;  %v757_v46 = vand.u32 15, %v679_v57  ;;  %v1965_v43 = vadd.f32 %v1933_v49, %v1473_v27  ;;  %v1373_v1 = vmul.f32 %v3089_v56, %v3013_v60  ;;  %v3328_v38 = vld [vmem:[#allocation2 + $0x61] sm:$0xff] }
  0x4d   : > { %v1374_v44 = vmul.f32 %v3089_v56, %v3015_v61  ;;  %v1445_v20 = vmul.f32 %v3105_v62, %v3033_v25  ;;  %vm1094_vm6 = vcmp.gt.s32.totalorder %v750_v9, 0  ;;  %v1446_v45 = vmul.f32 %v3105_v62, %v3035_v26 }
  0x4e   : > { %v1998_v6 = vmul.f32 %v2525_v7, %v1902_v31  ;;  %vm1191_vm7 = vcmp.lt.s32.totalorder %v757_v46, 15  ;;  %v2029_v50 = vadd.f32 %v1965_v43, %v1901_v29  ;;  %v2511_v33 = vsel %vm1094_vm6, 1.0, %v4307_v53  ;;  %v3341_v31 = vld [vmem:[%s2943_s29 + $0x50] sm:$0xff]  }
  0x4f   : > { %v2527_v27 = vsel %vm1191_vm7, 1.0, %v4307_v53  ;;  %v1405_v47 = vadd.f32 %v1373_v1, %v1333_v63  ;;  %v1406_v13 = vadd.f32 %v1374_v44, %v1334_v36  ;;  %v1547_v35 = vmul.f32 %v3079_v54, %v3121_v14  ;;  %v4310_v44 = vld [vmem:[#allocation14_spill] sm:$0xff] }
  0x50   : > { %v2030_v34 = vadd.f32 %v1998_v6, %v1966_v42  ;;  %v1548_v7 = vmul.f32 %v3079_v54, %v3131_v22  ;;  %v2220_v40 = vadd.f32 %v2219_v30, %v2029_v50  ;;  %v2258_v58 = vmul.f32 %v2029_v50, %v2029_v50  ;;  %v3326_v30 = vld [vmem:[#allocation2 + $0x59] sm:$0xff] }
  0x51   : > { %v1477_v10 = vadd.f32 %v1445_v20, %v1405_v47  ;;  %v1587_v11 = vmul.f32 %v3084_v55, %v3133_v23  ;;  %v1478_v12 = vadd.f32 %v1446_v45, %v1406_v13  ;;  %v1588_v0 = vmul.f32 %v3084_v55, %v3135_v24 }
  0x52   : > { %v2702_v16 = vpack.c.bf16 %v2030_v34, %v2029_v50  ;;  %v2259_v15 = vmul.f32 %v2030_v34, %v2030_v34  ;;  %v2221_v14 = vadd.f32 %v2220_v40, %v2030_v34  ;;  %v2289_v5 = vadd.f32 %v2288_v17, %v2258_v58  ;;  %v4311_v50 = vld [vmem:[#allocation5_spill] sm:$0xff] }
  0x53   : > { %v1619_v8 = vadd.f32 %v1587_v11, %v1547_v35  ;;  %v1659_v22 = vmul.f32 %v3100_v59, %v3312_v39  ;;  %v1620_v3 = vadd.f32 %v1588_v0, %v1548_v7  ;;  %v1660_v57 = vmul.f32 %v3100_v59, %v3318_v48  ;;  %v4312_v7 = vld [vmem:[#allocation15_spill] sm:$0xff] }
  0x54   : > { %2789 = vst [vmem:[%s3234_s18 + $0x8] sm:$0xff] %v2702_v16   ;;  %v1761_v49 = vmul.f32 %v3142_v28, %v3170_v51  ;;  %v1762_v42 = vmul.f32 %v3142_v28, %v3172_v52  ;;  %v2222_v17 = vadd.f32 %v2221_v14, %v3218_v21  ;;  %v2290_v63 = vadd.f32 %v2289_v5, %v2259_v15  ;;  %v4313_v16 = vld [vmem:[#allocation3_spill] sm:$0xff] }
  0x55   : > { %v1691_v36 = vadd.f32 %v1659_v22, %v1619_v8  ;;  %v1801_v29 = vmul.f32 %v3147_v32, %v3182_v4  ;;  %v1692_v9 = vadd.f32 %v1660_v57, %v1620_v3  ;;  %v1802_v46 = vmul.f32 %v3147_v32, %v3184_v18  ;;  %v4314_v8 = vld [vmem:[#allocation4_spill] sm:$0xff] }
  0x56   : > { %v1873_v43 = vmul.f32 %v3162_v37, %v3326_v30  ;;  %v1874_v51 = vmul.f32 %v3162_v37, %v3328_v38  ;;  %v2291_v52 = vadd.f32 %v2290_v63, %v3238_v19  ;;  %v2223_v20 = vadd.f32 %v2222_v17, %v4310_v44 }
  0x57   : > { %v1833_v21 = vadd.f32 %v1801_v29, %v1761_v49  ;;  %v1937_v1 = vmul.f32 %v2511_v33, %v1691_v36  ;;  %v1834_v6 = vadd.f32 %v1802_v46, %v1762_v42  ;;  %v1970_v45 = vadd.f32 %v1692_v9, %v1478_v12 }
  0x58   : > { %v2661_v47 = vunpack.c.h.bf16 %v4311_v50  ;;  %v2664_v34 = vunpack.c.l.bf16 %v3341_v31  ;;  %v2292_v40 = vadd.f32 %v2291_v52, %v4312_v7  ;;  %v680_v58 = vadd.s32 64, %v2928_v2 }
  0x59   : > { %v1905_v13 = vadd.f32 %v1873_v43, %v1833_v21  ;;  %v1969_v35 = vadd.f32 %v1937_v1, %v1477_v10  ;;  %v1906_v11 = vadd.f32 %v1874_v51, %v1834_v6  ;;  %v681_v33 = vadd.s32 72, %v2928_v2  ;;  %v3378_v21 = vld [vmem:[#allocation2 + $0x67] sm:$0xff]  ;;  %v3380_v1 = vld [vmem:[#allocation2 + $0x6f] sm:$0xff] }
  0x5a   : > { %v518_v15 = vmul.f32 %v2661_v47, %v4313_v16  ;;  %v519_v19 = vmul.f32 %v2664_v34, %v4313_v16  ;;  %v764_v14 = vand.u32 15, %v680_v58  ;;  %v1335_v12 = vmul.f32 %v3062_v41, %v3013_v60  ;;  %v3399_v58 = vld [vmem:[#allocation2 + $0x71] sm:$0xff] }
  0x5b   : > { %v2033_v0 = vadd.f32 %v1969_v35, %v1905_v13  ;;  %v1336_v5 = vmul.f32 %v3062_v41, %v3015_v61  ;;  %v2002_v10 = vmul.f32 %v2527_v27, %v1906_v11  ;;  %v771_v57 = vand.u32 15, %v681_v33  ;;  %v3406_v33 = vld [vmem:[%s2943_s29 + $0x58] sm:$0xff]  }
  0x5c   : > { %v556_v22 = vadd.f32 %v4314_v8, %v518_v15  ;;  %v557_v3 = vadd.f32 %v4314_v8, %v519_v19  ;;  %vm1096_vm8 = vcmp.gt.s32.totalorder %v764_v14, 0  ;;  %v1375_v17 = vmul.f32 %v3089_v56, %v3033_v25 }
  0x5d   : > { %v2224_v49 = vadd.f32 %v2223_v20, %v2033_v0  ;;  %v2262_v42 = vmul.f32 %v2033_v0, %v2033_v0  ;;  %v2034_v63 = vadd.f32 %v2002_v10, %v1970_v45  ;;  %v2512_v60 = vsel %vm1096_vm8, 1.0, %v4307_v53  ;;  %v4315_v20 = vld [vmem:[#allocation6_spill] sm:$0xff]  ;;  %v4316_v45 = vld [vmem:[#allocation7_spill] sm:$0xff] }
  0x5e   : > { %v3366_v36 = vmax.f32 %v556_v22, 0.0  ;;  %v3368_v29 = vmax.f32 %v557_v3, 0.0  ;;  %vm1193_vm9 = vcmp.lt.s32.totalorder %v771_v57, 15  ;;  %v1376_v27 = vmul.f32 %v3089_v56, %v3035_v26 }
  0x5f   : > { %v2293_v61 = vadd.f32 %v2292_v40, %v2262_v42  ;;  %v1407_v9 = vadd.f32 %v1375_v17, %v1335_v12  ;;  %v2712_v46 = vpack.c.bf16 %v2034_v63, %v2033_v0  ;;  %v3373_v43 = vadd.f32 %v2224_v49, %v2034_v63  ;;  %v3397_v40 = vld [vmem:[#allocation2 + $0x69] sm:$0xff] }
  0x60   : > { %v2263_v51 = vmul.f32 %v2034_v63, %v2034_v63  ;;  %655 = vst [vmem:[#allocation2 + $0xb0] sm:$0xff] %v3366_v36  ;;  %656 = vst [vmem:[#allocation2 + $0xb8] sm:$0xff] %v3368_v29  ;;  %v2528_v52 = vsel %vm1193_vm9, 1.0, %v4307_v53  ;;  %v1408_v44 = vadd.f32 %v1376_v27, %v1336_v5  ;;  %v1447_v6 = vmul.f32 %v3105_v62, %v4315_v20 }
  0x61   : > { %v1448_v50 = vmul.f32 %v3105_v62, %v4316_v45  ;;  %v1549_v47 = vmul.f32 %v3079_v54, %v3133_v23  ;;  %2791 = vst [vmem:[%s3234_s18 + $0x18] sm:$0xff] %v2712_v46   ;;  %v1550_v13 = vmul.f32 %v3079_v54, %v3135_v24  ;;  %v1589_v35 = vmul.f32 %v3084_v55, %v3312_v39 }
  0x62   : > { %v3389_v34 = vadd.f32 %v2293_v61, %v2263_v51  ;;  %v1590_v7 = vmul.f32 %v3084_v55, %v3318_v48  ;;  %v1479_v11 = vadd.f32 %v1447_v6, %v1407_v9  ;;  %v1661_v23 = vmul.f32 %v3100_v59, %v3378_v21 }
  0x63   : > { %v1480_v15 = vadd.f32 %v1448_v50, %v1408_v44  ;;  %v1662_v19 = vmul.f32 %v3100_v59, %v3380_v1  ;;  %v1621_v24 = vadd.f32 %v1589_v35, %v1549_v47  ;;  %v1763_v14 = vmul.f32 %v3142_v28, %v3182_v4 }
  0x64   : > { %v1622_v0 = vadd.f32 %v1590_v7, %v1550_v13  ;;  %v1764_v12 = vmul.f32 %v3142_v28, %v3184_v18  ;;  %v1803_v5 = vmul.f32 %v3147_v32, %v3326_v30  ;;  %v1804_v10 = vmul.f32 %v3147_v32, %v3328_v38 }
  0x65   : > { %v1875_v22 = vmul.f32 %v3162_v37, %v3397_v40  ;;  %v1876_v3 = vmul.f32 %v3162_v37, %v3399_v58  ;;  %v1693_v57 = vadd.f32 %v1661_v23, %v1621_v24  ;;  %v2665_v42 = vunpack.c.h.bf16 %v3341_v31 }
  0x66   : > { %v1694_v49 = vadd.f32 %v1662_v19, %v1622_v0  ;;  %v2668_v4 = vunpack.c.l.bf16 %v3406_v33  ;;  %v1835_v17 = vadd.f32 %v1803_v5, %v1763_v14  ;;  %v1836_v18 = vadd.f32 %v1804_v10, %v1764_v12  ;;  %v4317_v5 = vld [vmem:[#allocation8_spill] sm:$0xff] }
  0x67   : > { %v682_v63 = vadd.s32 80, %v2928_v2  ;;  %v683_v61 = vadd.s32 88, %v2928_v2  ;;  %v1939_v27 = vmul.f32 %v2512_v60, %v1693_v57  ;;  %v520_v46 = vmul.f32 %v2665_v42, %v4313_v16 }
  0x68   : > { %v1972_v9 = vadd.f32 %v1694_v49, %v1480_v15  ;;  %v521_v51 = vmul.f32 %v2668_v4, %v4313_v16  ;;  %v1907_v44 = vadd.f32 %v1875_v22, %v1835_v17  ;;  %v1908_v6 = vadd.f32 %v1876_v3, %v1836_v18  ;;  %v4318_v22 = vld [vmem:[#allocation9_spill] sm:$0xff]  ;;  %v3449_v4 = vld [vmem:[#allocation2 + $0x77] sm:$0xff] }
  0x69   : > { %v778_v50 = vand.u32 15, %v682_v63  ;;  %v785_v47 = vand.u32 15, %v683_v61  ;;  %v1971_v13 = vadd.f32 %v1939_v27, %v1479_v11  ;;  %v558_v31 = vadd.f32 %v4314_v8, %v520_v46  ;;  %v3451_v17 = vld [vmem:[#allocation2 + $0x7f] sm:$0xff] }
  0x6a   : > { %v559_v35 = vadd.f32 %v4314_v8, %v521_v51  ;;  %v1337_v7 = vmul.f32 %v3062_v41, %v3033_v25  ;;  %v2004_v23 = vmul.f32 %v2528_v52, %v1908_v6  ;;  %v1338_v60 = vmul.f32 %v3062_v41, %v3035_v26  ;;  %v3465_v6 = vld [vmem:[#allocation2 + $0x81] sm:$0xff] }
  0x6b   : > { %vm1098_vm10 = vcmp.gt.s32.totalorder %v778_v50, 0  ;;  %vm1195_vm11 = vcmp.lt.s32.totalorder %v785_v47, 15  ;;  %v2035_v15 = vadd.f32 %v1971_v13, %v1907_v44  ;;  %v3432_v19 = vmax.f32 %v558_v31, 0.0  ;;  %v3463_v44 = vld [vmem:[#allocation2 + $0x79] sm:$0xff] }
  0x6c   : > { %v3434_v24 = vmax.f32 %v559_v35, 0.0  ;;  %v2513_v11 = vsel %vm1098_vm10, 1.0, %v4307_v53  ;;  %v2036_v0 = vadd.f32 %v2004_v23, %v1972_v9  ;;  %v2529_v14 = vsel %vm1195_vm11, 1.0, %v4307_v53  ;;  %v3474_v47 = vld [vmem:[%s2943_s29 + $0x60] sm:$0xff]  }
  0x6d   : > { %v1377_v12 = vmul.f32 %v3089_v56, %v4315_v20  ;;  %v1378_v25 = vmul.f32 %v3089_v56, %v4316_v45  ;;  %v2226_v52 = vadd.f32 %v3373_v43, %v2035_v15  ;;  %v2264_v26 = vmul.f32 %v2035_v15, %v2035_v15  ;;  %657 = vst [vmem:[#allocation2 + $0xc0] sm:$0xff] %v3432_v19 }
  0x6e   : > { %658 = vst [vmem:[#allocation2 + $0xc8] sm:$0xff] %v3434_v24  ;;  %v1449_v10 = vmul.f32 %v3105_v62, %v4317_v5  ;;  %v1450_v53 = vmul.f32 %v3105_v62, %v4318_v22  ;;  %v2717_v3 = vpack.c.bf16 %v2036_v0, %v2035_v15  ;;  %v2265_v57 = vmul.f32 %v2036_v0, %v2036_v0 }
  0x6f   : > { %v1409_v49 = vadd.f32 %v1377_v12, %v1337_v7  ;;  %v1410_v42 = vadd.f32 %v1378_v25, %v1338_v60  ;;  %v2227_v43 = vadd.f32 %v2226_v52, %v2036_v0  ;;  %v2295_v18 = vadd.f32 %v3389_v34, %v2264_v26 }
  0x70   : > { %v1551_v63 = vmul.f32 %v3079_v54, %v3312_v39  ;;  %v1552_v61 = vmul.f32 %v3079_v54, %v3318_v48  ;;  %2792 = vst [vmem:[%s3234_s18 + $0x20] sm:$0xff] %v2717_v3   ;;  %v1591_v46 = vmul.f32 %v3084_v55, %v3378_v21  ;;  %v1592_v51 = vmul.f32 %v3084_v55, %v3380_v1 }
  0x71   : > { %v1481_v27 = vadd.f32 %v1449_v10, %v1409_v49  ;;  %v1482_v9 = vadd.f32 %v1450_v53, %v1410_v42  ;;  %v2296_v34 = vadd.f32 %v2295_v18, %v2265_v57  ;;  %v1663_v39 = vmul.f32 %v3100_v59, %v3449_v4 }
  0x72   : > { %v1664_v48 = vmul.f32 %v3100_v59, %v3451_v17  ;;  %v1765_v50 = vmul.f32 %v3142_v28, %v3326_v30  ;;  %v1623_v13 = vadd.f32 %v1591_v46, %v1551_v63  ;;  %v1624_v31 = vadd.f32 %v1592_v51, %v1552_v61 }
  0x73   : > { %v1766_v35 = vmul.f32 %v3142_v28, %v3328_v38  ;;  %v1805_v7 = vmul.f32 %v3147_v32, %v3397_v40  ;;  %v1806_v23 = vmul.f32 %v3147_v32, %v3399_v58  ;;  %v1877_v60 = vmul.f32 %v3162_v37, %v3463_v44 }
  0x74   : > { %v1878_v15 = vmul.f32 %v3162_v37, %v3465_v6  ;;  %v2669_v30 = vunpack.c.h.bf16 %v3406_v33  ;;  %v1695_v0 = vadd.f32 %v1663_v39, %v1623_v13  ;;  %v1696_v12 = vadd.f32 %v1664_v48, %v1624_v31 }
  0x75   : > { %v1837_v25 = vadd.f32 %v1805_v7, %v1765_v50  ;;  %v2672_v52 = vunpack.c.l.bf16 %v3474_v47  ;;  %v1838_v38 = vadd.f32 %v1806_v23, %v1766_v35  ;;  %v684_v10 = vadd.s32 96, %v2928_v2  ;;  %v4323_v7 = vld [vmem:[#allocation10_spill] sm:$0xff] }
  0x76   : > { %v522_v26 = vmul.f32 %v2669_v30, %v4313_v16  ;;  %v685_v53 = vadd.s32 104, %v2928_v2  ;;  %v1941_v57 = vmul.f32 %v2513_v11, %v1695_v0  ;;  %v1974_v49 = vadd.f32 %v1696_v12, %v1482_v9  ;;  %v4324_v30 = vld [vmem:[#allocation11_spill] sm:$0xff]  ;;  %v3528_v12 = vld [vmem:[#allocation2 + $0x87] sm:$0xff] }
  0x77   : > { %v1909_v3 = vadd.f32 %v1877_v60, %v1837_v25  ;;  %v523_v42 = vmul.f32 %v2672_v52, %v4313_v16  ;;  %v1910_v18 = vadd.f32 %v1878_v15, %v1838_v38  ;;  %v792_v63 = vand.u32 15, %v684_v10 }
  0x78   : > { %v560_v33 = vadd.f32 %v4314_v8, %v522_v26  ;;  %v799_v61 = vand.u32 15, %v685_v53  ;;  %v1973_v46 = vadd.f32 %v1941_v57, %v1481_v27  ;;  %v1339_v39 = vmul.f32 %v3062_v41, %v4315_v20  ;;  %v3532_v53 = vld [vmem:[#allocation2 + $0x8f] sm:$0xff] }
  0x79   : > { %v561_v51 = vadd.f32 %v4314_v8, %v523_v42  ;;  %v1340_v48 = vmul.f32 %v3062_v41, %v4316_v45  ;;  %v2006_v50 = vmul.f32 %v2529_v14, %v1910_v18  ;;  %vm3500_vm12 = vcmp.gt.s32.totalorder %v792_v63, 0  ;;  %v3510_v8 = vld [vmem:[#allocation2] sm:$0xff]  ;;  %v3543_v63 = vld [vmem:[#allocation2 + $0x89] sm:$0xff] }
  0x7a   : > { %v3498_v13 = vmax.f32 %v560_v33, 0.0  ;;  %vm3504_vm13 = vcmp.lt.s32.totalorder %v799_v61, 15  ;;  %v2037_v27 = vadd.f32 %v1973_v46, %v1909_v3  ;;  %v2514_v20 = vsel %vm3500_vm12, 1.0, %v3510_v8  ;;  %v3545_v61 = vld [vmem:[#allocation2 + $0x91] sm:$0xff] }
  0x7b   : > { %v3508_v9 = vmax.f32 %v561_v51, 0.0  ;;  %v2530_v45 = vsel %vm3504_vm13, 1.0, %v3510_v8  ;;  %v2038_v14 = vadd.f32 %v2006_v50, %v1974_v49  ;;  %v1379_v31 = vmul.f32 %v3089_v56, %v4317_v5 }
  0x7c   : > { %659 = vst [vmem:[#allocation2 + $0xd0] sm:$0xff] %v3498_v13  ;;  %v1380_v35 = vmul.f32 %v3089_v56, %v4318_v22  ;;  %v1451_v23 = vmul.f32 %v3105_v62, %v4323_v7  ;;  %v2228_v60 = vadd.f32 %v2227_v43, %v2037_v27  ;;  %v2266_v15 = vmul.f32 %v2037_v27, %v2037_v27 }
  0x7d   : > { %660 = vst [vmem:[#allocation2 + $0xd8] sm:$0xff] %v3508_v9  ;;  %v1452_v0 = vmul.f32 %v3105_v62, %v4324_v30  ;;  %v1553_v25 = vmul.f32 %v3079_v54, %v3378_v21  ;;  %v2722_v52 = vpack.c.bf16 %v2038_v14, %v2037_v27  ;;  %v2267_v38 = vmul.f32 %v2038_v14, %v2038_v14 }
  0x7e   : > { %v1411_v26 = vadd.f32 %v1379_v31, %v1339_v39  ;;  %v1412_v10 = vadd.f32 %v1380_v35, %v1340_v48  ;;  %v2229_v3 = vadd.f32 %v2228_v60, %v2038_v14  ;;  %v2297_v43 = vadd.f32 %v2296_v34, %v2266_v15  ;;  %v3552_v39 = vld [vmem:[%s2943_s29 + $0x68] sm:$0xff]  }
  0x7f   : > { %v1554_v57 = vmul.f32 %v3079_v54, %v3380_v1  ;;  %v1593_v49 = vmul.f32 %v3084_v55, %v3449_v4  ;;  %2793 = vst [vmem:[%s3234_s18 + $0x28] sm:$0xff] %v2722_v52   ;;  %v1594_v21 = vmul.f32 %v3084_v55, %v3451_v17  ;;  %v1665_v33 = vmul.f32 %v3100_v59, %v3528_v12 }
  0x80   : > { %v1483_v42 = vadd.f32 %v1451_v23, %v1411_v26  ;;  %v1484_v18 = vadd.f32 %v1452_v0, %v1412_v10  ;;  %v2298_v34 = vadd.f32 %v2297_v43, %v2267_v38  ;;  %v1666_v1 = vmul.f32 %v3100_v59, %v3532_v53  ;;  %v3569_v0 = vld [vmem:[%s4263_s3] ss:$0 sm:$0xff] }
  0x81   : > { %v1625_v46 = vadd.f32 %v1593_v49, %v1553_v25  ;;  %v1767_v51 = vmul.f32 %v3142_v28, %v3397_v40  ;;  %v1626_v48 = vadd.f32 %v1594_v21, %v1554_v57  ;;  %v1768_v50 = vmul.f32 %v3142_v28, %v3399_v58 }
  0x82   : > { %v1807_v11 = vmul.f32 %v3147_v32, %v3463_v44  ;;  %v1808_v16 = vmul.f32 %v3147_v32, %v3465_v6  ;;  %v1879_v14 = vmul.f32 %v3162_v37, %v3543_v63  ;;  %v1880_v31 = vmul.f32 %v3162_v37, %v3545_v61 }
  0x83   : > { %v1697_v27 = vadd.f32 %v1665_v33, %v1625_v46  ;;  %v2673_v40 = vunpack.c.h.bf16 %v3474_v47  ;;  %v1698_v35 = vadd.f32 %v1666_v1, %v1626_v48  ;;  %v2676_v58 = vunpack.c.l.bf16 %v3552_v39 }
  0x84   : > { %v1839_v23 = vadd.f32 %v1807_v11, %v1767_v51  ;;  %v1840_v60 = vadd.f32 %v1808_v16, %v1768_v50  ;;  %v686_v52 = vadd.s32 112, %v2928_v2  ;;  %v687_v38 = vadd.s32 120, %v2928_v2 }
  0x85   : > { %v1943_v15 = vmul.f32 %v2514_v20, %v1697_v27  ;;  %v524_v25 = vmul.f32 %v3569_v0, %v2673_v40  ;;  %v1976_v47 = vadd.f32 %v1698_v35, %v1484_v18  ;;  %v525_v43 = vmul.f32 %v3569_v0, %v2676_v58  ;;  %v3578_v20 = vld [vmem:[%s4263_s3 + $0x1] ss:$0 sm:$0xff] }
  0x86   : > { %v1911_v26 = vadd.f32 %v1879_v14, %v1839_v23  ;;  %v1912_v10 = vadd.f32 %v1880_v31, %v1840_v60  ;;  %v806_v21 = vand.u32 15, %v686_v52  ;;  %v813_v33 = vand.u32 15, %v687_v38  ;;  %v4329_v23 = vld [vmem:[#allocation12_spill] sm:$0xff]  ;;  %v4330_v58 = vld [vmem:[#allocation13_spill] sm:$0xff] }
  0x87   : > { %v1975_v57 = vadd.f32 %v1943_v15, %v1483_v42  ;;  %v562_v49 = vadd.f32 %v3578_v20, %v524_v25  ;;  %v563_v1 = vadd.f32 %v3578_v20, %v525_v43  ;;  %v1341_v51 = vmul.f32 %v3062_v41, %v4317_v5  ;;  %v3614_v15 = vld [vmem:[#allocation2 + $0x97] sm:$0xff] }
  0x88   : > { %v2008_v46 = vmul.f32 %v2530_v45, %v1912_v10  ;;  %v1342_v18 = vmul.f32 %v3062_v41, %v4318_v22  ;;  %vm3588_vm14 = vcmp.gt.s32.totalorder %v806_v21, 0  ;;  %vm3592_vm15 = vcmp.lt.s32.totalorder %v813_v33, 15  ;;  %v3616_v10 = vld [vmem:[#allocation2 + $0x9f] sm:$0xff] }
  0x89   : > { %v2039_v48 = vadd.f32 %v1975_v57, %v1911_v26  ;;  %v3586_v42 = vmax.f32 %v562_v49, 0.0  ;;  %v3596_v16 = vmax.f32 %v563_v1, 0.0  ;;  %v2515_v5 = vsel %vm3588_vm14, 1.0, %v3510_v8  ;;  %v3627_v57 = vld [vmem:[#allocation2 + $0x99] sm:$0xff] }
  0x8a   : > { %v2040_v45 = vadd.f32 %v2008_v46, %v1976_v47  ;;  %v2531_v41 = vsel %vm3592_vm15, 1.0, %v3510_v8  ;;  %v1381_v14 = vmul.f32 %v3089_v56, %v4323_v7  ;;  %v1382_v31 = vmul.f32 %v3089_v56, %v4324_v30  ;;  %v3633_v46 = vld [vmem:[#allocation2 + $0xa1] sm:$0xff] }
  0x8b   : > { %v2230_v22 = vadd.f32 %v2229_v3, %v2039_v48  ;;  %v2268_v27 = vmul.f32 %v2039_v48, %v2039_v48  ;;  %661 = vst [vmem:[#allocation2 + $0xe0] sm:$0xff] %v3586_v42  ;;  %662 = vst [vmem:[#allocation2 + $0xe8] sm:$0xff] %v3596_v16  ;;  %v1453_v60 = vmul.f32 %v3105_v62, %v4329_v23 }
  0x8c   : > { %v2727_v40 = vpack.c.bf16 %v2040_v45, %v2039_v48  ;;  %v2269_v35 = vmul.f32 %v2040_v45, %v2040_v45  ;;  %v1454_v3 = vmul.f32 %v3105_v62, %v4330_v58  ;;  %v1413_v38 = vadd.f32 %v1381_v14, %v1341_v51 }
  0x8d   : > { %v2231_v25 = vadd.f32 %v2230_v22, %v2040_v45  ;;  %v2299_v52 = vadd.f32 %v2298_v34, %v2268_v27  ;;  %v1414_v26 = vadd.f32 %v1382_v31, %v1342_v18  ;;  %v1555_v56 = vmul.f32 %v3079_v54, %v3449_v4 }
  0x8e   : > { %2794 = vst [vmem:[%s3234_s18 + $0x30] sm:$0xff] %v2727_v40   ;;  %v1556_v47 = vmul.f32 %v3079_v54, %v3451_v17  ;;  %v1595_v43 = vmul.f32 %v3084_v55, %v3528_v12  ;;  %v1596_v62 = vmul.f32 %v3084_v55, %v3532_v53  ;;  %v1485_v49 = vadd.f32 %v1453_v60, %v1413_v38  ;;  %v3640_v55 = vld [vmem:[%s2943_s29 + $0x70] sm:$0xff]  }
  0x8f   : > { %v3629_v34 = vadd.f32 %v2299_v52, %v2269_v35  ;;  %v1486_v21 = vadd.f32 %v1454_v3, %v1414_v26  ;;  %v1667_v33 = vmul.f32 %v3100_v59, %v3614_v15  ;;  %v1668_v54 = vmul.f32 %v3100_v59, %v3616_v10  ;;  %v3662_v26 = vld [vmem:[%s4264_s4 + $0x1] ss:$0 sm:$0xff] }
  0x90   : > { %v1627_v4 = vadd.f32 %v1595_v43, %v1555_v56  ;;  %v1628_v1 = vadd.f32 %v1596_v62, %v1556_v47  ;;  %v1769_v17 = vmul.f32 %v3142_v28, %v3463_v44  ;;  %v1770_v51 = vmul.f32 %v3142_v28, %v3465_v6  ;;  %v3671_v62 = vld [vmem:[#allocation2 + $0xa8] sm:$0xff] }
  0x91   : > { %v1809_v18 = vmul.f32 %v3147_v32, %v3543_v63  ;;  %v1810_v48 = vmul.f32 %v3147_v32, %v3545_v61  ;;  %v1881_v50 = vmul.f32 %v3162_v37, %v3627_v57  ;;  %v1882_v59 = vmul.f32 %v3162_v37, %v3633_v46 }
  0x92   : > { %v1699_v11 = vadd.f32 %v1667_v33, %v1627_v4  ;;  %v1700_v45 = vadd.f32 %v1668_v54, %v1628_v1  ;;  %v2677_v44 = vunpack.c.h.bf16 %v3552_v39  ;;  %v2680_v28 = vunpack.c.l.bf16 %v3640_v55 }
  0x93   : > { %v1841_v22 = vadd.f32 %v1809_v18, %v1769_v17  ;;  %v1842_v27 = vadd.f32 %v1810_v48, %v1770_v51  ;;  %v688_v6 = vadd.s32 128, %v2928_v2  ;;  %v689_v40 = vadd.s32 136, %v2928_v2 }
  0x94   : > { %v1945_v14 = vmul.f32 %v2515_v5, %v1699_v11  ;;  %v1978_v31 = vadd.f32 %v1700_v45, %v1486_v21  ;;  %v526_v32 = vmul.f32 %v3569_v0, %v2677_v44  ;;  %v527_v3 = vmul.f32 %v3569_v0, %v2680_v28  ;;  %v3709_v44 = vld [vmem:[#allocation2 + $0xa7] sm:$0xff] }
  0x95   : > { %v1913_v35 = vadd.f32 %v1881_v50, %v1841_v22  ;;  %v1914_v60 = vadd.f32 %v1882_v59, %v1842_v27  ;;  %v820_v52 = vand.u32 15, %v688_v6  ;;  %v827_v38 = vand.u32 15, %v689_v40  ;;  %v3702_v50 = vld [vmem:[%s4264_s4 + $0x7] ss:$0 sm:$0xff]  ;;  %v3719_v6 = vld [vmem:[%s4264_s4] ss:$0 sm:$0xff] }
  0x96   : > { %v1977_v37 = vadd.f32 %v1945_v14, %v1485_v49  ;;  %v564_v39 = vadd.f32 %v3578_v20, %v526_v32  ;;  %v1343_v5 = vmul.f32 %v3662_v26, %v4323_v7  ;;  %v565_v47 = vadd.f32 %v3578_v20, %v527_v3 }
  0x97   : > { %v2010_v56 = vmul.f32 %v2531_v41, %v1914_v60  ;;  %vm3667_vm0 = vcmp.gt.s32.totalorder %v820_v52, 0  ;;  %v1344_v49 = vmul.f32 %v3662_v26, %v4324_v30  ;;  %vm3680_vm1 = vcmp.lt.s32.totalorder %v827_v38, 15  ;;  %v3692_v30 = vld [vmem:[%s4264_s4 + $0x4] ss:$0 sm:$0xff]  ;;  %v3736_v60 = vld [vmem:[#allocation2 + $0xa9] sm:$0xff]  ;;  %v3752_v38 = vld [vmem:[%s2943_s29 + $0x78] sm:$0xff]  }
  0x98   : > { %v2041_v21 = vadd.f32 %v1977_v37, %v1913_v35  ;;  %v3675_v33 = vmax.f32 %v564_v39, 0.0  ;;  %v2516_v4 = vsel %vm3667_vm0, 1.0, %v3510_v8  ;;  %v3684_v1 = vmax.f32 %v565_v47, 0.0  ;;  %v3757_v47 = vld [vmem:[%s4264_s4 + $0x2] ss:$0 sm:$0xff] }
  0x99   : > { %v2042_v41 = vadd.f32 %v2010_v56, %v1978_v31  ;;  %v2532_v54 = vsel %vm3680_vm1, 1.0, %v3510_v8  ;;  %v1383_v17 = vmul.f32 %v3692_v30, %v4329_v23  ;;  %v1384_v48 = vmul.f32 %v3692_v30, %v4330_v58  ;;  %v3711_v58 = vld [vmem:[#allocation2 + $0xaf] sm:$0xff] }
  0x9a   : > { %v2232_v51 = vadd.f32 %v2231_v25, %v2041_v21  ;;  %v2270_v18 = vmul.f32 %v2041_v21, %v2041_v21  ;;  %663 = vst [vmem:[#allocation2 + $0xf0] sm:$0xff] %v3675_v33  ;;  %v1455_v11 = vmul.f32 %v3702_v50, %v3671_v62  ;;  %664 = vst [vmem:[#allocation2 + $0xf8] sm:$0xff] %v3684_v1 }
  0x9b   : > { %v2732_v45 = vpack.c.bf16 %v2042_v41, %v2041_v21  ;;  %v2271_v59 = vmul.f32 %v2042_v41, %v2042_v41  ;;  %v1415_v23 = vadd.f32 %v1383_v17, %v1343_v5  ;;  %v1456_v25 = vmul.f32 %v3702_v50, %v3366_v36  ;;  %v3772_v21 = vld [vmem:[%s4264_s4 + $0x5] ss:$0 sm:$0xff] }
  0x9c   : > { %v3713_v22 = vadd.f32 %v2232_v51, %v2042_v41  ;;  %v2301_v27 = vadd.f32 %v3629_v34, %v2270_v18  ;;  %v1416_v28 = vadd.f32 %v1384_v48, %v1344_v49  ;;  %v1557_v14 = vmul.f32 %v3719_v6, %v3528_v12  ;;  %v3730_v34 = vld [vmem:[%s4264_s4 + $0x3] ss:$0 sm:$0xff]  ;;  %v3738_v12 = vld [vmem:[#allocation2 + $0xb1] sm:$0xff] }
  0x9d   : > { %2795 = vst [vmem:[%s3234_s18 + $0x38] sm:$0xff] %v2732_v45   ;;  %v1487_v31 = vadd.f32 %v1455_v11, %v1415_v23  ;;  %v1558_v32 = vmul.f32 %v3719_v6, %v3532_v53  ;;  %v1597_v40 = vmul.f32 %v3730_v34, %v3614_v15  ;;  %v1598_v35 = vmul.f32 %v3730_v34, %v3616_v10  ;;  %v3745_v53 = vld [vmem:[%s4264_s4 + $0x6] ss:$0 sm:$0xff] }
  0x9e   : > { %v3740_v3 = vadd.f32 %v2301_v27, %v2271_v59  ;;  %v1488_v52 = vadd.f32 %v1456_v25, %v1416_v28  ;;  %v1669_v37 = vmul.f32 %v3745_v53, %v3709_v44  ;;  %v1670_v39 = vmul.f32 %v3745_v53, %v3711_v58 }
  0x9f   : > { %v1629_v5 = vadd.f32 %v1597_v40, %v1557_v14  ;;  %v1630_v56 = vadd.f32 %v1598_v35, %v1558_v32  ;;  %v1771_v43 = vmul.f32 %v3757_v47, %v3543_v63  ;;  %v1772_v49 = vmul.f32 %v3757_v47, %v3545_v61  ;;  %v3781_v63 = vld [vmem:[%s4264_s4 + $0x8] ss:$0 sm:$0xff] }
  0xa0   : > { %v1811_v41 = vmul.f32 %v3772_v21, %v3627_v57  ;;  %v1812_v17 = vmul.f32 %v3772_v21, %v3633_v46  ;;  %v1883_v61 = vmul.f32 %v3781_v63, %v3736_v60  ;;  %v1884_v51 = vmul.f32 %v3781_v63, %v3738_v12 }
  0xa1   : > { %v1701_v18 = vadd.f32 %v1669_v37, %v1629_v5  ;;  %v1702_v48 = vadd.f32 %v1670_v39, %v1630_v56  ;;  %v2681_v11 = vunpack.c.h.bf16 %v3640_v55  ;;  %v2684_v45 = vunpack.c.l.bf16 %v3752_v38 }
  0xa2   : > { %v1843_v59 = vadd.f32 %v1811_v41, %v1771_v43  ;;  %v1844_v23 = vadd.f32 %v1812_v17, %v1772_v49  ;;  %v690_v25 = vadd.s32 144, %v2928_v2  ;;  %v691_v27 = vadd.s32 152, %v2928_v2  ;;  %v3854_v41 = vld [vmem:[#allocation2 + $0xb9] sm:$0xff]  ;;  %v3856_v17 = vld [vmem:[#allocation2 + $0xc1] sm:$0xff] }
  0xa3   : > { %v1947_v28 = vmul.f32 %v2516_v4, %v1701_v18  ;;  %v1980_v14 = vadd.f32 %v1702_v48, %v1488_v52  ;;  %v528_v32 = vmul.f32 %v3569_v0, %v2681_v11  ;;  %v529_v40 = vmul.f32 %v3569_v0, %v2684_v45  ;;  %v2841_v4 = vld [vmem:[#allocation2 + $0x98] sm:$0xff] }
  0xa4   : > { %v1915_v35 = vadd.f32 %v1883_v61, %v1843_v59  ;;  %v1916_v55 = vadd.f32 %v1884_v51, %v1844_v23  ;;  %v834_v37 = vand.u32 15, %v690_v25  ;;  %v841_v39 = vand.u32 15, %v691_v27 }
  0xa5   : > { %v1979_v5 = vadd.f32 %v1947_v28, %v1487_v31  ;;  %v566_v56 = vadd.f32 %v3578_v20, %v528_v32  ;;  %v567_v43 = vadd.f32 %v3578_v20, %v529_v40  ;;  %v1345_v52 = vmul.f32 %v2841_v4, %v3662_v26  ;;  %v2842_v31 = vld [vmem:[#allocation2 + $0xa0] sm:$0xff] }
  0xa6   : > { %v2012_v49 = vmul.f32 %v2532_v54, %v1916_v55  ;;  %vm3806_vm2 = vcmp.gt.s32.totalorder %v834_v37, 0  ;;  %vm3810_vm3 = vcmp.lt.s32.totalorder %v841_v39, 15  ;;  %v1346_v61 = vmul.f32 %v2842_v31, %v3662_v26  ;;  %v3837_v55 = vld [vmem:[#allocation2 + $0xb7] sm:$0xff]  ;;  %v3839_v37 = vld [vmem:[#allocation2 + $0xbf] sm:$0xff] }
  0xa7   : > { %v2043_v51 = vadd.f32 %v1979_v5, %v1915_v35  ;;  %v3815_v18 = vmax.f32 %v566_v56, 0.0  ;;  %v3817_v48 = vmax.f32 %v567_v43, 0.0  ;;  %v2517_v7 = vsel %vm3806_vm2, 1.0, %v3510_v8 }
  0xa8   : > { %v2044_v54 = vadd.f32 %v2012_v49, %v1980_v14  ;;  %v2533_v11 = vsel %vm3810_vm3, 1.0, %v3510_v8  ;;  %v1385_v45 = vmul.f32 %v3692_v30, %v3671_v62  ;;  %v1386_v59 = vmul.f32 %v3692_v30, %v3366_v36 }
  0xa9   : > { %4340 = vst [vmem:[#allocation14_spill] sm:$0xff] %v3815_v18  ;;  %4341 = vst [vmem:[#allocation5_spill] sm:$0xff] %v3817_v48  ;;  %v2234_v23 = vadd.f32 %v3713_v22, %v2043_v51  ;;  %v2272_v25 = vmul.f32 %v2043_v51, %v2043_v51  ;;  %v1457_v27 = vmul.f32 %v3702_v50, %v3368_v29 }
  0xaa   : > { %665 = vst [vmem:[#allocation2 + $0x100] sm:$0xff] %v3815_v18  ;;  %666 = vst [vmem:[#allocation2 + $0x108] sm:$0xff] %v3817_v48  ;;  %v1458_v28 = vmul.f32 %v3702_v50, %v3432_v19  ;;  %v2737_v14 = vpack.c.bf16 %v2044_v54, %v2043_v51  ;;  %v2273_v32 = vmul.f32 %v2044_v54, %v2044_v54 }
  0xab   : > { %v1417_v40 = vadd.f32 %v1385_v45, %v1345_v52  ;;  %v1418_v35 = vadd.f32 %v1386_v59, %v1346_v61  ;;  %v2235_v22 = vadd.f32 %v2234_v23, %v2044_v54  ;;  %v2303_v39 = vadd.f32 %v3740_v3, %v2272_v25  ;;  %v3864_v61 = vld [vmem:[%s405_s9] sm:$0xff]  }
  0xac   : > { %v1559_v5 = vmul.f32 %v3719_v6, %v3614_v15  ;;  %v1560_v56 = vmul.f32 %v3719_v6, %v3616_v10  ;;  %2796 = vst [vmem:[%s3234_s18 + $0x40] sm:$0xff] %v2737_v14   ;;  %v1599_v52 = vmul.f32 %v3730_v34, %v3709_v44  ;;  %v1600_v49 = vmul.f32 %v3730_v34, %v3711_v58 }
  0xad   : > { %v1489_v43 = vadd.f32 %v1457_v27, %v1417_v40  ;;  %v1490_v4 = vadd.f32 %v1458_v28, %v1418_v35  ;;  %v2304_v3 = vadd.f32 %v2303_v39, %v2273_v32  ;;  %v1671_v15 = vmul.f32 %v3745_v53, %v3837_v55 }
  0xae   : > { %v1672_v10 = vmul.f32 %v3745_v53, %v3839_v37  ;;  %v1773_v31 = vmul.f32 %v3757_v47, %v3627_v57  ;;  %v1631_v51 = vadd.f32 %v1599_v52, %v1559_v5  ;;  %v1632_v54 = vadd.f32 %v1600_v49, %v1560_v56 }
  0xaf   : > { %v1774_v45 = vmul.f32 %v3757_v47, %v3633_v46  ;;  %v1813_v59 = vmul.f32 %v3772_v21, %v3736_v60  ;;  %v1814_v23 = vmul.f32 %v3772_v21, %v3738_v12  ;;  %v1885_v25 = vmul.f32 %v3781_v63, %v3854_v41 }
  0xb0   : > { %v1886_v27 = vmul.f32 %v3781_v63, %v3856_v17  ;;  %v2685_v57 = vunpack.c.h.bf16 %v3752_v38  ;;  %v1703_v28 = vadd.f32 %v1671_v15, %v1631_v51  ;;  %v1704_v14 = vadd.f32 %v1672_v10, %v1632_v54 }
  0xb1   : > { %v1845_v32 = vadd.f32 %v1813_v59, %v1773_v31  ;;  %v2692_v40 = vunpack.c.l.bf16 %v3864_v61  ;;  %v1846_v46 = vadd.f32 %v1814_v23, %v1774_v45  ;;  %v692_v39 = vadd.s32 160, %v2928_v2 }
  0xb2   : > { %v530_v35 = vmul.f32 %v3569_v0, %v2685_v57  ;;  %v693_v5 = vadd.s32 168, %v2928_v2  ;;  %v1949_v52 = vmul.f32 %v2517_v7, %v1703_v28  ;;  %v1982_v49 = vadd.f32 %v1704_v14, %v1490_v4 }
  0xb3   : > { %v1917_v56 = vadd.f32 %v1885_v25, %v1845_v32  ;;  %v615_v48 = vmul.f32 %v3569_v0, %v2692_v40  ;;  %v1918_v18 = vadd.f32 %v1886_v27, %v1846_v46  ;;  %v848_v15 = vand.u32 15, %v692_v39  ;;  %v3915_v39 = vld [vmem:[#allocation2 + $0xc7] sm:$0xff] }
  0xb4   : > { %v568_v38 = vadd.f32 %v3578_v20, %v530_v35  ;;  %v855_v10 = vand.u32 15, %v693_v5  ;;  %v1981_v31 = vadd.f32 %v1949_v52, %v1489_v43  ;;  %v1347_v54 = vmul.f32 %v3662_v26, %v3671_v62  ;;  %v3917_v5 = vld [vmem:[#allocation2 + $0xcf] sm:$0xff] }
  0xb5   : > { %v617_v51 = vadd.f32 %v3578_v20, %v615_v48  ;;  %v1348_v45 = vmul.f32 %v3662_v26, %v3366_v36  ;;  %v2014_v59 = vmul.f32 %v2533_v11, %v1918_v18  ;;  %vm3890_vm4 = vcmp.gt.s32.totalorder %v848_v15, 0 }
  0xb6   : > { %v3888_v23 = vmax.f32 %v568_v38, 0.0  ;;  %vm3894_vm5 = vcmp.lt.s32.totalorder %v855_v10, 15  ;;  %v2045_v43 = vadd.f32 %v1981_v31, %v1917_v56  ;;  %v2518_v62 = vsel %vm3890_vm4, 1.0, %v3510_v8 }
  0xb7   : > { %v619_v25 = vmax.f32 %v617_v51, 0.0  ;;  %v2046_v48 = vadd.f32 %v2014_v59, %v1982_v49  ;;  %v1387_v36 = vmul.f32 %v3692_v30, %v3368_v29  ;;  %v1388_v18 = vmul.f32 %v3692_v30, %v3432_v19  ;;  %v3929_v51 = vld [vmem:[#allocation2 + $0xc9] sm:$0xff] }
  0xb8   : > { %667 = vst [vmem:[#allocation2 + $0x110] sm:$0xff] %v3888_v23  ;;  %v1459_v11 = vmul.f32 %v3702_v50, %v3434_v24  ;;  %v2236_v27 = vadd.f32 %v2235_v22, %v2045_v43  ;;  %v2534_v28 = vsel %vm3894_vm5, 1.0, %v3510_v8  ;;  %v1460_v14 = vmul.f32 %v3702_v50, %v3498_v13 }
  0xb9   : > { %v3908_v57 = vmul.f32 0.0, %v619_v25  ;;  %v2742_v32 = vpack.c.bf16 %v2046_v48, %v2045_v43  ;;  %v2274_v40 = vmul.f32 %v2045_v43, %v2045_v43  ;;  %v1419_v46 = vadd.f32 %v1387_v36, %v1347_v54  ;;  %v3931_v54 = vld [vmem:[#allocation2 + $0xd1] sm:$0xff] }
  0xba   : > { %v1420_v35 = vadd.f32 %v1388_v18, %v1348_v45  ;;  %v2237_v56 = vadd.f32 %v2236_v27, %v2046_v48  ;;  %v2275_v52 = vmul.f32 %v2046_v48, %v2046_v48  ;;  %v1561_v22 = vmul.f32 %v3719_v6, %v3709_v44 }
  0xbb   : > { %668 = vst [vmem:[#allocation2 + $0x118] sm:$0xff] %v3908_v57  ;;  %v1562_v49 = vmul.f32 %v3719_v6, %v3711_v58  ;;  %2797 = vst [vmem:[%s3234_s18 + $0x48] sm:$0xff] %v2742_v32   ;;  %v2305_v38 = vadd.f32 %v2304_v3, %v2274_v40  ;;  %v1491_v15 = vadd.f32 %v1459_v11, %v1419_v46  ;;  %v2693_v18 = vunpack.c.h.bf16 %v3864_v61 }
  0xbc   : > { %v1601_v10 = vmul.f32 %v3730_v34, %v3837_v55  ;;  %v1602_v31 = vmul.f32 %v3730_v34, %v3839_v37  ;;  %v1492_v45 = vadd.f32 %v1460_v14, %v1420_v35  ;;  %v1673_v44 = vmul.f32 %v3745_v53, %v3915_v39 }
  0xbd   : > { %v1674_v58 = vmul.f32 %v3745_v53, %v3917_v5  ;;  %v1775_v3 = vmul.f32 %v3757_v47, %v3736_v60  ;;  %v1776_v4 = vmul.f32 %v3757_v47, %v3738_v12  ;;  %v1815_v43 = vmul.f32 %v3772_v21, %v3854_v41 }
  0xbe   : > { %v1633_v59 = vadd.f32 %v1601_v10, %v1561_v22  ;;  %v1634_v7 = vadd.f32 %v1602_v31, %v1562_v49  ;;  %v1816_v25 = vmul.f32 %v3772_v21, %v3856_v17  ;;  %v1887_v48 = vmul.f32 %v3781_v63, %v3929_v51 }
  0xbf   : > { %v1888_v36 = vmul.f32 %v3781_v63, %v3931_v54  ;;  %v1847_v27 = vadd.f32 %v1815_v43, %v1775_v3  ;;  %v694_v14 = vadd.s32 176, %v2928_v2  ;;  %v616_v32 = vmul.f32 %v3569_v0, %v2693_v18  ;;  %v3982_v18 = vld [vmem:[#allocation2 + $0xd7] sm:$0xff] }
  0xc0   : > { %v1705_v60 = vadd.f32 %v1673_v44, %v1633_v59  ;;  %v1706_v11 = vadd.f32 %v1674_v58, %v1634_v7  ;;  %v1848_v12 = vadd.f32 %v1816_v25, %v1776_v4  ;;  %v695_v40 = vadd.s32 184, %v2928_v2 }
  0xc1   : > { %v1349_v46 = vmul.f32 %v3662_v26, %v3368_v29  ;;  %v1919_v35 = vadd.f32 %v1887_v48, %v1847_v27  ;;  %v862_v10 = vand.u32 15, %v694_v14  ;;  %v618_v61 = vadd.f32 %v3578_v20, %v616_v32 }
  0xc2   : > { %v1951_v22 = vmul.f32 %v2518_v62, %v1705_v60  ;;  %v1984_v49 = vadd.f32 %v1706_v11, %v1492_v45  ;;  %v1920_v31 = vadd.f32 %v1888_v36, %v1848_v12  ;;  %v869_v44 = vand.u32 15, %v695_v40  ;;  %v3984_v60 = vld [vmem:[#allocation2 + $0xdf] sm:$0xff] }
  0xc3   : > { %v1350_v58 = vmul.f32 %v3662_v26, %v3432_v19  ;;  %vm3958_vm6 = vcmp.gt.s32.totalorder %v862_v10, 0  ;;  %v1389_v0 = vmul.f32 %v3692_v30, %v3434_v24  ;;  %v1390_v29 = vmul.f32 %v3692_v30, %v3498_v13 }
  0xc4   : > { %v1983_v3 = vadd.f32 %v1951_v22, %v1491_v15  ;;  %v2306_v62 = vadd.f32 %v2305_v38, %v2275_v52  ;;  %v2016_v45 = vmul.f32 %v2534_v28, %v1920_v31  ;;  %v620_v7 = vmax.f32 %v618_v61, 0.0 }
  0xc5   : > { %vm3966_vm7 = vcmp.lt.s32.totalorder %v869_v44, 15  ;;  %v2519_v19 = vsel %vm3958_vm6, 1.0, %v3510_v8  ;;  %v1421_v15 = vadd.f32 %v1389_v0, %v1349_v46  ;;  %v1422_v43 = vadd.f32 %v1390_v29, %v1350_v58 }
  0xc6   : > { %v2047_v4 = vadd.f32 %v1983_v3, %v1919_v35  ;;  %v2048_v25 = vadd.f32 %v2016_v45, %v1984_v49  ;;  %v3973_v48 = vmul.f32 0.0, %v620_v7  ;;  %v1461_v36 = vmul.f32 %v3702_v50, %v3508_v9  ;;  %v3995_v49 = vld [vmem:[#allocation2 + $0xd9] sm:$0xff] }
  0xc7   : > { %v1462_v28 = vmul.f32 %v3702_v50, %v3586_v42  ;;  %v2535_v38 = vsel %vm3966_vm7, 1.0, %v3510_v8  ;;  %v1563_v11 = vmul.f32 %v3719_v6, %v3837_v55  ;;  %v1564_v27 = vmul.f32 %v3719_v6, %v3839_v37  ;;  %v3997_v55 = vld [vmem:[#allocation2 + $0xe1] sm:$0xff] }
  0xc8   : > { %v2238_v52 = vadd.f32 %v2237_v56, %v2047_v4  ;;  %v2747_v14 = vpack.c.bf16 %v2048_v25, %v2047_v4  ;;  %v2276_v12 = vmul.f32 %v2047_v4, %v2047_v4  ;;  %v2277_v32 = vmul.f32 %v2048_v25, %v2048_v25  ;;  %669 = vst [vmem:[#allocation2 + $0x120] sm:$0xff] %v3973_v48 }
  0xc9   : > { %v1493_v56 = vadd.f32 %v1461_v36, %v1421_v15  ;;  %v1494_v46 = vadd.f32 %v1462_v28, %v1422_v43  ;;  %v1603_v35 = vmul.f32 %v3730_v34, %v3915_v39  ;;  %v1604_v22 = vmul.f32 %v3730_v34, %v3917_v5 }
  0xca   : > { %v2239_v40 = vadd.f32 %v2238_v52, %v2048_v25  ;;  %2798 = vst [vmem:[%s3234_s18 + $0x50] sm:$0xff] %v2747_v14   ;;  %v1675_v37 = vmul.f32 %v3745_v53, %v3982_v18  ;;  %v1676_v10 = vmul.f32 %v3745_v53, %v3984_v60  ;;  %v1777_v31 = vmul.f32 %v3757_v47, %v3854_v41 }
  0xcb   : > { %v1778_v61 = vmul.f32 %v3757_v47, %v3856_v17  ;;  %v2307_v44 = vadd.f32 %v2306_v62, %v2276_v12  ;;  %v1635_v58 = vadd.f32 %v1603_v35, %v1563_v11  ;;  %v1636_v3 = vadd.f32 %v1604_v22, %v1564_v27 }
  0xcc   : > { %v1817_v59 = vmul.f32 %v3772_v21, %v3929_v51  ;;  %v1818_v0 = vmul.f32 %v3772_v21, %v3931_v54  ;;  %v1889_v29 = vmul.f32 %v3781_v63, %v3995_v49  ;;  %v1890_v45 = vmul.f32 %v3781_v63, %v3997_v55 }
  0xcd   : > { %v696_v41 = vadd.s32 192, %v2928_v2  ;;  %v1707_v7 = vadd.f32 %v1675_v37, %v1635_v58  ;;  %v1708_v20 = vadd.f32 %v1676_v10, %v1636_v3  ;;  %v697_v62 = vadd.s32 200, %v2928_v2 }
  0xce   : > { %v1849_v17 = vadd.f32 %v1817_v59, %v1777_v31  ;;  %v1850_v4 = vadd.f32 %v1818_v0, %v1778_v61  ;;  %v1351_v43 = vmul.f32 %v3662_v26, %v3434_v24  ;;  %v1352_v25 = vmul.f32 %v3662_v26, %v3498_v13  ;;  %v4039_v61 = vld [vmem:[#allocation2 + $0xe7] sm:$0xff]  ;;  %v4050_v59 = vld [vmem:[#allocation2 + $0xef] sm:$0xff] }
  0xcf   : > { %v876_v15 = vand.u32 15, %v696_v41  ;;  %v1953_v28 = vmul.f32 %v2519_v19, %v1707_v7  ;;  %v1986_v52 = vadd.f32 %v1708_v20, %v1494_v46  ;;  %v883_v11 = vand.u32 15, %v697_v62 }
  0xd0   : > { %v1921_v36 = vadd.f32 %v1889_v29, %v1849_v17  ;;  %v1922_v27 = vadd.f32 %v1890_v45, %v1850_v4  ;;  %v1391_v12 = vmul.f32 %v3692_v30, %v3508_v9  ;;  %v1392_v35 = vmul.f32 %v3692_v30, %v3586_v42  ;;  %v4058_v4 = vld [vmem:[#allocation2 + $0xe9] sm:$0xff] }
  0xd1   : > { %vm4022_vm8 = vcmp.gt.s32.totalorder %v876_v15, 0  ;;  %v2308_v22 = vadd.f32 %v2307_v44, %v2277_v32  ;;  %v1985_v24 = vadd.f32 %v1953_v28, %v1493_v56  ;;  %vm4030_vm9 = vcmp.lt.s32.totalorder %v883_v11, 15  ;;  %v4060_v15 = vld [vmem:[#allocation2 + $0xf1] sm:$0xff] }
  0xd2   : > { %v1463_v13 = vmul.f32 %v3702_v50, %v3596_v16  ;;  %v2018_v19 = vmul.f32 %v2535_v38, %v1922_v27  ;;  %v2520_v46 = vsel %vm4022_vm8, 1.0, %v3510_v8  ;;  %v1423_v10 = vadd.f32 %v1391_v12, %v1351_v43 }
  0xd3   : > { %v1424_v31 = vadd.f32 %v1392_v35, %v1352_v25  ;;  %v2049_v58 = vadd.f32 %v1985_v24, %v1921_v36  ;;  %v1464_v32 = vmul.f32 %v3702_v50, %v3675_v33  ;;  %v1565_v56 = vmul.f32 %v3719_v6, %v3915_v39 }
  0xd4   : > { %v1566_v44 = vmul.f32 %v3719_v6, %v3917_v5  ;;  %v2050_v3 = vadd.f32 %v2018_v19, %v1986_v52  ;;  %v2536_v38 = vsel %vm4030_vm9, 1.0, %v3510_v8  ;;  %v1605_v0 = vmul.f32 %v3730_v34, %v3982_v18 }
  0xd5   : > { %v1606_v29 = vmul.f32 %v3730_v34, %v3984_v60  ;;  %v2240_v45 = vadd.f32 %v2239_v40, %v2049_v58  ;;  %v2278_v41 = vmul.f32 %v2049_v58, %v2049_v58  ;;  %v1495_v39 = vadd.f32 %v1463_v13, %v1423_v10 }
  0xd6   : > { %v1677_v5 = vmul.f32 %v3745_v53, %v4039_v61  ;;  %v2752_v7 = vpack.c.bf16 %v2050_v3, %v2049_v58  ;;  %v1496_v20 = vadd.f32 %v1464_v32, %v1424_v31  ;;  %v1637_v17 = vadd.f32 %v1605_v0, %v1565_v56 }
  0xd7   : > { %v1638_v62 = vadd.f32 %v1606_v29, %v1566_v44  ;;  %v2241_v43 = vadd.f32 %v2240_v45, %v2050_v3  ;;  %v2279_v25 = vmul.f32 %v2050_v3, %v2050_v3  ;;  %v1678_v36 = vmul.f32 %v3745_v53, %v4050_v59 }
  0xd8   : > { %v1779_v40 = vmul.f32 %v3757_v47, %v3929_v51  ;;  %2799 = vst [vmem:[%s3234_s18 + $0x58] sm:$0xff] %v2752_v7   ;;  %v1709_v28 = vadd.f32 %v1677_v5, %v1637_v17  ;;  %v1780_v52 = vmul.f32 %v3757_v47, %v3931_v54  ;;  %v1819_v11 = vmul.f32 %v3772_v21, %v3995_v49 }
  0xd9   : > { %v1820_v27 = vmul.f32 %v3772_v21, %v3997_v55  ;;  %v2309_v14 = vadd.f32 %v2308_v22, %v2278_v41  ;;  %v1710_v12 = vadd.f32 %v1678_v36, %v1638_v62  ;;  %v1891_v35 = vmul.f32 %v3781_v63, %v4058_v4 }
  0xda   : > { %v1892_v24 = vmul.f32 %v3781_v63, %v4060_v15  ;;  %v1851_v51 = vadd.f32 %v1819_v11, %v1779_v40  ;;  %v1955_v13 = vmul.f32 %v2520_v46, %v1709_v28  ;;  %v698_v19 = vadd.s32 208, %v2928_v2  ;;  %v4102_v28 = vld [vmem:[#allocation2 + $0xf7] sm:$0xff] }
  0xdb   : > { %v1852_v37 = vadd.f32 %v1820_v27, %v1780_v52  ;;  %v1988_v54 = vadd.f32 %v1710_v12, %v1496_v20  ;;  %v699_v10 = vadd.s32 216, %v2928_v2  ;;  %v1353_v31 = vmul.f32 %v3662_v26, %v3508_v9  ;;  %v4104_v52 = vld [vmem:[#allocation2 + $0xff] sm:$0xff] }
  0xdc   : > { %v1354_v22 = vmul.f32 %v3662_v26, %v3586_v42  ;;  %v1923_v58 = vadd.f32 %v1891_v35, %v1851_v51  ;;  %v1987_v56 = vadd.f32 %v1955_v13, %v1495_v39  ;;  %v890_v44 = vand.u32 15, %v698_v19  ;;  %v4356_v42 = vld [vmem:[#allocation14_spill] sm:$0xff]  ;;  %v4113_v51 = vld [vmem:[#allocation2 + $0xf9] sm:$0xff] }
  0xdd   : > { %v1924_v32 = vadd.f32 %v1892_v24, %v1852_v37  ;;  %v897_v3 = vand.u32 15, %v699_v10  ;;  %v1393_v0 = vmul.f32 %v3692_v30, %v3596_v16  ;;  %v1394_v46 = vmul.f32 %v3692_v30, %v3675_v33 }
  0xde   : > { %v1465_v29 = vmul.f32 %v3702_v50, %v3684_v1  ;;  %v2051_v41 = vadd.f32 %v1987_v56, %v1923_v58  ;;  %vm4089_vm10 = vcmp.gt.s32.totalorder %v890_v44, 0  ;;  %v1466_v39 = vmul.f32 %v3702_v50, %v4356_v42 }
  0xdf   : > { %v2020_v45 = vmul.f32 %v2536_v38, %v1924_v32  ;;  %v2310_v5 = vadd.f32 %v2309_v14, %v2279_v25  ;;  %vm4095_vm11 = vcmp.lt.s32.totalorder %v897_v3, 15  ;;  %v1425_v20 = vadd.f32 %v1393_v0, %v1353_v31 }
  0xe0   : > { %v1426_v17 = vadd.f32 %v1394_v46, %v1354_v22  ;;  %v2242_v36 = vadd.f32 %v2241_v43, %v2051_v41  ;;  %v2280_v40 = vmul.f32 %v2051_v41, %v2051_v41  ;;  %v2521_v38 = vsel %vm4089_vm10, 1.0, %v3510_v8 }
  0xe1   : > { %v2052_v62 = vadd.f32 %v2020_v45, %v1988_v54  ;;  %v2537_v25 = vsel %vm4095_vm11, 1.0, %v3510_v8  ;;  %v1497_v11 = vadd.f32 %v1465_v29, %v1425_v20  ;;  %v1567_v27 = vmul.f32 %v3719_v6, %v3982_v18  ;;  %v4123_v54 = vld [vmem:[#allocation2 + $0x101] sm:$0xff] }
  0xe2   : > { %v1568_v43 = vmul.f32 %v3719_v6, %v3984_v60  ;;  %v1498_v24 = vadd.f32 %v1466_v39, %v1426_v17  ;;  %v1607_v37 = vmul.f32 %v3730_v34, %v4039_v61  ;;  %v1608_v13 = vmul.f32 %v3730_v34, %v4050_v59 }
  0xe3   : > { %v2757_v14 = vpack.c.bf16 %v2052_v62, %v2051_v41  ;;  %v2243_v12 = vadd.f32 %v2242_v36, %v2052_v62  ;;  %v2281_v35 = vmul.f32 %v2052_v62, %v2052_v62  ;;  %v1679_v19 = vmul.f32 %v3745_v53, %v4102_v28 }
  0xe4   : > { %v1680_v18 = vmul.f32 %v3745_v53, %v4104_v52  ;;  %v2311_v60 = vadd.f32 %v2310_v5, %v2280_v40  ;;  %v1781_v10 = vmul.f32 %v3757_v47, %v3995_v49  ;;  %v1782_v31 = vmul.f32 %v3757_v47, %v3997_v55 }
  0xe5   : > { %2800 = vst [vmem:[%s3234_s18 + $0x60] sm:$0xff] %v2757_v14   ;;  %v1821_v22 = vmul.f32 %v3772_v21, %v4058_v4  ;;  %v1639_v58 = vadd.f32 %v1607_v37, %v1567_v27  ;;  %v1640_v32 = vadd.f32 %v1608_v13, %v1568_v43  ;;  %v1822_v56 = vmul.f32 %v3772_v21, %v4060_v15  ;;  %v4361_v43 = vld [vmem:[#allocation5_spill] sm:$0xff] }
  0xe6   : > { %v1893_v44 = vmul.f32 %v3781_v63, %v4113_v51  ;;  %v1894_v0 = vmul.f32 %v3781_v63, %v4123_v54  ;;  %v700_v49 = vadd.s32 224, %v2928_v2  ;;  %v701_v46 = vadd.s32 232, %v2928_v2 }
  0xe7   : > { %v1853_v3 = vadd.f32 %v1821_v22, %v1781_v10  ;;  %v1711_v55 = vadd.f32 %v1679_v19, %v1639_v58  ;;  %v1712_v29 = vadd.f32 %v1680_v18, %v1640_v32  ;;  %v1854_v45 = vadd.f32 %v1822_v56, %v1782_v31  ;;  %v4173_v22 = vld [vmem:[#allocation2] sm:$0xff] }
  0xe8   : > { %v1355_v41 = vmul.f32 %v3662_v26, %v3596_v16  ;;  %v904_v39 = vand.u32 15, %v700_v49  ;;  %v911_v5 = vand.u32 15, %v701_v46  ;;  %v1356_v7 = vmul.f32 %v3662_v26, %v3675_v33  ;;  %v4182_v49 = vld [vmem:[#allocation2 + $0x109] sm:$0xff] }
  0xe9   : > { %v1925_v9 = vadd.f32 %v1893_v44, %v1853_v3  ;;  %v1926_v20 = vadd.f32 %v1894_v0, %v1854_v45  ;;  %v1957_v17 = vmul.f32 %v2521_v38, %v1711_v55  ;;  %v1990_v62 = vadd.f32 %v1712_v29, %v1498_v24 }
  0xea   : > { %v1395_v36 = vmul.f32 %v3692_v30, %v3684_v1  ;;  %v2312_v40 = vadd.f32 %v2311_v60, %v2281_v35  ;;  %vm4146_vm12 = vcmp.gt.s32.totalorder %v904_v39, 0  ;;  %v1396_v16 = vmul.f32 %v3692_v30, %v4356_v42  ;;  %v4161_v35 = vld [vmem:[#allocation2 + $0x107] sm:$0xff] }
  0xeb   : > { %v1467_v14 = vmul.f32 %v3702_v50, %v4361_v43  ;;  %v1989_v37 = vadd.f32 %v1957_v17, %v1497_v11  ;;  %v2022_v13 = vmul.f32 %v2537_v25, %v1926_v20  ;;  %v2522_v33 = vsel %vm4146_vm12, 1.0, %v3510_v8  ;;  %v4169_v8 = vld [vmem:[#allocation2 + $0x10f] sm:$0xff] }
  0xec   : > { %vm4157_vm13 = vcmp.lt.s32.totalorder %v911_v5, 15  ;;  %v1427_v24 = vadd.f32 %v1395_v36, %v1355_v41  ;;  %v1428_v19 = vadd.f32 %v1396_v16, %v1356_v7  ;;  %v1468_v18 = vmul.f32 %v3702_v50, %v3888_v23  ;;  %v1788_v41 = vld [vmem:[#allocation2 + $0x111] sm:$0xff] }
  0xed   : > { %v1569_v60 = vmul.f32 %v3719_v6, %v4039_v61  ;;  %v2053_v11 = vadd.f32 %v1989_v37, %v1925_v9  ;;  %v2054_v25 = vadd.f32 %v2022_v13, %v1990_v62  ;;  %v1570_v10 = vmul.f32 %v3719_v6, %v4050_v59 }
  0xee   : > { %v1609_v31 = vmul.f32 %v3730_v34, %v4102_v28  ;;  %v2538_v58 = vsel %vm4157_vm13, 1.0, %v4173_v22  ;;  %v1499_v32 = vadd.f32 %v1467_v14, %v1427_v24  ;;  %v1610_v61 = vmul.f32 %v3730_v34, %v4104_v52 }
  0xef   : > { %v1681_v56 = vmul.f32 %v3745_v53, %v4161_v35  ;;  %v2762_v59 = vpack.c.bf16 %v2054_v25, %v2053_v11  ;;  %v2244_v44 = vadd.f32 %v2243_v12, %v2053_v11  ;;  %v2282_v3 = vmul.f32 %v2053_v11, %v2053_v11 }
  0xf0   : > { %v1500_v0 = vadd.f32 %v1468_v18, %v1428_v19  ;;  %v1641_v46 = vadd.f32 %v1609_v31, %v1569_v60  ;;  %v1642_v55 = vadd.f32 %v1610_v61, %v1570_v10  ;;  %v1682_v29 = vmul.f32 %v3745_v53, %v4169_v8 }
  0xf1   : > { %v1783_v45 = vmul.f32 %v3757_v47, %v4058_v4  ;;  %2801 = vst [vmem:[%s3234_s18 + $0x68] sm:$0xff] %v2762_v59   ;;  %v2245_v9 = vadd.f32 %v2244_v44, %v2054_v25  ;;  %v2283_v39 = vmul.f32 %v2054_v25, %v2054_v25  ;;  %v1784_v5 = vmul.f32 %v3757_v47, %v4060_v15 }
  0xf2   : > { %v1823_v12 = vmul.f32 %v3772_v21, %v4113_v51  ;;  %v1713_v7 = vadd.f32 %v1681_v56, %v1641_v46  ;;  %v1714_v20 = vadd.f32 %v1682_v29, %v1642_v55  ;;  %v1824_v17 = vmul.f32 %v3772_v21, %v4123_v54 }
  0xf3   : > { %v1895_v62 = vmul.f32 %v3781_v63, %v4182_v49  ;;  %v2313_v36 = vadd.f32 %v2312_v40, %v2282_v3  ;;  %v1896_v27 = vmul.f32 %v3781_v63, %v1788_v41  ;;  %v702_v16 = vadd.s32 240, %v2928_v2 }
  0xf4   : > { %v1855_v4 = vadd.f32 %v1823_v12, %v1783_v45  ;;  %v1856_v14 = vadd.f32 %v1824_v17, %v1784_v5  ;;  %v1959_v37 = vmul.f32 %v2522_v33, %v1713_v7  ;;  %v1992_v15 = vadd.f32 %v1714_v20, %v1500_v0 }
  0xf5   : > { %v703_v13 = vadd.s32 248, %v2928_v2  ;;  %v918_v24 = vand.u32 15, %v702_v16  ;;  %v1357_v19 = vmul.f32 %v3662_v26, %v3684_v1  ;;  %v1358_v18 = vmul.f32 %v3662_v26, %v4356_v42 }
  0xf6   : > { %v1927_v38 = vadd.f32 %v1895_v62, %v1855_v4  ;;  %v1928_v60 = vadd.f32 %v1896_v27, %v1856_v14  ;;  %v1991_v40 = vadd.f32 %v1959_v37, %v1499_v32  ;;  %v1397_v25 = vmul.f32 %v3692_v30, %v4361_v43 }
  0xf7   : > { %v925_v11 = vand.u32 15, %v703_v13  ;;  %vm4206_vm14 = vcmp.gt.s32.totalorder %v918_v24, 0  ;;  %v1398_v2 = vmul.f32 %v3692_v30, %v3888_v23  ;;  %v1469_v33 = vmul.f32 %v3702_v50, %v3908_v57 }
  0xf8   : > { %v1470_v1 = vmul.f32 %v3702_v50, %v3973_v48  ;;  %v2314_v26 = vadd.f32 %v2313_v36, %v2283_v39  ;;  %v2024_v42 = vmul.f32 %v2538_v58, %v1928_v60  ;;  %v2055_v31 = vadd.f32 %v1991_v40, %v1927_v38  ;;  %v1645_v48 = vld [vmem:[#allocation2 + $0x117] sm:$0xff]  ;;  %v1646_v58 = vld [vmem:[#allocation2 + $0x11f] sm:$0xff] }
  0xf9   : > { %v2523_v43 = vsel %vm4206_vm14, 1.0, %v4173_v22  ;;  %vm4219_vm15 = vcmp.lt.s32.totalorder %v925_v11, 15  ;;  %v1429_v61 = vadd.f32 %v1397_v25, %v1357_v19  ;;  %v1430_v56 = vadd.f32 %v1398_v2, %v1358_v18  ;;  %v1860_v39 = vld [vmem:[#allocation2 + $0x121] sm:$0xff] }
  0xfa   : > { %v1571_v30 = vmul.f32 %v3719_v6, %v4102_v28  ;;  %v2056_v23 = vadd.f32 %v2024_v42, %v1992_v15  ;;  %v2246_v57 = vadd.f32 %v2245_v9, %v2055_v31  ;;  %v2284_v59 = vmul.f32 %v2055_v31, %v2055_v31  ;;  %v1859_v9 = vld [vmem:[#allocation2 + $0x119] sm:$0xff] }
  0xfb   : > { %v1572_v50 = vmul.f32 %v3719_v6, %v4104_v52  ;;  %v1501_v44 = vadd.f32 %v1469_v33, %v1429_v61  ;;  %v1502_v3 = vadd.f32 %v1470_v1, %v1430_v56  ;;  %v1611_v0 = vmul.f32 %v3730_v34, %v4161_v35 }
  0xfc   : > { %v1612_v46 = vmul.f32 %v3730_v34, %v4169_v8  ;;  %v2767_v55 = vpack.c.bf16 %v2056_v23, %v2055_v31  ;;  %v2247_v29 = vadd.f32 %v2246_v57, %v2056_v23  ;;  %v2285_v28 = vmul.f32 %v2056_v23, %v2056_v23 }
  0xfd   : > { %v2315_v45 = vadd.f32 %v2314_v26, %v2284_v59  ;;  %v1643_v5 = vadd.f32 %v1611_v0, %v1571_v30  ;;  %v1683_v6 = vmul.f32 %v3745_v53, %v1645_v48  ;;  %v1684_v52 = vmul.f32 %v3745_v53, %v1646_v58 }
  0xfe   : > { %v1644_v12 = vadd.f32 %v1612_v46, %v1572_v50  ;;  %2802 = vst [vmem:[%s3234_s18 + $0x70] sm:$0xff] %v2767_v55   ;;  %v1785_v7 = vmul.f32 %v3757_v47, %v4113_v51  ;;  %v1786_v35 = vmul.f32 %v3757_v47, %v4123_v54  ;;  %v1825_v34 = vmul.f32 %v3772_v21, %v4182_v49 }
  0xff   : > { %v1826_v8 = vmul.f32 %v3772_v21, %v1788_v41  ;;  %v1715_v20 = vadd.f32 %v1683_v6, %v1643_v5  ;;  %v1897_v62 = vmul.f32 %v3781_v63, %v1859_v9  ;;  %v1898_v36 = vmul.f32 %v3781_v63, %v1860_v39 }
 0x100   : > { %v1716_v17 = vadd.f32 %v1684_v52, %v1644_v12  ;;  %v1857_v4 = vadd.f32 %v1825_v34, %v1785_v7  ;;  %v2316_v27 = vadd.f32 %v2315_v45, %v2285_v28  ;;  %v2539_v51 = vsel %vm4219_vm15, 1.0, %v4173_v22 }
 0x101   : > { %v1858_v53 = vadd.f32 %v1826_v8, %v1786_v35  ;;  %v1961_v47 = vmul.f32 %v2523_v43, %v1715_v20 }
 0x102   : > { %v1929_v54 = vadd.f32 %v1897_v62, %v1857_v4  ;;  %v1994_v49 = vadd.f32 %v1716_v17, %v1502_v3 }
 0x103   : > { %v1930_v16 = vadd.f32 %v1898_v36, %v1858_v53  ;;  %v1993_v14 = vadd.f32 %v1961_v47, %v1501_v44 }
 0x105   : > { %v2026_v21 = vmul.f32 %v2539_v51, %v1930_v16  ;;  %v2057_v41 = vadd.f32 %v1993_v14, %v1929_v54 }
 0x107   : > { %v2058_v37 = vadd.f32 %v2026_v21, %v1994_v49  ;;  %v2286_v15 = vmul.f32 %v2057_v41, %v2057_v41  ;;  %v2248_v13 = vadd.f32 %v2247_v29, %v2057_v41 }
 0x109   : > { %v2772_v63 = vpack.c.bf16 %v2058_v37, %v2057_v41  ;;  %v2249_v38 = vadd.f32 %v2248_v13, %v2058_v37  ;;  %v2287_v24 = vmul.f32 %v2058_v37, %v2058_v37  ;;  %v2317_v19 = vadd.f32 %v2316_v27, %v2286_v15 }
 0x10b   : > { %2803 = vst [vmem:[%s3234_s18 + $0x78] sm:$0xff] %v2772_v63   ;;  %v2250_v18 = vrot.slane %v2249_v38, 4  ;;  %v2318_v60 = vadd.f32 %v2317_v19, %v2287_v24 }
 0x10d   : > { %v2251_v40 = vadd.f32 %v2250_v18, %v2249_v38  ;;  %v2319_v22 = vrot.slane %v2318_v60, 4 }
 0x10f   : > { %v2252_v11 = vrot.slane %v2251_v40, 2  ;;  %v2320_v25 = vadd.f32 %v2319_v22, %v2318_v60 }
 0x111   : > { %v2253_v10 = vadd.f32 %v2252_v11, %v2251_v40  ;;  %v2321_v2 = vrot.slane %v2320_v25, 2 }
 0x113   : > { %v2254_v33 = vrot.slane %v2253_v10, 1  ;;  %v2322_v1 = vadd.f32 %v2321_v2, %v2320_v25 }
 0x115   : > { %v2255_v26 = vadd.f32 %v2254_v33, %v2253_v10  ;;  %v2323_v42 = vrot.slane %v2322_v1, 1 }
 0x117   : > { %2329 = vst [vmem:[%s425_s13] sm:$0x1] %v2255_v26  ;;  %v2324_v31 = vadd.f32 %v2323_v42, %v2322_v1 }
 0x119   : > { %2581 = vst [vmem:[%s425_s13 + $0x1] sm:$0x1] %v2324_v31 }
 0x11a PF: > { %s17_s23 = sadd.s32 1, %s2866_s23   ;;  %s4368_s21 = smov %s2862_s22 }
 0x11b   : > { %p14_p7 = scmp.ge.s32.totalorder %s17_s23, 4   ;;  %s4369_s22 = smov %s4371_s24 }
 0x11d   :  { %16 = sbr.rel (!%p14_p7) target bundleno = 2 (0x2), region = 99 }

</bundles_post_ra>
